<compile_context>
chip_gen: v7x
topology: tpu7x:2x2x1
jax: 0.10.0
libtpu: 0.0.40
codegen_flags: <defaults>
</compile_context>

<pallas_src>
import jax
import jax.numpy as jnp
from jax.experimental import pallas as pl
from jax.experimental.pallas import tpu as pltpu


def _layer_norm(x, g, b, eps):
    mu = jnp.mean(x, axis=-1, keepdims=True)
    var = jnp.mean(jnp.square(x - mu), axis=-1, keepdims=True)
    return (x - mu) * jax.lax.rsqrt(var + eps) * g + b


def _make_kernel(*, n_head, d_k, d_v, has_mask, with_attn, matmul_dtype, ln_eps=1e-6):
    md = matmul_dtype

    def kernel(*refs):
        it = iter(refs)
        q_ref, k_ref, v_ref = next(it), next(it), next(it)
        mask_ref = next(it) if has_mask else None
        (wq_ref, wk_ref, wv_ref, wfc_ref,
         ln1g_ref, ln1b_ref, w1_ref, b1_ref, w2_ref, b2_ref,
         ln2g_ref, ln2b_ref) = (next(it) for _ in range(12))
        out_ref = next(it)
        attn_ref = next(it) if with_attn else None
        oslab_ref = next(it)

        tb, Lq, D = q_ref.shape
        Lk = k_ref.shape[1]

        # Residual (f32) and batched-M projection inputs (layout-preserving merges).
        res = q_ref[...].reshape(tb * Lq, D)             # f32 residual source
        q2 = res.astype(md)
        k2 = k_ref[...].reshape(tb * Lk, D)              # already matmul dtype
        v2 = v_ref[...].reshape(tb * Lk, D)

        # QKV projections over all tb*L rows (MXU, f32 accumulation).
        # 1/sqrt(d_k) is already folded into wq host-side.
        Q = jnp.dot(q2, wq_ref[...], preferred_element_type=jnp.float32).astype(md)
        K = jnp.dot(k2, wk_ref[...], preferred_element_type=jnp.float32).astype(md)
        V = jnp.dot(v2, wv_ref[...], preferred_element_type=jnp.float32).astype(md)
        Q3 = Q.reshape(tb, Lq, n_head * d_k)
        K3 = K.reshape(tb, Lk, n_head * d_k)
        V3 = V.reshape(tb, Lk, n_head * d_v)

        keep = None
        if mask_ref is not None:
            keep = mask_ref[...] != 0                    # (tb, Lq, Lk), hoisted

        dn_qk = (((2,), (2,)), ((0,), (0,)))             # Q · K^T, batched over tb
        dn_pv = (((2,), (1,)), ((0,), (0,)))             # P · V,   batched over tb

        for h in range(n_head):                          # O(H) loop; matmuls batched over tb
            Qh = Q3[:, :, h * d_k:(h + 1) * d_k]
            Kh = K3[:, :, h * d_k:(h + 1) * d_k]
            Vh = V3[:, :, h * d_v:(h + 1) * d_v]
            s = jax.lax.dot_general(Qh, Kh, dn_qk,
                                    preferred_element_type=jnp.float32)   # (tb, Lq, Lk)
            if keep is not None:
                s = jnp.where(keep, s, -1e9)
            s = s - jnp.max(s, axis=-1, keepdims=True)
            e = jnp.exp(s)
            inv = 1.0 / jnp.sum(e, axis=-1, keepdims=True)   # exact: probs sum to 1
            p = e * inv
            if attn_ref is not None:
                attn_ref[:, h] = p.astype(attn_ref.dtype)
            o = jax.lax.dot_general(p.astype(md), Vh, dn_pv,
                                    preferred_element_type=jnp.float32)   # (tb, Lq, d_v)
            # Write head output straight into the concat slab (matmul dtype).
            oslab_ref[:, :, h * d_v:(h + 1) * d_v] = o.astype(oslab_ref.dtype)

        concat = oslab_ref[...].reshape(tb * Lq, n_head * d_v)   # matmul dtype, no cast pass
        x = jnp.dot(concat, wfc_ref[...], preferred_element_type=jnp.float32) + res
        x = _layer_norm(x, ln1g_ref[...], ln1b_ref[...], ln_eps)

        # Position-wise feed-forward (batched over tb*Lq rows).
        h1 = jnp.dot(x.astype(md), w1_ref[...],
                     preferred_element_type=jnp.float32) + b1_ref[...]
        h1 = jnp.maximum(h1, 0.0)
        y = jnp.dot(h1.astype(md), w2_ref[...],
                    preferred_element_type=jnp.float32) + b2_ref[...]
        y = _layer_norm(y + x, ln2g_ref[...], ln2b_ref[...], ln_eps)
        out_ref[...] = y.reshape(tb, Lq, D).astype(out_ref.dtype)

    return kernel


def _pick_batch_block(batch):
    """Largest batch tile that still yields >= min(8, B) grid steps
    (enables BlockSpec double-buffering and v7x megacore sharding)."""
    target = min(8, batch)
    for tb in range(batch, 0, -1):
        if batch % tb == 0 and batch // tb >= target:
            return tb
    return 1


def attention_block_kvcache(q, k, v, params, slf_attn_mask=None, *, n_head,
                            matmul_dtype=jnp.bfloat16, attn_dtype=jnp.bfloat16,
                            batch_block=None, return_attn=True):
    md = matmul_dtype
    q = q.astype(jnp.float32)     # residual path stays f32
    k = k.astype(md)              # K/V only feed the MXU: ship in matmul dtype
    v = v.astype(md)
    B, Lq, D = q.shape
    Lk = k.shape[1]
    assert D % n_head == 0
    d_k = d_v = D // n_head
    hidden = params["w1"].shape[1]

    tb = _pick_batch_block(B) if batch_block is None else batch_block
    assert B % tb == 0, "batch_block must divide the batch size"
    grid = (B // tb,)

    has_mask = slf_attn_mask is not None

    # Fold the 1/sqrt(d_k) temperature into wq host-side; cast MXU weights.
    wq = (params["wq"] * (1.0 / (d_k ** 0.5))).astype(md)
    wk = params["wk"].astype(md)
    wv = params["wv"].astype(md)
    wfc = params["wfc"].astype(md)
    w1 = params["w1"].astype(md)
    w2 = params["w2"].astype(md)

    operands = [q, k, v]
    if has_mask:
        mask = jnp.broadcast_to(slf_attn_mask != 0, (B, Lq, Lk)).astype(jnp.int8)
        operands.append(mask)
    operands += [wq, wk, wv, wfc,
                 params["ln1_g"].astype(jnp.float32), params["ln1_b"].astype(jnp.float32),
                 w1, params["b1"].astype(jnp.float32),
                 w2, params["b2"].astype(jnp.float32),
                 params["ln2_g"].astype(jnp.float32), params["ln2_b"].astype(jnp.float32)]

    kernel = _make_kernel(n_head=n_head, d_k=d_k, d_v=d_v, has_mask=has_mask,
                          with_attn=return_attn, matmul_dtype=md)

    def _nbytes(shape, dtype):
        n = 1
        for s in shape:
            n *= int(s)
        return n * jnp.dtype(dtype).itemsize

    def build(single_buffer_weights):
        def wspec(shape):
            if single_buffer_weights:
                return pl.BlockSpec(shape, lambda *_: (0,) * len(shape),
                                    pipeline_mode=pl.Buffered(1))
            return pl.BlockSpec(shape, lambda *_: (0,) * len(shape))

        in_specs = [
            pl.BlockSpec((tb, Lq, D), lambda i: (i, 0, 0)),
            pl.BlockSpec((tb, Lk, D), lambda i: (i, 0, 0)),
            pl.BlockSpec((tb, Lk, D), lambda i: (i, 0, 0)),
        ]
        if has_mask:
            in_specs.append(pl.BlockSpec((tb, Lq, Lk), lambda i: (i, 0, 0)))
        in_specs += [
            wspec((D, n_head * d_k)),                 # wq (scale folded)
            wspec((D, n_head * d_k)),                 # wk
            wspec((D, n_head * d_v)),                 # wv
            wspec((n_head * d_v, D)),                 # wfc
            wspec((1, D)), wspec((1, D)),             # ln1 gamma, beta
            wspec((D, hidden)), wspec((1, hidden)),   # w1, b1
            wspec((hidden, D)), wspec((1, D)),        # w2, b2
            wspec((1, D)), wspec((1, D)),             # ln2 gamma, beta
        ]

        out_specs = [pl.BlockSpec((tb, Lq, D), lambda i: (i, 0, 0))]
        out_shape = [jax.ShapeDtypeStruct((B, Lq, D), jnp.float32)]
        if return_attn:
            out_specs.append(pl.BlockSpec((tb, n_head, Lq, Lk), lambda i: (i, 0, 0, 0)))
            out_shape.append(jax.ShapeDtypeStruct((B, n_head, Lq, Lk), attn_dtype))

        # VMEM budget from the actual block sizes (v7x: 64 MiB physical VMEM,
        # 32 MiB default scoped limit on v6e/v7x).
        wbufs = 1 if single_buffer_weights else 2
        weight_bytes = (2 * _nbytes((D, n_head * d_k), md)
                        + _nbytes((D, n_head * d_v), md)
                        + _nbytes((n_head * d_v, D), md)
                        + _nbytes((D, hidden), md) + _nbytes((hidden, D), md)
                        + 5 * _nbytes((1, D), jnp.float32)
                        + _nbytes((1, hidden), jnp.float32))
        est = (2 * _nbytes((tb, Lq, D), jnp.float32)                    # q blocks
               + 2 * 2 * _nbytes((tb, Lk, D), md)                       # k, v blocks
               + (2 * _nbytes((tb, Lq, Lk), jnp.int8) if has_mask else 0)
               + wbufs * weight_bytes
               + 2 * _nbytes((tb, Lq, D), jnp.float32)                  # out blocks
               + (2 * _nbytes((tb, n_head, Lq, Lk), attn_dtype) if return_attn else 0)
               + _nbytes((tb, Lq, n_head * d_v), md)                    # oslab scratch
               + 4 * _nbytes((tb * max(Lq, Lk), max(D, hidden)), jnp.float32))  # live temps
        vmem_limit = max(32 << 20, min(int(est * 3 // 2), 96 << 20))

        grid_spec = pltpu.PrefetchScalarGridSpec(
            num_scalar_prefetch=0,
            grid=grid,
            in_specs=in_specs,
            out_specs=tuple(out_specs),
            scratch_shapes=[pltpu.VMEM((tb, Lq, n_head * d_v), md)],
        )
        return pl.pallas_call(
            kernel,
            grid_spec=grid_spec,
            out_shape=tuple(out_shape),
            compiler_params=pltpu.CompilerParams(
                dimension_semantics=("parallel",),
                vmem_limit_bytes=vmem_limit),
        )

    try:
        result = build(single_buffer_weights=True)(*operands)
    except Exception:
        # TODO(synk): drop this fallback once pl.Buffered(1) (single-buffered
        # constant weight specs) is supported by every installed jax build.
        result = build(single_buffer_weights=False)(*operands)

    if return_attn:
        return result
    return result[0]


def reference(q, k, v, params, n_head, mask=None):
    """Pure-JAX f32 reference mirroring the PyTorch forward (eval mode)."""
    B, Lq, D = q.shape
    Lk = k.shape[1]
    d_k = d_v = D // n_head

    def ln(x, g, b, eps=1e-6):
        mu = x.mean(-1, keepdims=True)
        var = ((x - mu) ** 2).mean(-1, keepdims=True)
        return (x - mu) / jnp.sqrt(var + eps) * g + b

    Q = (q @ params["wq"]).reshape(B, Lq, n_head, d_k).transpose(0, 2, 1, 3)
    K = (k @ params["wk"]).reshape(B, Lk, n_head, d_k).transpose(0, 2, 1, 3)
    V = (v @ params["wv"]).reshape(B, Lk, n_head, d_v).transpose(0, 2, 1, 3)
    scores = jnp.einsum("bhqd,bhkd->bhqk", Q / (d_k ** 0.5), K)
    if mask is not None:
        scores = jnp.where(mask[:, None] == 0, -1e9, scores)
    attn = jax.nn.softmax(scores, axis=-1)
    o = jnp.einsum("bhqk,bhkd->bhqd", attn, V)
    o = o.transpose(0, 2, 1, 3).reshape(B, Lq, n_head * d_v)
    x = o @ params["wfc"] + q
    x = ln(x, params["ln1_g"][0], params["ln1_b"][0])
    h1 = jax.nn.relu(x @ params["w1"] + params["b1"][0])
    y = h1 @ params["w2"] + params["b2"][0] + x
    y = ln(y, params["ln2_g"][0], params["ln2_b"][0])
    return y, attn


if __name__ == "__main__":
    B, L, D, H, HID = 2, 8, 32, 4, 64
    d_k = D // H

    key = jax.random.PRNGKey(0)
    keys = jax.random.split(key, 12)
    params = {
        "wq": jax.random.normal(keys[0], (D, H * d_k), jnp.float32) * 0.1,
        "wk": jax.random.normal(keys[1], (D, H * d_k), jnp.float32) * 0.1,
        "wv": jax.random.normal(keys[2], (D, H * d_k), jnp.float32) * 0.1,
        "wfc": jax.random.normal(keys[3], (H * d_k, D), jnp.float32) * 0.1,
        "ln1_g": jnp.ones((1, D), jnp.float32),
        "ln1_b": jnp.zeros((1, D), jnp.float32),
        "w1": jax.random.normal(keys[4], (D, HID), jnp.float32) * 0.1,
        "b1": jax.random.normal(keys[5], (1, HID), jnp.float32) * 0.01,
        "w2": jax.random.normal(keys[6], (HID, D), jnp.float32) * 0.1,
        "b2": jax.random.normal(keys[7], (1, D), jnp.float32) * 0.01,
        "ln2_g": jnp.ones((1, D), jnp.float32),
        "ln2_b": jnp.zeros((1, D), jnp.float32),
    }

    q = jax.random.normal(keys[8], (B, L, D), jnp.float32)
    k = jax.random.normal(keys[9], (B, L, D), jnp.float32)
    v = jax.random.normal(keys[10], (B, L, D), jnp.float32)

    # --- Test 1: f32 MXU path, with a (causal) mask — tight tolerance. ---
    mask = jnp.broadcast_to(jnp.tril(jnp.ones((L, L), jnp.float32)), (B, L, L))
    out, attn = attention_block_kvcache(q, k, v, params, slf_attn_mask=mask,
                                        n_head=H, matmul_dtype=jnp.float32,
                                        attn_dtype=jnp.float32)
    out = jax.block_until_ready(out)
    attn = jax.block_until_ready(attn)
    ref_out, ref_attn = reference(q, k, v, params, H, mask=mask)
    assert jnp.allclose(out, ref_out, atol=5e-3, rtol=5e-3), "masked f32 output mismatch"
    assert jnp.allclose(attn, ref_attn, atol=2e-3, rtol=2e-3), "masked f32 attn mismatch"

    # --- Test 2: default bf16-MXU path (bf16 attn probs), no mask. ---
    out16, attn16 = attention_block_kvcache(q, k, v, params, slf_attn_mask=None,
                                            n_head=H)
    out16 = jax.block_until_ready(out16)
    attn16 = jax.block_until_ready(attn16)
    ref_out2, ref_attn2 = reference(q, k, v, params, H, mask=None)
    assert jnp.allclose(out16, ref_out2, atol=1e-1, rtol=1e-1), "bf16 output mismatch"
    assert jnp.allclose(attn16.astype(jnp.float32), ref_attn2,
                        atol=3e-2, rtol=3e-2), "bf16 attn mismatch"

    print("KERNEL_OK")
</pallas_src>

<mosaic_0001>
module attributes {stable_mosaic.version = 11 : i64} {
  func.func @kernel(%arg0: i32, %arg1: memref<1x8x32xf32, #tpu.memory_space<vmem>>, %arg2: memref<1x8x32xf32, #tpu.memory_space<vmem>>, %arg3: memref<1x8x32xf32, #tpu.memory_space<vmem>>, %arg4: memref<1x8x8xi8, #tpu.memory_space<vmem>>, %arg5: memref<32x32xf32, #tpu.memory_space<vmem>>, %arg6: memref<32x32xf32, #tpu.memory_space<vmem>>, %arg7: memref<32x32xf32, #tpu.memory_space<vmem>>, %arg8: memref<32x32xf32, #tpu.memory_space<vmem>>, %arg9: memref<1x32xf32, #tpu.memory_space<vmem>>, %arg10: memref<1x32xf32, #tpu.memory_space<vmem>>, %arg11: memref<32x64xf32, #tpu.memory_space<vmem>>, %arg12: memref<1x64xf32, #tpu.memory_space<vmem>>, %arg13: memref<64x32xf32, #tpu.memory_space<vmem>>, %arg14: memref<1x32xf32, #tpu.memory_space<vmem>>, %arg15: memref<1x32xf32, #tpu.memory_space<vmem>>, %arg16: memref<1x32xf32, #tpu.memory_space<vmem>>, %arg17: memref<1x8x32xf32, #tpu.memory_space<vmem>>, %arg18: memref<1x4x8x8xf32, #tpu.memory_space<vmem>>, %arg19: memref<1x8x32xf32, #tpu.memory_space<vmem>>) attributes {dimension_semantics = [#tpu.dimension_semantics<parallel>], iteration_bounds = array<i64: 2>, scalar_prefetch = 0 : i64, scratch_operands = 1 : i64, tpu.core_type = #tpu.core_type<tc>, window_params = [{transform_indices = @transform_0, window_bounds = array<i64: 1, 8, 32>}, {transform_indices = @transform_1, window_bounds = array<i64: 1, 8, 32>}, {transform_indices = @transform_2, window_bounds = array<i64: 1, 8, 32>}, {transform_indices = @transform_3, window_bounds = array<i64: 1, 8, 8>}, {pipeline_mode = #tpu.pipeline_mode<synchronous>, transform_indices = @transform_4, window_bounds = array<i64: 32, 32>}, {pipeline_mode = #tpu.pipeline_mode<synchronous>, transform_indices = @transform_5, window_bounds = array<i64: 32, 32>}, {pipeline_mode = #tpu.pipeline_mode<synchronous>, transform_indices = @transform_6, window_bounds = array<i64: 32, 32>}, {pipeline_mode = #tpu.pipeline_mode<synchronous>, transform_indices = @transform_7, window_bounds = array<i64: 32, 32>}, {pipeline_mode = #tpu.pipeline_mode<synchronous>, transform_indices = @transform_8, window_bounds = array<i64: 1, 32>}, {pipeline_mode = #tpu.pipeline_mode<synchronous>, transform_indices = @transform_9, window_bounds = array<i64: 1, 32>}, {pipeline_mode = #tpu.pipeline_mode<synchronous>, transform_indices = @transform_10, window_bounds = array<i64: 32, 64>}, {pipeline_mode = #tpu.pipeline_mode<synchronous>, transform_indices = @transform_11, window_bounds = array<i64: 1, 64>}, {pipeline_mode = #tpu.pipeline_mode<synchronous>, transform_indices = @transform_12, window_bounds = array<i64: 64, 32>}, {pipeline_mode = #tpu.pipeline_mode<synchronous>, transform_indices = @transform_13, window_bounds = array<i64: 1, 32>}, {pipeline_mode = #tpu.pipeline_mode<synchronous>, transform_indices = @transform_14, window_bounds = array<i64: 1, 32>}, {pipeline_mode = #tpu.pipeline_mode<synchronous>, transform_indices = @transform_15, window_bounds = array<i64: 1, 32>}, {transform_indices = @transform_16, window_bounds = array<i64: 1, 8, 32>}, {transform_indices = @transform_17, window_bounds = array<i64: 1, 4, 8, 8>}]} {
    %c0 = arith.constant 0 : index
    %c0_0 = arith.constant 0 : index
    %c0_1 = arith.constant 0 : index
    %0 = vector.load %arg1[%c0, %c0_0, %c0_1] : memref<1x8x32xf32, #tpu.memory_space<vmem>>, vector<1x8x32xf32>
    %1 = vector.shape_cast %0 : vector<1x8x32xf32> to vector<8x32xf32>
    %c0_2 = arith.constant 0 : index
    %c0_3 = arith.constant 0 : index
    %c0_4 = arith.constant 0 : index
    %2 = vector.load %arg2[%c0_2, %c0_3, %c0_4] : memref<1x8x32xf32, #tpu.memory_space<vmem>>, vector<1x8x32xf32>
    %3 = vector.shape_cast %2 : vector<1x8x32xf32> to vector<8x32xf32>
    %c0_5 = arith.constant 0 : index
    %c0_6 = arith.constant 0 : index
    %c0_7 = arith.constant 0 : index
    %4 = vector.load %arg3[%c0_5, %c0_6, %c0_7] : memref<1x8x32xf32, #tpu.memory_space<vmem>>, vector<1x8x32xf32>
    %5 = vector.shape_cast %4 : vector<1x8x32xf32> to vector<8x32xf32>
    %c0_8 = arith.constant 0 : index
    %c0_9 = arith.constant 0 : index
    %6 = vector.load %arg5[%c0_8, %c0_9] : memref<32x32xf32, #tpu.memory_space<vmem>>, vector<32x32xf32>
    %cst = arith.constant dense<0.000000e+00> : vector<8x32xf32>
    %7 = tpu.matmul %1, %6, %cst {dimension_numbers = #tpu.dot_dimension_numbers<[1], [0], [0], [1], [0, 0, 1, 1], [], []>} : vector<8x32xf32>, vector<32x32xf32>, vector<8x32xf32> -> vector<8x32xf32>
    %c0_10 = arith.constant 0 : index
    %c0_11 = arith.constant 0 : index
    %8 = vector.load %arg6[%c0_10, %c0_11] : memref<32x32xf32, #tpu.memory_space<vmem>>, vector<32x32xf32>
    %cst_12 = arith.constant dense<0.000000e+00> : vector<8x32xf32>
    %9 = tpu.matmul %3, %8, %cst_12 {dimension_numbers = #tpu.dot_dimension_numbers<[1], [0], [0], [1], [0, 0, 1, 1], [], []>} : vector<8x32xf32>, vector<32x32xf32>, vector<8x32xf32> -> vector<8x32xf32>
    %c0_13 = arith.constant 0 : index
    %c0_14 = arith.constant 0 : index
    %10 = vector.load %arg7[%c0_13, %c0_14] : memref<32x32xf32, #tpu.memory_space<vmem>>, vector<32x32xf32>
    %cst_15 = arith.constant dense<0.000000e+00> : vector<8x32xf32>
    %11 = tpu.matmul %5, %10, %cst_15 {dimension_numbers = #tpu.dot_dimension_numbers<[1], [0], [0], [1], [0, 0, 1, 1], [], []>} : vector<8x32xf32>, vector<32x32xf32>, vector<8x32xf32> -> vector<8x32xf32>
    %12 = vector.shape_cast %7 : vector<8x32xf32> to vector<1x8x32xf32>
    %13 = vector.shape_cast %9 : vector<8x32xf32> to vector<1x8x32xf32>
    %14 = vector.shape_cast %11 : vector<8x32xf32> to vector<1x8x32xf32>
    %c0_16 = arith.constant 0 : index
    %c0_17 = arith.constant 0 : index
    %c0_18 = arith.constant 0 : index
    %15 = vector.load %arg4[%c0_16, %c0_17, %c0_18] : memref<1x8x8xi8, #tpu.memory_space<vmem>>, vector<1x8x8xi8>
    %c0_i8 = arith.constant 0 : i8
    %16 = vector.broadcast %c0_i8 : i8 to vector<1x8x8xi8>
    %17 = arith.cmpi ne, %15, %16 : vector<1x8x8xi8>
    %18 = vector.extract_strided_slice %12 {offsets = [0, 0, 0], sizes = [1, 8, 8], strides = [1, 1, 1]} : vector<1x8x32xf32> to vector<1x8x8xf32>
    %19 = vector.extract_strided_slice %13 {offsets = [0, 0, 0], sizes = [1, 8, 8], strides = [1, 1, 1]} : vector<1x8x32xf32> to vector<1x8x8xf32>
    %20 = vector.extract_strided_slice %14 {offsets = [0, 0, 0], sizes = [1, 8, 8], strides = [1, 1, 1]} : vector<1x8x32xf32> to vector<1x8x8xf32>
    %cst_19 = arith.constant dense<0.000000e+00> : vector<1x8x8xf32>
    %21 = tpu.matmul %18, %19, %cst_19 {dimension_numbers = #tpu.dot_dimension_numbers<[2], [2], [1], [1], [0, 0, 0, 1, 1, 1], [0], [0]>} : vector<1x8x8xf32>, vector<1x8x8xf32>, vector<1x8x8xf32> -> vector<1x8x8xf32>
    %cst_20 = arith.constant -1.000000e+09 : f32
    %22 = vector.broadcast %cst_20 : f32 to vector<1x8x8xf32>
    %23 = arith.select %17, %21, %22 : vector<1x8x8xi1>, vector<1x8x8xf32>
    %cst_21 = arith.constant dense<0xFF800000> : vector<1x8xf32>
    %24 = vector.multi_reduction <maximumf>, %23, %cst_21 [2] : vector<1x8x8xf32> to vector<1x8xf32>
    %25 = vector.shape_cast %24 : vector<1x8xf32> to vector<1x8x1xf32>
    %26 = vector.broadcast %25 : vector<1x8x1xf32> to vector<1x8x8xf32>
    %27 = arith.subf %23, %26 : vector<1x8x8xf32>
    %28 = math.exp %27 : vector<1x8x8xf32>
    %cst_22 = arith.constant dense<0.000000e+00> : vector<1x8xf32>
    %29 = vector.multi_reduction <add>, %28, %cst_22 [2] : vector<1x8x8xf32> to vector<1x8xf32>
    %30 = vector.shape_cast %29 : vector<1x8xf32> to vector<1x8x1xf32>
    %cst_23 = arith.constant 1.000000e+00 : f32
    %31 = vector.broadcast %cst_23 : f32 to vector<1x8x1xf32>
    %32 = arith.divf %31, %30 : vector<1x8x1xf32>
    %33 = vector.broadcast %32 : vector<1x8x1xf32> to vector<1x8x8xf32>
    %34 = arith.mulf %28, %33 : vector<1x8x8xf32>
    %c0_24 = arith.constant 0 : index
    %c0_25 = arith.constant 0 : index
    %c0_26 = arith.constant 0 : index
    %c0_27 = arith.constant 0 : index
    %35 = vector.load %arg18[%c0_24, %c0_25, %c0_26, %c0_27] : memref<1x4x8x8xf32, #tpu.memory_space<vmem>>, vector<1x1x8x8xf32>
    %36 = vector.shape_cast %35 : vector<1x1x8x8xf32> to vector<1x8x8xf32>
    %37 = vector.shape_cast %34 : vector<1x8x8xf32> to vector<1x1x8x8xf32>
    tpu.vector_store %arg18[%c0_24, %c0_25, %c0_26, %c0_27], %37 {strides = array<i32>} : memref<1x4x8x8xf32, #tpu.memory_space<vmem>>, vector<1x1x8x8xf32>,
    %cst_28 = arith.constant dense<0.000000e+00> : vector<1x8x8xf32>
    %38 = tpu.matmul %34, %20, %cst_28 {dimension_numbers = #tpu.dot_dimension_numbers<[2], [1], [1], [2], [0, 0, 0, 1, 1, 2], [0], [0]>} : vector<1x8x8xf32>, vector<1x8x8xf32>, vector<1x8x8xf32> -> vector<1x8x8xf32>
    %c0_29 = arith.constant 0 : index
    %c0_30 = arith.constant 0 : index
    %c0_31 = arith.constant 0 : index
    %39 = vector.load %arg19[%c0_29, %c0_30, %c0_31] : memref<1x8x32xf32, #tpu.memory_space<vmem>>, vector<1x8x8xf32>
    tpu.vector_store %arg19[%c0_29, %c0_30, %c0_31], %38 {strides = array<i32>} : memref<1x8x32xf32, #tpu.memory_space<vmem>>, vector<1x8x8xf32>,
    %40 = vector.extract_strided_slice %12 {offsets = [0, 0, 8], sizes = [1, 8, 8], strides = [1, 1, 1]} : vector<1x8x32xf32> to vector<1x8x8xf32>
    %41 = vector.extract_strided_slice %13 {offsets = [0, 0, 8], sizes = [1, 8, 8], strides = [1, 1, 1]} : vector<1x8x32xf32> to vector<1x8x8xf32>
    %42 = vector.extract_strided_slice %14 {offsets = [0, 0, 8], sizes = [1, 8, 8], strides = [1, 1, 1]} : vector<1x8x32xf32> to vector<1x8x8xf32>
    %cst_32 = arith.constant dense<0.000000e+00> : vector<1x8x8xf32>
    %43 = tpu.matmul %40, %41, %cst_32 {dimension_numbers = #tpu.dot_dimension_numbers<[2], [2], [1], [1], [0, 0, 0, 1, 1, 1], [0], [0]>} : vector<1x8x8xf32>, vector<1x8x8xf32>, vector<1x8x8xf32> -> vector<1x8x8xf32>
    %cst_33 = arith.constant -1.000000e+09 : f32
    %44 = vector.broadcast %cst_33 : f32 to vector<1x8x8xf32>
    %45 = arith.select %17, %43, %44 : vector<1x8x8xi1>, vector<1x8x8xf32>
    %cst_34 = arith.constant dense<0xFF800000> : vector<1x8xf32>
    %46 = vector.multi_reduction <maximumf>, %45, %cst_34 [2] : vector<1x8x8xf32> to vector<1x8xf32>
    %47 = vector.shape_cast %46 : vector<1x8xf32> to vector<1x8x1xf32>
    %48 = vector.broadcast %47 : vector<1x8x1xf32> to vector<1x8x8xf32>
    %49 = arith.subf %45, %48 : vector<1x8x8xf32>
    %50 = math.exp %49 : vector<1x8x8xf32>
    %cst_35 = arith.constant dense<0.000000e+00> : vector<1x8xf32>
    %51 = vector.multi_reduction <add>, %50, %cst_35 [2] : vector<1x8x8xf32> to vector<1x8xf32>
    %52 = vector.shape_cast %51 : vector<1x8xf32> to vector<1x8x1xf32>
    %cst_36 = arith.constant 1.000000e+00 : f32
    %53 = vector.broadcast %cst_36 : f32 to vector<1x8x1xf32>
    %54 = arith.divf %53, %52 : vector<1x8x1xf32>
    %55 = vector.broadcast %54 : vector<1x8x1xf32> to vector<1x8x8xf32>
    %56 = arith.mulf %50, %55 : vector<1x8x8xf32>
    %c0_37 = arith.constant 0 : index
    %c1 = arith.constant 1 : index
    %c0_38 = arith.constant 0 : index
    %c0_39 = arith.constant 0 : index
    %57 = vector.load %arg18[%c0_37, %c1, %c0_38, %c0_39] : memref<1x4x8x8xf32, #tpu.memory_space<vmem>>, vector<1x1x8x8xf32>
    %58 = vector.shape_cast %57 : vector<1x1x8x8xf32> to vector<1x8x8xf32>
    %59 = vector.shape_cast %56 : vector<1x8x8xf32> to vector<1x1x8x8xf32>
    tpu.vector_store %arg18[%c0_37, %c1, %c0_38, %c0_39], %59 {strides = array<i32>} : memref<1x4x8x8xf32, #tpu.memory_space<vmem>>, vector<1x1x8x8xf32>,
    %cst_40 = arith.constant dense<0.000000e+00> : vector<1x8x8xf32>
    %60 = tpu.matmul %56, %42, %cst_40 {dimension_numbers = #tpu.dot_dimension_numbers<[2], [1], [1], [2], [0, 0, 0, 1, 1, 2], [0], [0]>} : vector<1x8x8xf32>, vector<1x8x8xf32>, vector<1x8x8xf32> -> vector<1x8x8xf32>
    %c0_41 = arith.constant 0 : index
    %c0_42 = arith.constant 0 : index
    %c8 = arith.constant 8 : index
    %61 = vector.load %arg19[%c0_41, %c0_42, %c8] : memref<1x8x32xf32, #tpu.memory_space<vmem>>, vector<1x8x8xf32>
    tpu.vector_store %arg19[%c0_41, %c0_42, %c8], %60 {strides = array<i32>} : memref<1x8x32xf32, #tpu.memory_space<vmem>>, vector<1x8x8xf32>,
    %62 = vector.extract_strided_slice %12 {offsets = [0, 0, 16], sizes = [1, 8, 8], strides = [1, 1, 1]} : vector<1x8x32xf32> to vector<1x8x8xf32>
    %63 = vector.extract_strided_slice %13 {offsets = [0, 0, 16], sizes = [1, 8, 8], strides = [1, 1, 1]} : vector<1x8x32xf32> to vector<1x8x8xf32>
    %64 = vector.extract_strided_slice %14 {offsets = [0, 0, 16], sizes = [1, 8, 8], strides = [1, 1, 1]} : vector<1x8x32xf32> to vector<1x8x8xf32>
    %cst_43 = arith.constant dense<0.000000e+00> : vector<1x8x8xf32>
    %65 = tpu.matmul %62, %63, %cst_43 {dimension_numbers = #tpu.dot_dimension_numbers<[2], [2], [1], [1], [0, 0, 0, 1, 1, 1], [0], [0]>} : vector<1x8x8xf32>, vector<1x8x8xf32>, vector<1x8x8xf32> -> vector<1x8x8xf32>
    %cst_44 = arith.constant -1.000000e+09 : f32
    %66 = vector.broadcast %cst_44 : f32 to vector<1x8x8xf32>
    %67 = arith.select %17, %65, %66 : vector<1x8x8xi1>, vector<1x8x8xf32>
    %cst_45 = arith.constant dense<0xFF800000> : vector<1x8xf32>
    %68 = vector.multi_reduction <maximumf>, %67, %cst_45 [2] : vector<1x8x8xf32> to vector<1x8xf32>
    %69 = vector.shape_cast %68 : vector<1x8xf32> to vector<1x8x1xf32>
    %70 = vector.broadcast %69 : vector<1x8x1xf32> to vector<1x8x8xf32>
    %71 = arith.subf %67, %70 : vector<1x8x8xf32>
    %72 = math.exp %71 : vector<1x8x8xf32>
    %cst_46 = arith.constant dense<0.000000e+00> : vector<1x8xf32>
    %73 = vector.multi_reduction <add>, %72, %cst_46 [2] : vector<1x8x8xf32> to vector<1x8xf32>
    %74 = vector.shape_cast %73 : vector<1x8xf32> to vector<1x8x1xf32>
    %cst_47 = arith.constant 1.000000e+00 : f32
    %75 = vector.broadcast %cst_47 : f32 to vector<1x8x1xf32>
    %76 = arith.divf %75, %74 : vector<1x8x1xf32>
    %77 = vector.broadcast %76 : vector<1x8x1xf32> to vector<1x8x8xf32>
    %78 = arith.mulf %72, %77 : vector<1x8x8xf32>
    %c0_48 = arith.constant 0 : index
    %c2 = arith.constant 2 : index
    %c0_49 = arith.constant 0 : index
    %c0_50 = arith.constant 0 : index
    %79 = vector.load %arg18[%c0_48, %c2, %c0_49, %c0_50] : memref<1x4x8x8xf32, #tpu.memory_space<vmem>>, vector<1x1x8x8xf32>
    %80 = vector.shape_cast %79 : vector<1x1x8x8xf32> to vector<1x8x8xf32>
    %81 = vector.shape_cast %78 : vector<1x8x8xf32> to vector<1x1x8x8xf32>
    tpu.vector_store %arg18[%c0_48, %c2, %c0_49, %c0_50], %81 {strides = array<i32>} : memref<1x4x8x8xf32, #tpu.memory_space<vmem>>, vector<1x1x8x8xf32>,
    %cst_51 = arith.constant dense<0.000000e+00> : vector<1x8x8xf32>
    %82 = tpu.matmul %78, %64, %cst_51 {dimension_numbers = #tpu.dot_dimension_numbers<[2], [1], [1], [2], [0, 0, 0, 1, 1, 2], [0], [0]>} : vector<1x8x8xf32>, vector<1x8x8xf32>, vector<1x8x8xf32> -> vector<1x8x8xf32>
    %c0_52 = arith.constant 0 : index
    %c0_53 = arith.constant 0 : index
    %c16 = arith.constant 16 : index
    %83 = vector.load %arg19[%c0_52, %c0_53, %c16] : memref<1x8x32xf32, #tpu.memory_space<vmem>>, vector<1x8x8xf32>
    tpu.vector_store %arg19[%c0_52, %c0_53, %c16], %82 {strides = array<i32>} : memref<1x8x32xf32, #tpu.memory_space<vmem>>, vector<1x8x8xf32>,
    %84 = vector.extract_strided_slice %12 {offsets = [0, 0, 24], sizes = [1, 8, 8], strides = [1, 1, 1]} : vector<1x8x32xf32> to vector<1x8x8xf32>
    %85 = vector.extract_strided_slice %13 {offsets = [0, 0, 24], sizes = [1, 8, 8], strides = [1, 1, 1]} : vector<1x8x32xf32> to vector<1x8x8xf32>
    %86 = vector.extract_strided_slice %14 {offsets = [0, 0, 24], sizes = [1, 8, 8], strides = [1, 1, 1]} : vector<1x8x32xf32> to vector<1x8x8xf32>
    %cst_54 = arith.constant dense<0.000000e+00> : vector<1x8x8xf32>
    %87 = tpu.matmul %84, %85, %cst_54 {dimension_numbers = #tpu.dot_dimension_numbers<[2], [2], [1], [1], [0, 0, 0, 1, 1, 1], [0], [0]>} : vector<1x8x8xf32>, vector<1x8x8xf32>, vector<1x8x8xf32> -> vector<1x8x8xf32>
    %cst_55 = arith.constant -1.000000e+09 : f32
    %88 = vector.broadcast %cst_55 : f32 to vector<1x8x8xf32>
    %89 = arith.select %17, %87, %88 : vector<1x8x8xi1>, vector<1x8x8xf32>
    %cst_56 = arith.constant dense<0xFF800000> : vector<1x8xf32>
    %90 = vector.multi_reduction <maximumf>, %89, %cst_56 [2] : vector<1x8x8xf32> to vector<1x8xf32>
    %91 = vector.shape_cast %90 : vector<1x8xf32> to vector<1x8x1xf32>
    %92 = vector.broadcast %91 : vector<1x8x1xf32> to vector<1x8x8xf32>
    %93 = arith.subf %89, %92 : vector<1x8x8xf32>
    %94 = math.exp %93 : vector<1x8x8xf32>
    %cst_57 = arith.constant dense<0.000000e+00> : vector<1x8xf32>
    %95 = vector.multi_reduction <add>, %94, %cst_57 [2] : vector<1x8x8xf32> to vector<1x8xf32>
    %96 = vector.shape_cast %95 : vector<1x8xf32> to vector<1x8x1xf32>
    %cst_58 = arith.constant 1.000000e+00 : f32
    %97 = vector.broadcast %cst_58 : f32 to vector<1x8x1xf32>
    %98 = arith.divf %97, %96 : vector<1x8x1xf32>
    %99 = vector.broadcast %98 : vector<1x8x1xf32> to vector<1x8x8xf32>
    %100 = arith.mulf %94, %99 : vector<1x8x8xf32>
    %c0_59 = arith.constant 0 : index
    %c3 = arith.constant 3 : index
    %c0_60 = arith.constant 0 : index
    %c0_61 = arith.constant 0 : index
    %101 = vector.load %arg18[%c0_59, %c3, %c0_60, %c0_61] : memref<1x4x8x8xf32, #tpu.memory_space<vmem>>, vector<1x1x8x8xf32>
    %102 = vector.shape_cast %101 : vector<1x1x8x8xf32> to vector<1x8x8xf32>
    %103 = vector.shape_cast %100 : vector<1x8x8xf32> to vector<1x1x8x8xf32>
    tpu.vector_store %arg18[%c0_59, %c3, %c0_60, %c0_61], %103 {strides = array<i32>} : memref<1x4x8x8xf32, #tpu.memory_space<vmem>>, vector<1x1x8x8xf32>,
    %cst_62 = arith.constant dense<0.000000e+00> : vector<1x8x8xf32>
    %104 = tpu.matmul %100, %86, %cst_62 {dimension_numbers = #tpu.dot_dimension_numbers<[2], [1], [1], [2], [0, 0, 0, 1, 1, 2], [0], [0]>} : vector<1x8x8xf32>, vector<1x8x8xf32>, vector<1x8x8xf32> -> vector<1x8x8xf32>
    %c0_63 = arith.constant 0 : index
    %c0_64 = arith.constant 0 : index
    %c24 = arith.constant 24 : index
    %105 = vector.load %arg19[%c0_63, %c0_64, %c24] : memref<1x8x32xf32, #tpu.memory_space<vmem>>, vector<1x8x8xf32>
    tpu.vector_store %arg19[%c0_63, %c0_64, %c24], %104 {strides = array<i32>} : memref<1x8x32xf32, #tpu.memory_space<vmem>>, vector<1x8x8xf32>,
    %c0_65 = arith.constant 0 : index
    %c0_66 = arith.constant 0 : index
    %c0_67 = arith.constant 0 : index
    %106 = vector.load %arg19[%c0_65, %c0_66, %c0_67] : memref<1x8x32xf32, #tpu.memory_space<vmem>>, vector<1x8x32xf32>
    %107 = vector.shape_cast %106 : vector<1x8x32xf32> to vector<8x32xf32>
    %c0_68 = arith.constant 0 : index
    %c0_69 = arith.constant 0 : index
    %108 = vector.load %arg8[%c0_68, %c0_69] : memref<32x32xf32, #tpu.memory_space<vmem>>, vector<32x32xf32>
    %cst_70 = arith.constant dense<0.000000e+00> : vector<8x32xf32>
    %109 = tpu.matmul %107, %108, %cst_70 {dimension_numbers = #tpu.dot_dimension_numbers<[1], [0], [0], [1], [0, 0, 1, 1], [], []>} : vector<8x32xf32>, vector<32x32xf32>, vector<8x32xf32> -> vector<8x32xf32>
    %110 = arith.addf %109, %1 : vector<8x32xf32>
    %c0_71 = arith.constant 0 : index
    %c0_72 = arith.constant 0 : index
    %111 = vector.load %arg9[%c0_71, %c0_72] : memref<1x32xf32, #tpu.memory_space<vmem>>, vector<1x32xf32>
    %c0_73 = arith.constant 0 : index
    %c0_74 = arith.constant 0 : index
    %112 = vector.load %arg10[%c0_73, %c0_74] : memref<1x32xf32, #tpu.memory_space<vmem>>, vector<1x32xf32>
    %cst_75 = arith.constant dense<0.000000e+00> : vector<8xf32>
    %113 = vector.multi_reduction <add>, %110, %cst_75 [1] : vector<8x32xf32> to vector<8xf32>
    %114 = vector.shape_cast %113 : vector<8xf32> to vector<8x1xf32>
    %cst_76 = arith.constant 3.200000e+01 : f32
    %115 = vector.broadcast %cst_76 : f32 to vector<8x1xf32>
    %116 = arith.divf %114, %115 : vector<8x1xf32>
    %117 = vector.broadcast %116 : vector<8x1xf32> to vector<8x32xf32>
    %118 = arith.subf %110, %117 : vector<8x32xf32>
    %119 = arith.mulf %118, %118 : vector<8x32xf32>
    %cst_77 = arith.constant dense<0.000000e+00> : vector<8xf32>
    %120 = vector.multi_reduction <add>, %119, %cst_77 [1] : vector<8x32xf32> to vector<8xf32>
    %121 = vector.shape_cast %120 : vector<8xf32> to vector<8x1xf32>
    %cst_78 = arith.constant 3.200000e+01 : f32
    %122 = vector.broadcast %cst_78 : f32 to vector<8x1xf32>
    %123 = arith.divf %121, %122 : vector<8x1xf32>
    %124 = vector.broadcast %116 : vector<8x1xf32> to vector<8x32xf32>
    %125 = arith.subf %110, %124 : vector<8x32xf32>
    %cst_79 = arith.constant 9.99999997E-7 : f32
    %126 = vector.broadcast %cst_79 : f32 to vector<8x1xf32>
    %127 = arith.addf %123, %126 : vector<8x1xf32>
    %128 = math.rsqrt %127 : vector<8x1xf32>
    %129 = vector.broadcast %128 : vector<8x1xf32> to vector<8x32xf32>
    %130 = arith.mulf %125, %129 : vector<8x32xf32>
    %131 = vector.broadcast %111 : vector<1x32xf32> to vector<8x32xf32>
    %132 = arith.mulf %130, %131 : vector<8x32xf32>
    %133 = vector.broadcast %112 : vector<1x32xf32> to vector<8x32xf32>
    %134 = arith.addf %132, %133 : vector<8x32xf32>
    %c0_80 = arith.constant 0 : index
    %c0_81 = arith.constant 0 : index
    %135 = vector.load %arg11[%c0_80, %c0_81] : memref<32x64xf32, #tpu.memory_space<vmem>>, vector<32x64xf32>
    %cst_82 = arith.constant dense<0.000000e+00> : vector<8x64xf32>
    %136 = tpu.matmul %134, %135, %cst_82 {dimension_numbers = #tpu.dot_dimension_numbers<[1], [0], [0], [1], [0, 0, 1, 1], [], []>} : vector<8x32xf32>, vector<32x64xf32>, vector<8x64xf32> -> vector<8x64xf32>
    %c0_83 = arith.constant 0 : index
    %c0_84 = arith.constant 0 : index
    %137 = vector.load %arg12[%c0_83, %c0_84] : memref<1x64xf32, #tpu.memory_space<vmem>>, vector<1x64xf32>
    %138 = vector.broadcast %137 : vector<1x64xf32> to vector<8x64xf32>
    %139 = arith.addf %136, %138 : vector<8x64xf32>
    %cst_85 = arith.constant 0.000000e+00 : f32
    %140 = vector.broadcast %cst_85 : f32 to vector<8x64xf32>
    %141 = arith.maximumf %139, %140 : vector<8x64xf32>
    %c0_86 = arith.constant 0 : index
    %c0_87 = arith.constant 0 : index
    %142 = vector.load %arg13[%c0_86, %c0_87] : memref<64x32xf32, #tpu.memory_space<vmem>>, vector<64x32xf32>
    %cst_88 = arith.constant dense<0.000000e+00> : vector<8x32xf32>
    %143 = tpu.matmul %141, %142, %cst_88 {dimension_numbers = #tpu.dot_dimension_numbers<[1], [0], [0], [1], [0, 0, 1, 1], [], []>} : vector<8x64xf32>, vector<64x32xf32>, vector<8x32xf32> -> vector<8x32xf32>
    %c0_89 = arith.constant 0 : index
    %c0_90 = arith.constant 0 : index
    %144 = vector.load %arg14[%c0_89, %c0_90] : memref<1x32xf32, #tpu.memory_space<vmem>>, vector<1x32xf32>
    %145 = vector.broadcast %144 : vector<1x32xf32> to vector<8x32xf32>
    %146 = arith.addf %143, %145 : vector<8x32xf32>
    %147 = arith.addf %146, %134 : vector<8x32xf32>
    %c0_91 = arith.constant 0 : index
    %c0_92 = arith.constant 0 : index
    %148 = vector.load %arg15[%c0_91, %c0_92] : memref<1x32xf32, #tpu.memory_space<vmem>>, vector<1x32xf32>
    %c0_93 = arith.constant 0 : index
    %c0_94 = arith.constant 0 : index
    %149 = vector.load %arg16[%c0_93, %c0_94] : memref<1x32xf32, #tpu.memory_space<vmem>>, vector<1x32xf32>
    %cst_95 = arith.constant dense<0.000000e+00> : vector<8xf32>
    %150 = vector.multi_reduction <add>, %147, %cst_95 [1] : vector<8x32xf32> to vector<8xf32>
    %151 = vector.shape_cast %150 : vector<8xf32> to vector<8x1xf32>
    %cst_96 = arith.constant 3.200000e+01 : f32
    %152 = vector.broadcast %cst_96 : f32 to vector<8x1xf32>
    %153 = arith.divf %151, %152 : vector<8x1xf32>
    %154 = vector.broadcast %153 : vector<8x1xf32> to vector<8x32xf32>
    %155 = arith.subf %147, %154 : vector<8x32xf32>
    %156 = arith.mulf %155, %155 : vector<8x32xf32>
    %cst_97 = arith.constant dense<0.000000e+00> : vector<8xf32>
    %157 = vector.multi_reduction <add>, %156, %cst_97 [1] : vector<8x32xf32> to vector<8xf32>
    %158 = vector.shape_cast %157 : vector<8xf32> to vector<8x1xf32>
    %cst_98 = arith.constant 3.200000e+01 : f32
    %159 = vector.broadcast %cst_98 : f32 to vector<8x1xf32>
    %160 = arith.divf %158, %159 : vector<8x1xf32>
    %161 = vector.broadcast %153 : vector<8x1xf32> to vector<8x32xf32>
    %162 = arith.subf %147, %161 : vector<8x32xf32>
    %cst_99 = arith.constant 9.99999997E-7 : f32
    %163 = vector.broadcast %cst_99 : f32 to vector<8x1xf32>
    %164 = arith.addf %160, %163 : vector<8x1xf32>
    %165 = math.rsqrt %164 : vector<8x1xf32>
    %166 = vector.broadcast %165 : vector<8x1xf32> to vector<8x32xf32>
    %167 = arith.mulf %162, %166 : vector<8x32xf32>
    %168 = vector.broadcast %148 : vector<1x32xf32> to vector<8x32xf32>
    %169 = arith.mulf %167, %168 : vector<8x32xf32>
    %170 = vector.broadcast %149 : vector<1x32xf32> to vector<8x32xf32>
    %171 = arith.addf %169, %170 : vector<8x32xf32>
    %172 = vector.shape_cast %171 : vector<8x32xf32> to vector<1x8x32xf32>
    %c0_100 = arith.constant 0 : index
    %c0_101 = arith.constant 0 : index
    %c0_102 = arith.constant 0 : index
    %173 = vector.load %arg17[%c0_100, %c0_101, %c0_102] : memref<1x8x32xf32, #tpu.memory_space<vmem>>, vector<1x8x32xf32>
    tpu.vector_store %arg17[%c0_100, %c0_101, %c0_102], %172 {strides = array<i32>} : memref<1x8x32xf32, #tpu.memory_space<vmem>>, vector<1x8x32xf32>,
    return
  }
  func.func @transform_0(%arg0: i32) -> (i32, i32, i32) {
    %c0_i32 = arith.constant 0 : i32
    %c0_i32_0 = arith.constant 0 : i32
    %c0_i32_1 = arith.constant 0 : i32
    return %arg0, %c0_i32, %c0_i32_0 : i32, i32, i32
  }
  func.func @transform_1(%arg0: i32) -> (i32, i32, i32) {
    %c0_i32 = arith.constant 0 : i32
    %c0_i32_0 = arith.constant 0 : i32
    %c0_i32_1 = arith.constant 0 : i32
    return %arg0, %c0_i32, %c0_i32_0 : i32, i32, i32
  }
  func.func @transform_2(%arg0: i32) -> (i32, i32, i32) {
    %c0_i32 = arith.constant 0 : i32
    %c0_i32_0 = arith.constant 0 : i32
    %c0_i32_1 = arith.constant 0 : i32
    return %arg0, %c0_i32, %c0_i32_0 : i32, i32, i32
  }
  func.func @transform_3(%arg0: i32) -> (i32, i32, i32) {
    %c0_i32 = arith.constant 0 : i32
    %c0_i32_0 = arith.constant 0 : i32
    %c0_i32_1 = arith.constant 0 : i32
    return %arg0, %c0_i32, %c0_i32_0 : i32, i32, i32
  }
  func.func @transform_4(%arg0: i32) -> (i32, i32) {
    %c0_i32 = arith.constant 0 : i32
    %c0_i32_0 = arith.constant 0 : i32
    %c0_i32_1 = arith.constant 0 : i32
    return %c0_i32, %c0_i32_0 : i32, i32
  }
  func.func @transform_5(%arg0: i32) -> (i32, i32) {
    %c0_i32 = arith.constant 0 : i32
    %c0_i32_0 = arith.constant 0 : i32
    %c0_i32_1 = arith.constant 0 : i32
    return %c0_i32, %c0_i32_0 : i32, i32
  }
  func.func @transform_6(%arg0: i32) -> (i32, i32) {
    %c0_i32 = arith.constant 0 : i32
    %c0_i32_0 = arith.constant 0 : i32
    %c0_i32_1 = arith.constant 0 : i32
    return %c0_i32, %c0_i32_0 : i32, i32
  }
  func.func @transform_7(%arg0: i32) -> (i32, i32) {
    %c0_i32 = arith.constant 0 : i32
    %c0_i32_0 = arith.constant 0 : i32
    %c0_i32_1 = arith.constant 0 : i32
    return %c0_i32, %c0_i32_0 : i32, i32
  }
  func.func @transform_8(%arg0: i32) -> (i32, i32) {
    %c0_i32 = arith.constant 0 : i32
    %c0_i32_0 = arith.constant 0 : i32
    %c0_i32_1 = arith.constant 0 : i32
    return %c0_i32, %c0_i32_0 : i32, i32
  }
  func.func @transform_9(%arg0: i32) -> (i32, i32) {
    %c0_i32 = arith.constant 0 : i32
    %c0_i32_0 = arith.constant 0 : i32
    %c0_i32_1 = arith.constant 0 : i32
    return %c0_i32, %c0_i32_0 : i32, i32
  }
  func.func @transform_10(%arg0: i32) -> (i32, i32) {
    %c0_i32 = arith.constant 0 : i32
    %c0_i32_0 = arith.constant 0 : i32
    %c0_i32_1 = arith.constant 0 : i32
    return %c0_i32, %c0_i32_0 : i32, i32
  }
  func.func @transform_11(%arg0: i32) -> (i32, i32) {
    %c0_i32 = arith.constant 0 : i32
    %c0_i32_0 = arith.constant 0 : i32
    %c0_i32_1 = arith.constant 0 : i32
    return %c0_i32, %c0_i32_0 : i32, i32
  }
  func.func @transform_12(%arg0: i32) -> (i32, i32) {
    %c0_i32 = arith.constant 0 : i32
    %c0_i32_0 = arith.constant 0 : i32
    %c0_i32_1 = arith.constant 0 : i32
    return %c0_i32, %c0_i32_0 : i32, i32
  }
  func.func @transform_13(%arg0: i32) -> (i32, i32) {
    %c0_i32 = arith.constant 0 : i32
    %c0_i32_0 = arith.constant 0 : i32
    %c0_i32_1 = arith.constant 0 : i32
    return %c0_i32, %c0_i32_0 : i32, i32
  }
  func.func @transform_14(%arg0: i32) -> (i32, i32) {
    %c0_i32 = arith.constant 0 : i32
    %c0_i32_0 = arith.constant 0 : i32
    %c0_i32_1 = arith.constant 0 : i32
    return %c0_i32, %c0_i32_0 : i32, i32
  }
  func.func @transform_15(%arg0: i32) -> (i32, i32) {
    %c0_i32 = arith.constant 0 : i32
    %c0_i32_0 = arith.constant 0 : i32
    %c0_i32_1 = arith.constant 0 : i32
    return %c0_i32, %c0_i32_0 : i32, i32
  }
  func.func @transform_16(%arg0: i32) -> (i32, i32, i32) {
    %c0_i32 = arith.constant 0 : i32
    %c0_i32_0 = arith.constant 0 : i32
    %c0_i32_1 = arith.constant 0 : i32
    return %arg0, %c0_i32, %c0_i32_0 : i32, i32, i32
  }
  func.func @transform_17(%arg0: i32) -> (i32, i32, i32, i32) {
    %c0_i32 = arith.constant 0 : i32
    %c0_i32_0 = arith.constant 0 : i32
    %c0_i32_1 = arith.constant 0 : i32
    %c0_i32_2 = arith.constant 0 : i32
    return %arg0, %c0_i32, %c0_i32_0, %c0_i32_1 : i32, i32, i32, i32
  }
}

module attributes {stable_mosaic.version = 11 : i64} {
  func.func @kernel(%arg0: i32, %arg1: memref<1x8x32xf32, #tpu.memory_space<vmem>>, %arg2: memref<1x8x32xf32, #tpu.memory_space<vmem>>, %arg3: memref<1x8x32xf32, #tpu.memory_space<vmem>>, %arg4: memref<1x8x8xi8, #tpu.memory_space<vmem>>, %arg5: memref<32x32xf32, #tpu.memory_space<vmem>>, %arg6: memref<32x32xf32, #tpu.memory_space<vmem>>, %arg7: memref<32x32xf32, #tpu.memory_space<vmem>>, %arg8: memref<32x32xf32, #tpu.memory_space<vmem>>, %arg9: memref<1x32xf32, #tpu.memory_space<vmem>>, %arg10: memref<1x32xf32, #tpu.memory_space<vmem>>, %arg11: memref<32x64xf32, #tpu.memory_space<vmem>>, %arg12: memref<1x64xf32, #tpu.memory_space<vmem>>, %arg13: memref<64x32xf32, #tpu.memory_space<vmem>>, %arg14: memref<1x32xf32, #tpu.memory_space<vmem>>, %arg15: memref<1x32xf32, #tpu.memory_space<vmem>>, %arg16: memref<1x32xf32, #tpu.memory_space<vmem>>, %arg17: memref<1x8x32xf32, #tpu.memory_space<vmem>>, %arg18: memref<1x4x8x8xf32, #tpu.memory_space<vmem>>, %arg19: memref<1x8x32xf32, #tpu.memory_space<vmem>>) attributes {dimension_semantics = [#tpu.dimension_semantics<parallel>], iteration_bounds = array<i64: 2>, scalar_prefetch = 0 : i64, scratch_operands = 1 : i64, tpu.core_type = #tpu.core_type<tc>, window_params = [{transform_indices = @transform_0, window_bounds = array<i64: 1, 8, 32>}, {transform_indices = @transform_1, window_bounds = array<i64: 1, 8, 32>}, {transform_indices = @transform_2, window_bounds = array<i64: 1, 8, 32>}, {transform_indices = @transform_3, window_bounds = array<i64: 1, 8, 8>}, {pipeline_mode = #tpu.pipeline_mode<synchronous>, transform_indices = @transform_4, window_bounds = array<i64: 32, 32>}, {pipeline_mode = #tpu.pipeline_mode<synchronous>, transform_indices = @transform_5, window_bounds = array<i64: 32, 32>}, {pipeline_mode = #tpu.pipeline_mode<synchronous>, transform_indices = @transform_6, window_bounds = array<i64: 32, 32>}, {pipeline_mode = #tpu.pipeline_mode<synchronous>, transform_indices = @transform_7, window_bounds = array<i64: 32, 32>}, {pipeline_mode = #tpu.pipeline_mode<synchronous>, transform_indices = @transform_8, window_bounds = array<i64: 1, 32>}, {pipeline_mode = #tpu.pipeline_mode<synchronous>, transform_indices = @transform_9, window_bounds = array<i64: 1, 32>}, {pipeline_mode = #tpu.pipeline_mode<synchronous>, transform_indices = @transform_10, window_bounds = array<i64: 32, 64>}, {pipeline_mode = #tpu.pipeline_mode<synchronous>, transform_indices = @transform_11, window_bounds = array<i64: 1, 64>}, {pipeline_mode = #tpu.pipeline_mode<synchronous>, transform_indices = @transform_12, window_bounds = array<i64: 64, 32>}, {pipeline_mode = #tpu.pipeline_mode<synchronous>, transform_indices = @transform_13, window_bounds = array<i64: 1, 32>}, {pipeline_mode = #tpu.pipeline_mode<synchronous>, transform_indices = @transform_14, window_bounds = array<i64: 1, 32>}, {pipeline_mode = #tpu.pipeline_mode<synchronous>, transform_indices = @transform_15, window_bounds = array<i64: 1, 32>}, {transform_indices = @transform_16, window_bounds = array<i64: 1, 8, 32>}, {transform_indices = @transform_17, window_bounds = array<i64: 1, 4, 8, 8>}]} {
    %c0 = arith.constant 0 : index
    %c0_0 = arith.constant 0 : index
    %c0_1 = arith.constant 0 : index
    %0 = vector.load %arg1[%c0, %c0_0, %c0_1] : memref<1x8x32xf32, #tpu.memory_space<vmem>>, vector<1x8x32xf32>
    %1 = vector.shape_cast %0 : vector<1x8x32xf32> to vector<8x32xf32>
    %c0_2 = arith.constant 0 : index
    %c0_3 = arith.constant 0 : index
    %c0_4 = arith.constant 0 : index
    %2 = vector.load %arg2[%c0_2, %c0_3, %c0_4] : memref<1x8x32xf32, #tpu.memory_space<vmem>>, vector<1x8x32xf32>
    %3 = vector.shape_cast %2 : vector<1x8x32xf32> to vector<8x32xf32>
    %c0_5 = arith.constant 0 : index
    %c0_6 = arith.constant 0 : index
    %c0_7 = arith.constant 0 : index
    %4 = vector.load %arg3[%c0_5, %c0_6, %c0_7] : memref<1x8x32xf32, #tpu.memory_space<vmem>>, vector<1x8x32xf32>
    %5 = vector.shape_cast %4 : vector<1x8x32xf32> to vector<8x32xf32>
    %c0_8 = arith.constant 0 : index
    %c0_9 = arith.constant 0 : index
    %6 = vector.load %arg5[%c0_8, %c0_9] : memref<32x32xf32, #tpu.memory_space<vmem>>, vector<32x32xf32>
    %cst = arith.constant dense<0.000000e+00> : vector<8x32xf32>
    %7 = tpu.matmul %1, %6, %cst {dimension_numbers = #tpu.dot_dimension_numbers<[1], [0], [0], [1], [0, 0, 1, 1], [], []>} : vector<8x32xf32>, vector<32x32xf32>, vector<8x32xf32> -> vector<8x32xf32>
    %c0_10 = arith.constant 0 : index
    %c0_11 = arith.constant 0 : index
    %8 = vector.load %arg6[%c0_10, %c0_11] : memref<32x32xf32, #tpu.memory_space<vmem>>, vector<32x32xf32>
    %cst_12 = arith.constant dense<0.000000e+00> : vector<8x32xf32>
    %9 = tpu.matmul %3, %8, %cst_12 {dimension_numbers = #tpu.dot_dimension_numbers<[1], [0], [0], [1], [0, 0, 1, 1], [], []>} : vector<8x32xf32>, vector<32x32xf32>, vector<8x32xf32> -> vector<8x32xf32>
    %c0_13 = arith.constant 0 : index
    %c0_14 = arith.constant 0 : index
    %10 = vector.load %arg7[%c0_13, %c0_14] : memref<32x32xf32, #tpu.memory_space<vmem>>, vector<32x32xf32>
    %cst_15 = arith.constant dense<0.000000e+00> : vector<8x32xf32>
    %11 = tpu.matmul %5, %10, %cst_15 {dimension_numbers = #tpu.dot_dimension_numbers<[1], [0], [0], [1], [0, 0, 1, 1], [], []>} : vector<8x32xf32>, vector<32x32xf32>, vector<8x32xf32> -> vector<8x32xf32>
    %12 = vector.shape_cast %7 : vector<8x32xf32> to vector<1x8x32xf32>
    %13 = vector.shape_cast %9 : vector<8x32xf32> to vector<1x8x32xf32>
    %14 = vector.shape_cast %11 : vector<8x32xf32> to vector<1x8x32xf32>
    %c0_16 = arith.constant 0 : index
    %c0_17 = arith.constant 0 : index
    %c0_18 = arith.constant 0 : index
    %15 = vector.load %arg4[%c0_16, %c0_17, %c0_18] : memref<1x8x8xi8, #tpu.memory_space<vmem>>, vector<1x8x8xi8>
    %c0_i8 = arith.constant 0 : i8
    %16 = vector.broadcast %c0_i8 : i8 to vector<1x8x8xi8>
    %17 = arith.cmpi ne, %15, %16 : vector<1x8x8xi8>
    %18 = vector.extract_strided_slice %12 {offsets = [0, 0, 0], sizes = [1, 8, 8], strides = [1, 1, 1]} : vector<1x8x32xf32> to vector<1x8x8xf32>
    %19 = vector.extract_strided_slice %13 {offsets = [0, 0, 0], sizes = [1, 8, 8], strides = [1, 1, 1]} : vector<1x8x32xf32> to vector<1x8x8xf32>
    %20 = vector.extract_strided_slice %14 {offsets = [0, 0, 0], sizes = [1, 8, 8], strides = [1, 1, 1]} : vector<1x8x32xf32> to vector<1x8x8xf32>
    %cst_19 = arith.constant dense<0.000000e+00> : vector<1x8x8xf32>
    %21 = tpu.matmul %18, %19, %cst_19 {dimension_numbers = #tpu.dot_dimension_numbers<[2], [2], [1], [1], [0, 0, 0, 1, 1, 1], [0], [0]>} : vector<1x8x8xf32>, vector<1x8x8xf32>, vector<1x8x8xf32> -> vector<1x8x8xf32>
    %cst_20 = arith.constant -1.000000e+09 : f32
    %22 = vector.broadcast %cst_20 : f32 to vector<1x8x8xf32>
    %23 = arith.select %17, %21, %22 : vector<1x8x8xi1>, vector<1x8x8xf32>
    %cst_21 = arith.constant dense<0xFF800000> : vector<1x8xf32>
    %24 = vector.multi_reduction <maximumf>, %23, %cst_21 [2] : vector<1x8x8xf32> to vector<1x8xf32>
    %25 = vector.shape_cast %24 : vector<1x8xf32> to vector<1x8x1xf32>
    %26 = vector.broadcast %25 : vector<1x8x1xf32> to vector<1x8x8xf32>
    %27 = arith.subf %23, %26 : vector<1x8x8xf32>
    %28 = math.exp %27 : vector<1x8x8xf32>
    %cst_22 = arith.constant dense<0.000000e+00> : vector<1x8xf32>
    %29 = vector.multi_reduction <add>, %28, %cst_22 [2] : vector<1x8x8xf32> to vector<1x8xf32>
    %30 = vector.shape_cast %29 : vector<1x8xf32> to vector<1x8x1xf32>
    %cst_23 = arith.constant 1.000000e+00 : f32
    %31 = vector.broadcast %cst_23 : f32 to vector<1x8x1xf32>
    %32 = arith.divf %31, %30 : vector<1x8x1xf32>
    %33 = vector.broadcast %32 : vector<1x8x1xf32> to vector<1x8x8xf32>
    %34 = arith.mulf %28, %33 : vector<1x8x8xf32>
    %c0_24 = arith.constant 0 : index
    %c0_25 = arith.constant 0 : index
    %c0_26 = arith.constant 0 : index
    %c0_27 = arith.constant 0 : index
    %35 = vector.load %arg18[%c0_24, %c0_25, %c0_26, %c0_27] : memref<1x4x8x8xf32, #tpu.memory_space<vmem>>, vector<1x1x8x8xf32>
    %36 = vector.shape_cast %35 : vector<1x1x8x8xf32> to vector<1x8x8xf32>
    %37 = vector.shape_cast %34 : vector<1x8x8xf32> to vector<1x1x8x8xf32>
    tpu.vector_store %arg18[%c0_24, %c0_25, %c0_26, %c0_27], %37 {strides = array<i32>} : memref<1x4x8x8xf32, #tpu.memory_space<vmem>>, vector<1x1x8x8xf32>,
    %cst_28 = arith.constant dense<0.000000e+00> : vector<1x8x8xf32>
    %38 = tpu.matmul %34, %20, %cst_28 {dimension_numbers = #tpu.dot_dimension_numbers<[2], [1], [1], [2], [0, 0, 0, 1, 1, 2], [0], [0]>} : vector<1x8x8xf32>, vector<1x8x8xf32>, vector<1x8x8xf32> -> vector<1x8x8xf32>
    %c0_29 = arith.constant 0 : index
    %c0_30 = arith.constant 0 : index
    %c0_31 = arith.constant 0 : index
    %39 = vector.load %arg19[%c0_29, %c0_30, %c0_31] : memref<1x8x32xf32, #tpu.memory_space<vmem>>, vector<1x8x8xf32>
    tpu.vector_store %arg19[%c0_29, %c0_30, %c0_31], %38 {strides = array<i32>} : memref<1x8x32xf32, #tpu.memory_space<vmem>>, vector<1x8x8xf32>,
    %40 = vector.extract_strided_slice %12 {offsets = [0, 0, 8], sizes = [1, 8, 8], strides = [1, 1, 1]} : vector<1x8x32xf32> to vector<1x8x8xf32>
    %41 = vector.extract_strided_slice %13 {offsets = [0, 0, 8], sizes = [1, 8, 8], strides = [1, 1, 1]} : vector<1x8x32xf32> to vector<1x8x8xf32>
    %42 = vector.extract_strided_slice %14 {offsets = [0, 0, 8], sizes = [1, 8, 8], strides = [1, 1, 1]} : vector<1x8x32xf32> to vector<1x8x8xf32>
    %cst_32 = arith.constant dense<0.000000e+00> : vector<1x8x8xf32>
    %43 = tpu.matmul %40, %41, %cst_32 {dimension_numbers = #tpu.dot_dimension_numbers<[2], [2], [1], [1], [0, 0, 0, 1, 1, 1], [0], [0]>} : vector<1x8x8xf32>, vector<1x8x8xf32>, vector<1x8x8xf32> -> vector<1x8x8xf32>
    %cst_33 = arith.constant -1.000000e+09 : f32
    %44 = vector.broadcast %cst_33 : f32 to vector<1x8x8xf32>
    %45 = arith.select %17, %43, %44 : vector<1x8x8xi1>, vector<1x8x8xf32>
    %cst_34 = arith.constant dense<0xFF800000> : vector<1x8xf32>
    %46 = vector.multi_reduction <maximumf>, %45, %cst_34 [2] : vector<1x8x8xf32> to vector<1x8xf32>
    %47 = vector.shape_cast %46 : vector<1x8xf32> to vector<1x8x1xf32>
    %48 = vector.broadcast %47 : vector<1x8x1xf32> to vector<1x8x8xf32>
    %49 = arith.subf %45, %48 : vector<1x8x8xf32>
    %50 = math.exp %49 : vector<1x8x8xf32>
    %cst_35 = arith.constant dense<0.000000e+00> : vector<1x8xf32>
    %51 = vector.multi_reduction <add>, %50, %cst_35 [2] : vector<1x8x8xf32> to vector<1x8xf32>
    %52 = vector.shape_cast %51 : vector<1x8xf32> to vector<1x8x1xf32>
    %cst_36 = arith.constant 1.000000e+00 : f32
    %53 = vector.broadcast %cst_36 : f32 to vector<1x8x1xf32>
    %54 = arith.divf %53, %52 : vector<1x8x1xf32>
    %55 = vector.broadcast %54 : vector<1x8x1xf32> to vector<1x8x8xf32>
    %56 = arith.mulf %50, %55 : vector<1x8x8xf32>
    %c0_37 = arith.constant 0 : index
    %c1 = arith.constant 1 : index
    %c0_38 = arith.constant 0 : index
    %c0_39 = arith.constant 0 : index
    %57 = vector.load %arg18[%c0_37, %c1, %c0_38, %c0_39] : memref<1x4x8x8xf32, #tpu.memory_space<vmem>>, vector<1x1x8x8xf32>
    %58 = vector.shape_cast %57 : vector<1x1x8x8xf32> to vector<1x8x8xf32>
    %59 = vector.shape_cast %56 : vector<1x8x8xf32> to vector<1x1x8x8xf32>
    tpu.vector_store %arg18[%c0_37, %c1, %c0_38, %c0_39], %59 {strides = array<i32>} : memref<1x4x8x8xf32, #tpu.memory_space<vmem>>, vector<1x1x8x8xf32>,
    %cst_40 = arith.constant dense<0.000000e+00> : vector<1x8x8xf32>
    %60 = tpu.matmul %56, %42, %cst_40 {dimension_numbers = #tpu.dot_dimension_numbers<[2], [1], [1], [2], [0, 0, 0, 1, 1, 2], [0], [0]>} : vector<1x8x8xf32>, vector<1x8x8xf32>, vector<1x8x8xf32> -> vector<1x8x8xf32>
    %c0_41 = arith.constant 0 : index
    %c0_42 = arith.constant 0 : index
    %c8 = arith.constant 8 : index
    %61 = vector.load %arg19[%c0_41, %c0_42, %c8] : memref<1x8x32xf32, #tpu.memory_space<vmem>>, vector<1x8x8xf32>
    tpu.vector_store %arg19[%c0_41, %c0_42, %c8], %60 {strides = array<i32>} : memref<1x8x32xf32, #tpu.memory_space<vmem>>, vector<1x8x8xf32>,
    %62 = vector.extract_strided_slice %12 {offsets = [0, 0, 16], sizes = [1, 8, 8], strides = [1, 1, 1]} : vector<1x8x32xf32> to vector<1x8x8xf32>
    %63 = vector.extract_strided_slice %13 {offsets = [0, 0, 16], sizes = [1, 8, 8], strides = [1, 1, 1]} : vector<1x8x32xf32> to vector<1x8x8xf32>
    %64 = vector.extract_strided_slice %14 {offsets = [0, 0, 16], sizes = [1, 8, 8], strides = [1, 1, 1]} : vector<1x8x32xf32> to vector<1x8x8xf32>
    %cst_43 = arith.constant dense<0.000000e+00> : vector<1x8x8xf32>
    %65 = tpu.matmul %62, %63, %cst_43 {dimension_numbers = #tpu.dot_dimension_numbers<[2], [2], [1], [1], [0, 0, 0, 1, 1, 1], [0], [0]>} : vector<1x8x8xf32>, vector<1x8x8xf32>, vector<1x8x8xf32> -> vector<1x8x8xf32>
    %cst_44 = arith.constant -1.000000e+09 : f32
    %66 = vector.broadcast %cst_44 : f32 to vector<1x8x8xf32>
    %67 = arith.select %17, %65, %66 : vector<1x8x8xi1>, vector<1x8x8xf32>
    %cst_45 = arith.constant dense<0xFF800000> : vector<1x8xf32>
    %68 = vector.multi_reduction <maximumf>, %67, %cst_45 [2] : vector<1x8x8xf32> to vector<1x8xf32>
    %69 = vector.shape_cast %68 : vector<1x8xf32> to vector<1x8x1xf32>
    %70 = vector.broadcast %69 : vector<1x8x1xf32> to vector<1x8x8xf32>
    %71 = arith.subf %67, %70 : vector<1x8x8xf32>
    %72 = math.exp %71 : vector<1x8x8xf32>
    %cst_46 = arith.constant dense<0.000000e+00> : vector<1x8xf32>
    %73 = vector.multi_reduction <add>, %72, %cst_46 [2] : vector<1x8x8xf32> to vector<1x8xf32>
    %74 = vector.shape_cast %73 : vector<1x8xf32> to vector<1x8x1xf32>
    %cst_47 = arith.constant 1.000000e+00 : f32
    %75 = vector.broadcast %cst_47 : f32 to vector<1x8x1xf32>
    %76 = arith.divf %75, %74 : vector<1x8x1xf32>
    %77 = vector.broadcast %76 : vector<1x8x1xf32> to vector<1x8x8xf32>
    %78 = arith.mulf %72, %77 : vector<1x8x8xf32>
    %c0_48 = arith.constant 0 : index
    %c2 = arith.constant 2 : index
    %c0_49 = arith.constant 0 : index
    %c0_50 = arith.constant 0 : index
    %79 = vector.load %arg18[%c0_48, %c2, %c0_49, %c0_50] : memref<1x4x8x8xf32, #tpu.memory_space<vmem>>, vector<1x1x8x8xf32>
    %80 = vector.shape_cast %79 : vector<1x1x8x8xf32> to vector<1x8x8xf32>
    %81 = vector.shape_cast %78 : vector<1x8x8xf32> to vector<1x1x8x8xf32>
    tpu.vector_store %arg18[%c0_48, %c2, %c0_49, %c0_50], %81 {strides = array<i32>} : memref<1x4x8x8xf32, #tpu.memory_space<vmem>>, vector<1x1x8x8xf32>,
    %cst_51 = arith.constant dense<0.000000e+00> : vector<1x8x8xf32>
    %82 = tpu.matmul %78, %64, %cst_51 {dimension_numbers = #tpu.dot_dimension_numbers<[2], [1], [1], [2], [0, 0, 0, 1, 1, 2], [0], [0]>} : vector<1x8x8xf32>, vector<1x8x8xf32>, vector<1x8x8xf32> -> vector<1x8x8xf32>
    %c0_52 = arith.constant 0 : index
    %c0_53 = arith.constant 0 : index
    %c16 = arith.constant 16 : index
    %83 = vector.load %arg19[%c0_52, %c0_53, %c16] : memref<1x8x32xf32, #tpu.memory_space<vmem>>, vector<1x8x8xf32>
    tpu.vector_store %arg19[%c0_52, %c0_53, %c16], %82 {strides = array<i32>} : memref<1x8x32xf32, #tpu.memory_space<vmem>>, vector<1x8x8xf32>,
    %84 = vector.extract_strided_slice %12 {offsets = [0, 0, 24], sizes = [1, 8, 8], strides = [1, 1, 1]} : vector<1x8x32xf32> to vector<1x8x8xf32>
    %85 = vector.extract_strided_slice %13 {offsets = [0, 0, 24], sizes = [1, 8, 8], strides = [1, 1, 1]} : vector<1x8x32xf32> to vector<1x8x8xf32>
    %86 = vector.extract_strided_slice %14 {offsets = [0, 0, 24], sizes = [1, 8, 8], strides = [1, 1, 1]} : vector<1x8x32xf32> to vector<1x8x8xf32>
    %cst_54 = arith.constant dense<0.000000e+00> : vector<1x8x8xf32>
    %87 = tpu.matmul %84, %85, %cst_54 {dimension_numbers = #tpu.dot_dimension_numbers<[2], [2], [1], [1], [0, 0, 0, 1, 1, 1], [0], [0]>} : vector<1x8x8xf32>, vector<1x8x8xf32>, vector<1x8x8xf32> -> vector<1x8x8xf32>
    %cst_55 = arith.constant -1.000000e+09 : f32
    %88 = vector.broadcast %cst_55 : f32 to vector<1x8x8xf32>
    %89 = arith.select %17, %87, %88 : vector<1x8x8xi1>, vector<1x8x8xf32>
    %cst_56 = arith.constant dense<0xFF800000> : vector<1x8xf32>
    %90 = vector.multi_reduction <maximumf>, %89, %cst_56 [2] : vector<1x8x8xf32> to vector<1x8xf32>
    %91 = vector.shape_cast %90 : vector<1x8xf32> to vector<1x8x1xf32>
    %92 = vector.broadcast %91 : vector<1x8x1xf32> to vector<1x8x8xf32>
    %93 = arith.subf %89, %92 : vector<1x8x8xf32>
    %94 = math.exp %93 : vector<1x8x8xf32>
    %cst_57 = arith.constant dense<0.000000e+00> : vector<1x8xf32>
    %95 = vector.multi_reduction <add>, %94, %cst_57 [2] : vector<1x8x8xf32> to vector<1x8xf32>
    %96 = vector.shape_cast %95 : vector<1x8xf32> to vector<1x8x1xf32>
    %cst_58 = arith.constant 1.000000e+00 : f32
    %97 = vector.broadcast %cst_58 : f32 to vector<1x8x1xf32>
    %98 = arith.divf %97, %96 : vector<1x8x1xf32>
    %99 = vector.broadcast %98 : vector<1x8x1xf32> to vector<1x8x8xf32>
    %100 = arith.mulf %94, %99 : vector<1x8x8xf32>
    %c0_59 = arith.constant 0 : index
    %c3 = arith.constant 3 : index
    %c0_60 = arith.constant 0 : index
    %c0_61 = arith.constant 0 : index
    %101 = vector.load %arg18[%c0_59, %c3, %c0_60, %c0_61] : memref<1x4x8x8xf32, #tpu.memory_space<vmem>>, vector<1x1x8x8xf32>
    %102 = vector.shape_cast %101 : vector<1x1x8x8xf32> to vector<1x8x8xf32>
    %103 = vector.shape_cast %100 : vector<1x8x8xf32> to vector<1x1x8x8xf32>
    tpu.vector_store %arg18[%c0_59, %c3, %c0_60, %c0_61], %103 {strides = array<i32>} : memref<1x4x8x8xf32, #tpu.memory_space<vmem>>, vector<1x1x8x8xf32>,
    %cst_62 = arith.constant dense<0.000000e+00> : vector<1x8x8xf32>
    %104 = tpu.matmul %100, %86, %cst_62 {dimension_numbers = #tpu.dot_dimension_numbers<[2], [1], [1], [2], [0, 0, 0, 1, 1, 2], [0], [0]>} : vector<1x8x8xf32>, vector<1x8x8xf32>, vector<1x8x8xf32> -> vector<1x8x8xf32>
    %c0_63 = arith.constant 0 : index
    %c0_64 = arith.constant 0 : index
    %c24 = arith.constant 24 : index
    %105 = vector.load %arg19[%c0_63, %c0_64, %c24] : memref<1x8x32xf32, #tpu.memory_space<vmem>>, vector<1x8x8xf32>
    tpu.vector_store %arg19[%c0_63, %c0_64, %c24], %104 {strides = array<i32>} : memref<1x8x32xf32, #tpu.memory_space<vmem>>, vector<1x8x8xf32>,
    %c0_65 = arith.constant 0 : index
    %c0_66 = arith.constant 0 : index
    %c0_67 = arith.constant 0 : index
    %106 = vector.load %arg19[%c0_65, %c0_66, %c0_67] : memref<1x8x32xf32, #tpu.memory_space<vmem>>, vector<1x8x32xf32>
    %107 = vector.shape_cast %106 : vector<1x8x32xf32> to vector<8x32xf32>
    %c0_68 = arith.constant 0 : index
    %c0_69 = arith.constant 0 : index
    %108 = vector.load %arg8[%c0_68, %c0_69] : memref<32x32xf32, #tpu.memory_space<vmem>>, vector<32x32xf32>
    %cst_70 = arith.constant dense<0.000000e+00> : vector<8x32xf32>
    %109 = tpu.matmul %107, %108, %cst_70 {dimension_numbers = #tpu.dot_dimension_numbers<[1], [0], [0], [1], [0, 0, 1, 1], [], []>} : vector<8x32xf32>, vector<32x32xf32>, vector<8x32xf32> -> vector<8x32xf32>
    %110 = arith.addf %109, %1 : vector<8x32xf32>
    %c0_71 = arith.constant 0 : index
    %c0_72 = arith.constant 0 : index
    %111 = vector.load %arg9[%c0_71, %c0_72] : memref<1x32xf32, #tpu.memory_space<vmem>>, vector<1x32xf32>
    %c0_73 = arith.constant 0 : index
    %c0_74 = arith.constant 0 : index
    %112 = vector.load %arg10[%c0_73, %c0_74] : memref<1x32xf32, #tpu.memory_space<vmem>>, vector<1x32xf32>
    %cst_75 = arith.constant dense<0.000000e+00> : vector<8xf32>
    %113 = vector.multi_reduction <add>, %110, %cst_75 [1] : vector<8x32xf32> to vector<8xf32>
    %114 = vector.shape_cast %113 : vector<8xf32> to vector<8x1xf32>
    %cst_76 = arith.constant 3.200000e+01 : f32
    %115 = vector.broadcast %cst_76 : f32 to vector<8x1xf32>
    %116 = arith.divf %114, %115 : vector<8x1xf32>
    %117 = vector.broadcast %116 : vector<8x1xf32> to vector<8x32xf32>
    %118 = arith.subf %110, %117 : vector<8x32xf32>
    %119 = arith.mulf %118, %118 : vector<8x32xf32>
    %cst_77 = arith.constant dense<0.000000e+00> : vector<8xf32>
    %120 = vector.multi_reduction <add>, %119, %cst_77 [1] : vector<8x32xf32> to vector<8xf32>
    %121 = vector.shape_cast %120 : vector<8xf32> to vector<8x1xf32>
    %cst_78 = arith.constant 3.200000e+01 : f32
    %122 = vector.broadcast %cst_78 : f32 to vector<8x1xf32>
    %123 = arith.divf %121, %122 : vector<8x1xf32>
    %124 = vector.broadcast %116 : vector<8x1xf32> to vector<8x32xf32>
    %125 = arith.subf %110, %124 : vector<8x32xf32>
    %cst_79 = arith.constant 9.99999997E-7 : f32
    %126 = vector.broadcast %cst_79 : f32 to vector<8x1xf32>
    %127 = arith.addf %123, %126 : vector<8x1xf32>
    %128 = math.rsqrt %127 : vector<8x1xf32>
    %129 = vector.broadcast %128 : vector<8x1xf32> to vector<8x32xf32>
    %130 = arith.mulf %125, %129 : vector<8x32xf32>
    %131 = vector.broadcast %111 : vector<1x32xf32> to vector<8x32xf32>
    %132 = arith.mulf %130, %131 : vector<8x32xf32>
    %133 = vector.broadcast %112 : vector<1x32xf32> to vector<8x32xf32>
    %134 = arith.addf %132, %133 : vector<8x32xf32>
    %c0_80 = arith.constant 0 : index
    %c0_81 = arith.constant 0 : index
    %135 = vector.load %arg11[%c0_80, %c0_81] : memref<32x64xf32, #tpu.memory_space<vmem>>, vector<32x64xf32>
    %cst_82 = arith.constant dense<0.000000e+00> : vector<8x64xf32>
    %136 = tpu.matmul %134, %135, %cst_82 {dimension_numbers = #tpu.dot_dimension_numbers<[1], [0], [0], [1], [0, 0, 1, 1], [], []>} : vector<8x32xf32>, vector<32x64xf32>, vector<8x64xf32> -> vector<8x64xf32>
    %c0_83 = arith.constant 0 : index
    %c0_84 = arith.constant 0 : index
    %137 = vector.load %arg12[%c0_83, %c0_84] : memref<1x64xf32, #tpu.memory_space<vmem>>, vector<1x64xf32>
    %138 = vector.broadcast %137 : vector<1x64xf32> to vector<8x64xf32>
    %139 = arith.addf %136, %138 : vector<8x64xf32>
    %cst_85 = arith.constant 0.000000e+00 : f32
    %140 = vector.broadcast %cst_85 : f32 to vector<8x64xf32>
    %141 = arith.maximumf %139, %140 : vector<8x64xf32>
    %c0_86 = arith.constant 0 : index
    %c0_87 = arith.constant 0 : index
    %142 = vector.load %arg13[%c0_86, %c0_87] : memref<64x32xf32, #tpu.memory_space<vmem>>, vector<64x32xf32>
    %cst_88 = arith.constant dense<0.000000e+00> : vector<8x32xf32>
    %143 = tpu.matmul %141, %142, %cst_88 {dimension_numbers = #tpu.dot_dimension_numbers<[1], [0], [0], [1], [0, 0, 1, 1], [], []>} : vector<8x64xf32>, vector<64x32xf32>, vector<8x32xf32> -> vector<8x32xf32>
    %c0_89 = arith.constant 0 : index
    %c0_90 = arith.constant 0 : index
    %144 = vector.load %arg14[%c0_89, %c0_90] : memref<1x32xf32, #tpu.memory_space<vmem>>, vector<1x32xf32>
    %145 = vector.broadcast %144 : vector<1x32xf32> to vector<8x32xf32>
    %146 = arith.addf %143, %145 : vector<8x32xf32>
    %147 = arith.addf %146, %134 : vector<8x32xf32>
    %c0_91 = arith.constant 0 : index
    %c0_92 = arith.constant 0 : index
    %148 = vector.load %arg15[%c0_91, %c0_92] : memref<1x32xf32, #tpu.memory_space<vmem>>, vector<1x32xf32>
    %c0_93 = arith.constant 0 : index
    %c0_94 = arith.constant 0 : index
    %149 = vector.load %arg16[%c0_93, %c0_94] : memref<1x32xf32, #tpu.memory_space<vmem>>, vector<1x32xf32>
    %cst_95 = arith.constant dense<0.000000e+00> : vector<8xf32>
    %150 = vector.multi_reduction <add>, %147, %cst_95 [1] : vector<8x32xf32> to vector<8xf32>
    %151 = vector.shape_cast %150 : vector<8xf32> to vector<8x1xf32>
    %cst_96 = arith.constant 3.200000e+01 : f32
    %152 = vector.broadcast %cst_96 : f32 to vector<8x1xf32>
    %153 = arith.divf %151, %152 : vector<8x1xf32>
    %154 = vector.broadcast %153 : vector<8x1xf32> to vector<8x32xf32>
    %155 = arith.subf %147, %154 : vector<8x32xf32>
    %156 = arith.mulf %155, %155 : vector<8x32xf32>
    %cst_97 = arith.constant dense<0.000000e+00> : vector<8xf32>
    %157 = vector.multi_reduction <add>, %156, %cst_97 [1] : vector<8x32xf32> to vector<8xf32>
    %158 = vector.shape_cast %157 : vector<8xf32> to vector<8x1xf32>
    %cst_98 = arith.constant 3.200000e+01 : f32
    %159 = vector.broadcast %cst_98 : f32 to vector<8x1xf32>
    %160 = arith.divf %158, %159 : vector<8x1xf32>
    %161 = vector.broadcast %153 : vector<8x1xf32> to vector<8x32xf32>
    %162 = arith.subf %147, %161 : vector<8x32xf32>
    %cst_99 = arith.constant 9.99999997E-7 : f32
    %163 = vector.broadcast %cst_99 : f32 to vector<8x1xf32>
    %164 = arith.addf %160, %163 : vector<8x1xf32>
    %165 = math.rsqrt %164 : vector<8x1xf32>
    %166 = vector.broadcast %165 : vector<8x1xf32> to vector<8x32xf32>
    %167 = arith.mulf %162, %166 : vector<8x32xf32>
    %168 = vector.broadcast %148 : vector<1x32xf32> to vector<8x32xf32>
    %169 = arith.mulf %167, %168 : vector<8x32xf32>
    %170 = vector.broadcast %149 : vector<1x32xf32> to vector<8x32xf32>
    %171 = arith.addf %169, %170 : vector<8x32xf32>
    %172 = vector.shape_cast %171 : vector<8x32xf32> to vector<1x8x32xf32>
    %c0_100 = arith.constant 0 : index
    %c0_101 = arith.constant 0 : index
    %c0_102 = arith.constant 0 : index
    %173 = vector.load %arg17[%c0_100, %c0_101, %c0_102] : memref<1x8x32xf32, #tpu.memory_space<vmem>>, vector<1x8x32xf32>
    tpu.vector_store %arg17[%c0_100, %c0_101, %c0_102], %172 {strides = array<i32>} : memref<1x8x32xf32, #tpu.memory_space<vmem>>, vector<1x8x32xf32>,
    return
  }
  func.func @transform_0(%arg0: i32) -> (i32, i32, i32) {
    %c0_i32 = arith.constant 0 : i32
    %c0_i32_0 = arith.constant 0 : i32
    %c0_i32_1 = arith.constant 0 : i32
    return %arg0, %c0_i32, %c0_i32_0 : i32, i32, i32
  }
  func.func @transform_1(%arg0: i32) -> (i32, i32, i32) {
    %c0_i32 = arith.constant 0 : i32
    %c0_i32_0 = arith.constant 0 : i32
    %c0_i32_1 = arith.constant 0 : i32
    return %arg0, %c0_i32, %c0_i32_0 : i32, i32, i32
  }
  func.func @transform_2(%arg0: i32) -> (i32, i32, i32) {
    %c0_i32 = arith.constant 0 : i32
    %c0_i32_0 = arith.constant 0 : i32
    %c0_i32_1 = arith.constant 0 : i32
    return %arg0, %c0_i32, %c0_i32_0 : i32, i32, i32
  }
  func.func @transform_3(%arg0: i32) -> (i32, i32, i32) {
    %c0_i32 = arith.constant 0 : i32
    %c0_i32_0 = arith.constant 0 : i32
    %c0_i32_1 = arith.constant 0 : i32
    return %arg0, %c0_i32, %c0_i32_0 : i32, i32, i32
  }
  func.func @transform_4(%arg0: i32) -> (i32, i32) {
    %c0_i32 = arith.constant 0 : i32
    %c0_i32_0 = arith.constant 0 : i32
    %c0_i32_1 = arith.constant 0 : i32
    return %c0_i32, %c0_i32_0 : i32, i32
  }
  func.func @transform_5(%arg0: i32) -> (i32, i32) {
    %c0_i32 = arith.constant 0 : i32
    %c0_i32_0 = arith.constant 0 : i32
    %c0_i32_1 = arith.constant 0 : i32
    return %c0_i32, %c0_i32_0 : i32, i32
  }
  func.func @transform_6(%arg0: i32) -> (i32, i32) {
    %c0_i32 = arith.constant 0 : i32
    %c0_i32_0 = arith.constant 0 : i32
    %c0_i32_1 = arith.constant 0 : i32
    return %c0_i32, %c0_i32_0 : i32, i32
  }
  func.func @transform_7(%arg0: i32) -> (i32, i32) {
    %c0_i32 = arith.constant 0 : i32
    %c0_i32_0 = arith.constant 0 : i32
    %c0_i32_1 = arith.constant 0 : i32
    return %c0_i32, %c0_i32_0 : i32, i32
  }
  func.func @transform_8(%arg0: i32) -> (i32, i32) {
    %c0_i32 = arith.constant 0 : i32
    %c0_i32_0 = arith.constant 0 : i32
    %c0_i32_1 = arith.constant 0 : i32
    return %c0_i32, %c0_i32_0 : i32, i32
  }
  func.func @transform_9(%arg0: i32) -> (i32, i32) {
    %c0_i32 = arith.constant 0 : i32
    %c0_i32_0 = arith.constant 0 : i32
    %c0_i32_1 = arith.constant 0 : i32
    return %c0_i32, %c0_i32_0 : i32, i32
  }
  func.func @transform_10(%arg0: i32) -> (i32, i32) {
    %c0_i32 = arith.constant 0 : i32
    %c0_i32_0 = arith.constant 0 : i32
    %c0_i32_1 = arith.constant 0 : i32
    return %c0_i32, %c0_i32_0 : i32, i32
  }
  func.func @transform_11(%arg0: i32) -> (i32, i32) {
    %c0_i32 = arith.constant 0 : i32
    %c0_i32_0 = arith.constant 0 : i32
    %c0_i32_1 = arith.constant 0 : i32
    return %c0_i32, %c0_i32_0 : i32, i32
  }
  func.func @transform_12(%arg0: i32) -> (i32, i32) {
    %c0_i32 = arith.constant 0 : i32
    %c0_i32_0 = arith.constant 0 : i32
    %c0_i32_1 = arith.constant 0 : i32
    return %c0_i32, %c0_i32_0 : i32, i32
  }
  func.func @transform_13(%arg0: i32) -> (i32, i32) {
    %c0_i32 = arith.constant 0 : i32
    %c0_i32_0 = arith.constant 0 : i32
    %c0_i32_1 = arith.constant 0 : i32
    return %c0_i32, %c0_i32_0 : i32, i32
  }
  func.func @transform_14(%arg0: i32) -> (i32, i32) {
    %c0_i32 = arith.constant 0 : i32
    %c0_i32_0 = arith.constant 0 : i32
    %c0_i32_1 = arith.constant 0 : i32
    return %c0_i32, %c0_i32_0 : i32, i32
  }
  func.func @transform_15(%arg0: i32) -> (i32, i32) {
    %c0_i32 = arith.constant 0 : i32
    %c0_i32_0 = arith.constant 0 : i32
    %c0_i32_1 = arith.constant 0 : i32
    return %c0_i32, %c0_i32_0 : i32, i32
  }
  func.func @transform_16(%arg0: i32) -> (i32, i32, i32) {
    %c0_i32 = arith.constant 0 : i32
    %c0_i32_0 = arith.constant 0 : i32
    %c0_i32_1 = arith.constant 0 : i32
    return %arg0, %c0_i32, %c0_i32_0 : i32, i32, i32
  }
  func.func @transform_17(%arg0: i32) -> (i32, i32, i32, i32) {
    %c0_i32 = arith.constant 0 : i32
    %c0_i32_0 = arith.constant 0 : i32
    %c0_i32_1 = arith.constant 0 : i32
    %c0_i32_2 = arith.constant 0 : i32
    return %arg0, %c0_i32, %c0_i32_0, %c0_i32_1 : i32, i32, i32, i32
  }
}

</mosaic_0001>

<bundles_post_ra>
// kernel: tpu_custom_call.1
= control target key start
LH: loop header
LB: loop body
LE: loop exit
PB: predicated region body
PF: predicated region fallthrough
CT: control target
= control target key end

     0   :  { %s3438_s0 = inlined_call_operand.hbm [shape: f32[2,8,32], index: 0, kind: input, shape index: {}]   ;;  %s3439_s1 = inlined_call_operand.hbm [shape: f32[2,8,32], index: 1, kind: input, shape index: {}]   ;;  %s3440_s2 = inlined_call_operand.hbm [shape: f32[2,8,32], index: 2, kind: input, shape index: {}]   ;;  %s3441_s3 = inlined_call_operand.vmem [shape: s8[2,8,8], index: 3, kind: input, shape index: {}]   ;;  %s3442_s4 = inlined_call_operand.vmem [shape: f32[32,32], index: 4, kind: input, shape index: {}]   ;;  %s3443_s5 = inlined_call_operand.vmem [shape: f32[32,32], index: 5, kind: input, shape index: {}]   ;;  %s3444_s6 = inlined_call_operand.vmem [shape: f32[32,32], index: 6, kind: input, shape index: {}]   ;;  %s3445_s7 = inlined_call_operand.hbm [shape: f32[32,32], index: 7, kind: input, shape index: {}]   ;;  %s3446_s8 = inlined_call_operand.vmem [shape: f32[1,32], index: 8, kind: input, shape index: {}]   ;;  %s3447_s9 = inlined_call_operand.vmem [shape: f32[1,32], index: 9, kind: input, shape index: {}]   ;;  %s3448_s10 = inlined_call_operand.hbm [shape: f32[32,64], index: 10, kind: input, shape index: {}]   ;;  %s3449_s11 = inlined_call_operand.vmem [shape: f32[1,64], index: 11, kind: input, shape index: {}]   ;;  %s3450_s12 = inlined_call_operand.vmem [shape: f32[64,32], index: 12, kind: input, shape index: {}]   ;;  %s3451_s13 = inlined_call_operand.vmem [shape: f32[1,32], index: 13, kind: input, shape index: {}]   ;;  %s3452_s14 = inlined_call_operand.vmem [shape: f32[1,32], index: 14, kind: input, shape index: {}]   ;;  %s3453_s15 = inlined_call_operand.vmem [shape: f32[1,32], index: 15, kind: input, shape index: {}]   ;;  %s3454_s16 = inlined_call_operand.hbm [shape: f32[2,8,32], index: 16, kind: output, shape index: {0}]   ;;  %s3455_s17 = inlined_call_operand.hbm [shape: f32[2,4,8,8], index: 17, kind: output, shape index: {1}]  }
   0x1   :  { %3482 = sst [smem:[#allocation26_spill]] %s3438_s0 }
   0x2   :  { %3483 = sst [smem:[#allocation27_spill]] %s3439_s1 }
   0x3   :  { %3484 = sst [smem:[#allocation28_spill]] %s3445_s7 }
   0x4   :  { %3485 = sst [smem:[#allocation29_spill]] %s3447_s9 }
   0x5   :  { %3486 = sst [smem:[#allocation30_spill]] %s3449_s11 }
   0x6   :  { %3487 = sst [smem:[#allocation31_spill]] %s3451_s13 }
   0x7   :  { %3488 = sst [smem:[#allocation32_spill]] %s3452_s14 }
   0x8   :  { %3489 = sst [smem:[#allocation33_spill]] %s3453_s15 }
   0x9   :  { %3490 = sst [smem:[#allocation34_spill]] %s3454_s16 }
   0xa   :  { %3491 = sst [smem:[#allocation35_spill]] %s3455_s17 }
   0xb   :  { %23 = vsyncpa [#allocation4], 0 }
   0xc   :  { %25 = vsyncpa [#allocation4 + $0x1], 0 }
   0xd   :  { %26 = vsyncpa [#allocation7], 0 }
   0xe   :  { %28 = vsyncpa [#allocation7 + $0x1], 0 }
   0xf   :  { %29 = vsyncpa [#allocation10], 0 }
  0x10   :  { %30 = vsyncpa [#allocation5], 0 }
  0x11   :  { %32 = vsyncpa [#allocation5 + $0x1], 0 }
  0x12   :  { %33 = vsyncpa [#allocation14], 0 }
  0x13   :  { %35 = vsyncpa [#allocation14 + $0x1], 0  ;;  %s2889_s24 = smov 0   ;;  %s2891_s25 = smov 0  }
  0x14   :  { %s2893_s26 = smov 0   ;;  %s2895_s27 = smov 0  }
  0x15 LB: > { %3492 = sst [smem:[#allocation20_spill]] %s2765_s24  ;;  %s2910_s28 = sadd.s32 4294967295, %s2777_s27   ;;  %s2777_s27 = sphi %s2895_s27, %s3539_s27   ;;  %s2773_s26 = sphi %s2893_s26, %s3543_s26   ;;  %s2769_s25 = sphi %s2891_s25, %s3542_s25   ;;  %s2765_s24 = sphi %s2889_s24, %s3541_s24  }
  0x16   : > { %3493 = sst [smem:[#allocation21_spill]] %s2777_s27  ;;  %s2149_s29 = sadd.s32 4294967294, %s2777_s27  }
  0x17   : > { %p61_p0 = scmp.ne.s32.totalorder %s2769_s25, %s2765_s24  ;;  %p3461_p1 = scmp.eq.s32.totalorder %s2910_s28, 0 }
  0x18   : > { %p421_p3 = scmp.eq.s32.totalorder %s2149_s29, 1  ;;  %p2150_p5 = scmp.ge.s32.totalorder %s2777_s27, 1 }
  0x19   : > { %p2919_p4 = por %p3461_p1, %p61_p0  ;;  %p454_p7 = scmp.lt.s32.totalorder %s2777_s27, 3 }
  0x1a   : > { %p2924_p6 = por %p421_p3, %p61_p0  ;;  %s2779_s19 = smov [#allocation9]  }
  0x1b   : > { %s3494_s0 = scalar_select %p2919_p4, 1, 0 }
  0x1c   : > { %s3495_s30 = scalar_select %p2924_p6, 1, 0 }
  0x1d   : > { %p2929_p8 = pnand %p2150_p5, %p454_p7  ;;  %s475_s1 = sshll.u32 %s2779_s19, 4  ;;  %s2933_s1 = int_to_ptr.vmem [resolvable:$true] %s475_s1 }
  0x1e   : > { %3496 = sst [smem:[#allocation22_spill]] %s3495_s30  ;;  %s2945_s21 = sadd.s32 1, %s2777_s27  }
  0x1f   : > { %s3497_s18 = scalar_select %p2929_p8, 1, 0 }
  0x20   : > { %p2428_p9 = pneg %p2929_p8  ;;  %3499 = sst [smem:[#allocation23_spill]] %s2945_s21 }
  0x21   : > { %s48_s22 = sadd.s32 1, %s2773_s26  ;;  %s45_s23 = ssub.s32 %s2777_s27, %s2945_s21 }
  0x22   : > { %p2940_p11 = pnand %p2428_p9, %p3461_p1  ;;  %s3500_s7 = sld [smem:[#allocation28_spill]] }
  0x24   : > { %s3498_s20 = scalar_select %p2940_p11, 1, 0 }
  0x25   : > { %p3471_p13 = pneg %p2940_p11 }
  0x28   : > { %s2525_s19 = scalar_lea.hbm %s3500_s7, 512 }
  0x29   : > { %p2526_p12 = scmp.ne.s32.totalorder %s3500_s7, %s2525_s19  ;;  %p2532_p5 = scmp.lt.u32.totalorder %s2525_s19, %s3500_s7 }
  0x2b   : > { %p2528_p0 = pnand %p3471_p13, %p2526_p12 }
  0x2d   : > { %p2529_p3 = pneg %p2528_p0 }
  0x2f   : > { %p2534_p7 = pnand %p2532_p5, %p2529_p3 }
  0x31   : > { %2537 = shalt.err (!%p2534_p7)
}
  0x32   : > { %s2538_s30 = scalar_lea.vmem %s2933_s1, 512  ;;  %p2546_p2 = scmp.lt.s32.totalorder %s2933_s1, %s2933_s1 }
  0x33   : > { %p2539_p9 = scmp.ne.s32.totalorder %s2933_s1, %s2538_s30  ;;  %p2547_p12 = scmp.lt.s32.totalorder %s2538_s30, %s2538_s30 }
  0x35   : > { %p2541_p10 = pnand %p2539_p9, %p3471_p13  ;;  %p2548_p0 = por %p2547_p12, %p2546_p2 }
  0x37   : > { %p2542_p1 = pneg %p2541_p10 }
  0x39   : > { %p2549_p6 = pnand %p2548_p0, %p2542_p1 }
  0x3b   : > { %2552 = shalt.err (!%p2549_p6)
}
  0x3c   : > { %s3465_s14 = smov 128   ;;  %s3466_s15 = smov 8  }
  0x3d   : > { %2431 = dma.hbm_to_vmem [thread:$0]  (!%p2940_p11), %s3500_s7, 512, %s2933_s1, [#allocation10], %s3465_s14, %s3465_s14, %s3466_s15  }
  0x3e   : > { %p46_p1 = scmp.eq.s32.totalorder %s45_s23, 0  ;;  %p55_p2 = scmp.ne.s32.totalorder %s2773_s26, %s2769_s25 }
  0x3f   : > { %p56_p6 = scmp.eq.s32.totalorder %s2777_s27, 0  ;;  %p2454_p10 = scmp.lt.s32.totalorder %s2777_s27, 2 }
  0x40   : > { %s2985_s29 = scalar_select %p46_p1, %s2773_s26, %s48_s22  }
  0x41   : > { %p57_p3 = por %p56_p6, %p55_p2  ;;  %p3502_p5 = scmp.eq.s32.totalorder %s2910_s28, 1 }
  0x42   : > { %3501 = sst [smem:[#allocation24_spill]] %s2985_s29  ;;  %s3467_s30 = sand.u32 1, %s2773_s26  }
  0x43   : > { %p2989_p7 = por %p3502_p5, %p55_p2  ;;  %s2995_s21 = sshll.u32 %s2777_s27, 7 }
  0x44   : > { %s2999_s17 = sshll.u32 %s3467_s30, 3  ;;  %p3001_p9 = pnand %p2454_p10, %p57_p3 }
  0x45   : > { %s3503_s19 = scalar_select %p2989_p7, 1, 0 }
  0x46   : > { %s3505_s1 = scalar_select %p3001_p9, 1, 0 }
  0x47   : > { %3504 = sst [smem:[#allocation25_spill]] %s3503_s19  ;;  %s541_s22 = sand.u32 1, %s2777_s27  }
  0x48   : > { %s3506_s24 = sld [smem:[#allocation27_spill]]  ;;  %s545_s7 = scalar_lea.vmem [#allocation6], %s2999_s17 }
  0x49   : > { %s552_s29 = sshll.u32 %s545_s7, 4  ;;  %s3015_s30 = scalar_lea.sflag [#allocation7], %s541_s22  ;;  %s3013_s29 = int_to_ptr.vmem [resolvable:$true] %s552_s29 }
  0x4a   : > { %p3021_p0 = pneg %p3001_p9 }
  0x4c   : > { %s3508_s27 = scalar_select %p3021_p0, 1, 0 }
  0x4e   : > { %s3507_s14 = smov %s3506_s24  ;;  %s3010_s15 = scalar_lea.hbm %s3506_s24, %s2995_s21 }
  0x4f   : > { %s2553_s19 = scalar_lea.hbm %s3010_s15, 128  ;;  %s2558_s24 = scalar_lea.hbm %s3507_s14, 256 }
  0x50   : > { %p2554_p12 = scmp.ne.s32.totalorder %s3010_s15, %s2553_s19  ;;  %p2559_p6 = scmp.lt.u32.totalorder %s3010_s15, %s3507_s14 }
  0x51   : > { %p2560_p10 = scmp.lt.u32.totalorder %s2558_s24, %s2553_s19  ;;  %p2562_p5 = scmp.lt.u32.totalorder %s2553_s19, %s3010_s15 }
  0x52   : > { %p2556_p1 = pnand %p3021_p0, %p2554_p12 }
  0x53   : > { %p2561_p3 = por %p2560_p10, %p2559_p6 }
  0x54   : > { %p2557_p2 = pneg %p2556_p1 }
  0x55   : > { %p2563_p13 = por %p2562_p5, %p2561_p3 }
  0x57   : > { %p2564_p7 = pnand %p2563_p13, %p2557_p2 }
  0x59   : > { %2567 = shalt.err (!%p2564_p7)
}
  0x5a   : > { %s2568_s22 = scalar_lea.vmem %s3013_s29, 128  ;;  %s2782_s23 = smov [#allocation6]  }
  0x5b   : > { %p2569_p12 = scmp.ne.s32.totalorder %s3013_s29, %s2568_s22  ;;  %s2573_s16 = sshll.u32 %s2782_s23, 4  ;;  %s2574_s16 = int_to_ptr.vmem [resolvable:$false] %s2573_s16 }
  0x5c   : > { %s2575_s13 = scalar_lea.vmem %s2574_s16, 256  ;;  %p2576_p8 = scmp.lt.s32.totalorder %s3013_s29, %s2574_s16 }
  0x5d   : > { %p2571_p1 = pnand %p2569_p12, %p3021_p0  ;;  %p2577_p11 = scmp.lt.s32.totalorder %s2575_s13, %s2568_s22 }
  0x5f   : > { %p2572_p4 = pneg %p2571_p1  ;;  %p2578_p6 = por %p2577_p11, %p2576_p8 }
  0x61   : > { %p2579_p10 = pnand %p2578_p6, %p2572_p4 }
  0x63   : > { %2582 = shalt.err (!%p2579_p10)
}
  0x64   : > { %2441 = dma.hbm_to_vmem [thread:$0]  (!%p3001_p9), %s3010_s15, 128, %s3013_s29, %s3015_s30  }
  0x65   : > { %s2783_s19 = smov [#allocation11]   ;;  %s2583_s23 = scalar_lea.hbm %s3448_s10, 512 }
  0x66   : > { %s494_s24 = sshll.u32 %s2783_s19, 4  ;;  %p2584_p8 = scmp.ne.s32.totalorder %s3448_s10, %s2583_s23  ;;  %s495_s24 = int_to_ptr.vmem [resolvable:$true] %s494_s24 }
  0x67   : > { %p3509_p4 = scmp.ne.s32.totalorder %s3498_s20, 0  ;;  %p2590_p2 = scmp.lt.u32.totalorder %s2583_s23, %s3448_s10 }
  0x69   : > { %p3510_p11 = pneg %p3509_p4 }
  0x6b   : > { %p2586_p13 = pnand %p2584_p8, %p3510_p11 }
  0x6d   : > { %p2587_p7 = pneg %p2586_p13 }
  0x6f   : > { %p2592_p3 = pnand %p2590_p2, %p2587_p7 }
  0x71   : > { %2595 = shalt.err (!%p2592_p3)
}
  0x72   : > { %s2596_s15 = scalar_lea.vmem %s495_s24, 512  ;;  %p3511_p12 = pmov %p3510_p11 }
  0x73   : > { %p2597_p5 = scmp.ne.s32.totalorder %s495_s24, %s2596_s15  ;;  %p2604_p10 = scmp.lt.s32.totalorder %s495_s24, %s495_s24 }
  0x74   : > { %p2605_p9 = scmp.lt.s32.totalorder %s2596_s15, %s2596_s15 }
  0x75   : > { %p2599_p1 = pnand %p2597_p5, %p3511_p12 }
  0x76   : > { %p2606_p0 = por %p2605_p9, %p2604_p10 }
  0x77   : > { %p2600_p6 = pneg %p2599_p1 }
  0x79   : > { %p2607_p8 = pnand %p2606_p0, %p2600_p6 }
  0x7b   : > { %2610 = shalt.err (!%p2607_p8)
}
  0x7c   : > { %s3512_s11 = smov 8   ;;  %s3513_s14 = smov 128  }
  0x7d   : > { %2434 = dma.hbm_to_vmem [thread:$0]  (!%p3509_p4), %s3448_s10, 512, %s495_s24, [#allocation10], %s3513_s14, %s3513_s14, %s3512_s11  }
  0x7e   : > { %s3514_s16 = sld [smem:[#allocation26_spill]]  ;;  %s527_s20 = scalar_lea.vmem [#allocation3], %s2999_s17 }
  0x7f   : > { %s534_s13 = sshll.u32 %s527_s20, 4  ;;  %s3515_s15 = sand.u32 1, %s2773_s26   ;;  %s535_s13 = int_to_ptr.vmem [resolvable:$true] %s534_s13 }
  0x80   : > { %s524_s9 = scalar_lea.sflag [#allocation4], %s3515_s15  ;;  %p3516_p0 = scmp.ne.s32.totalorder %s3508_s27, 0 }
  0x84   : > { %s3072_s22 = scalar_lea.hbm %s3514_s16, %s2995_s21  ;;  %s2616_s14 = scalar_lea.hbm %s3514_s16, 256 }
  0x85   : > { %s2611_s29 = scalar_lea.hbm %s3072_s22, 128  ;;  %p2617_p4 = scmp.lt.u32.totalorder %s3072_s22, %s3514_s16 }
  0x86   : > { %p2612_p9 = scmp.ne.s32.totalorder %s3072_s22, %s2611_s29  ;;  %p2618_p7 = scmp.lt.u32.totalorder %s2616_s14, %s2611_s29 }
  0x87   : > { %p2620_p3 = scmp.lt.u32.totalorder %s2611_s29, %s3072_s22 }
  0x88   : > { %p2614_p11 = pnand %p2612_p9, %p3516_p0  ;;  %p2619_p2 = por %p2618_p7, %p2617_p4 }
  0x8a   : > { %p2615_p13 = pneg %p2614_p11  ;;  %p2621_p5 = por %p2620_p3, %p2619_p2 }
  0x8c   : > { %p2622_p12 = pnand %p2621_p5, %p2615_p13 }
  0x8e   : > { %2625 = shalt.err (!%p2622_p12)
}
  0x8f   : > { %s2626_s23 = scalar_lea.vmem %s535_s13, 128  ;;  %s2784_s20 = smov [#allocation3]  }
  0x90   : > { %p2627_p1 = scmp.ne.s32.totalorder %s535_s13, %s2626_s23  ;;  %s2631_s15 = sshll.u32 %s2784_s20, 4  ;;  %s2632_s15 = int_to_ptr.vmem [resolvable:$false] %s2631_s15 }
  0x91   : > { %s2633_s24 = scalar_lea.vmem %s2632_s15, 256  ;;  %p2634_p8 = scmp.lt.s32.totalorder %s535_s13, %s2632_s15 }
  0x92   : > { %p2629_p6 = pnand %p2627_p1, %p3516_p0  ;;  %p2635_p9 = scmp.lt.s32.totalorder %s2633_s24, %s2626_s23 }
  0x94   : > { %p2630_p10 = pneg %p2629_p6  ;;  %p2636_p11 = por %p2635_p9, %p2634_p8 }
  0x96   : > { %p2637_p4 = pnand %p2636_p11, %p2630_p10 }
  0x98   : > { %2640 = shalt.err (!%p2637_p4)
}
  0x99   : > { %p3517_p7 = scmp.ne.s32.totalorder %s3505_s1, 0  ;;  %s3098_s14 = scalar_lea.hbm %s3440_s2, %s2995_s21 }
  0x9a   : > { %s563_s19 = scalar_lea.vmem [#allocation8], %s2999_s17  ;;  %s2641_s23 = scalar_lea.hbm %s3098_s14, 128 }
  0x9b   : > { %2438 = dma.hbm_to_vmem [thread:$0]  (!%p3517_p7), %s3072_s22, 128, %s535_s13, %s524_s9  }
  0x9c   : > { %s570_s7 = sshll.u32 %s563_s19, 4  ;;  %p2642_p13 = scmp.ne.s32.totalorder %s3098_s14, %s2641_s23  ;;  %s571_s7 = int_to_ptr.vmem [resolvable:$true] %s570_s7 }
  0x9d   : > { %s2646_s9 = scalar_lea.hbm %s3440_s2, 256  ;;  %p2647_p5 = scmp.lt.u32.totalorder %s3098_s14, %s3440_s2 }
  0x9e   : > { %p2644_p2 = pnand %p2642_p13, %p3516_p0  ;;  %p2648_p12 = scmp.lt.u32.totalorder %s2646_s9, %s2641_s23 }
  0x9f   : > { %p2650_p6 = scmp.lt.u32.totalorder %s2641_s23, %s3098_s14 }
  0xa0   : > { %p2645_p3 = pneg %p2644_p2  ;;  %p2649_p1 = por %p2648_p12, %p2647_p5 }
  0xa2   : > { %p2651_p10 = por %p2650_p6, %p2649_p1 }
  0xa4   : > { %p2652_p8 = pnand %p2651_p10, %p2645_p3 }
  0xa6   : > { %2655 = shalt.err (!%p2652_p8)
}
  0xa7   : > { %s2656_s17 = scalar_lea.vmem %s571_s7, 128  ;;  %s2785_s21 = smov [#allocation8]  }
  0xa8   : > { %p2657_p9 = scmp.ne.s32.totalorder %s571_s7, %s2656_s17  ;;  %s2661_s24 = sshll.u32 %s2785_s21, 4  ;;  %s2662_s24 = int_to_ptr.vmem [resolvable:$false] %s2661_s24 }
  0xa9   : > { %s2663_s29 = scalar_lea.vmem %s2662_s24, 256  ;;  %p2664_p13 = scmp.lt.s32.totalorder %s571_s7, %s2662_s24 }
  0xaa   : > { %p2659_p11 = pnand %p2657_p9, %p3516_p0  ;;  %p2665_p2 = scmp.lt.s32.totalorder %s2663_s29, %s2656_s17 }
  0xac   : > { %p2660_p4 = pneg %p2659_p11  ;;  %p2666_p7 = por %p2665_p2, %p2664_p13 }
  0xae   : > { %p2667_p5 = pnand %p2666_p7, %p2660_p4 }
  0xb0   : > { %2670 = shalt.err (!%p2667_p5)
}
  0xb1   : > { %p3518_p12 = scmp.ne.s32.totalorder %s3505_s1, 0  ;;  %p3519_p3 = scmp.ne.s32.totalorder %s3497_s18, 0 }
  0xb2   : > { %s3122_s27 = sand.u32 (!%p3519_p3), 1, %s2769_s25   ;;  %p3520_p0 = scmp.ne.s32.totalorder (!%p3519_p3), %s3494_s0, 0 }
  0xb3   : > { %2444 = dma.hbm_to_vmem [thread:$0]  (!%p3518_p12), %s3098_s14, 128, %s571_s7, %s3015_s30  }
  0xb4   : > { %586 = sbr.rel (%p3519_p3) target bundleno = 2700 (0xa8c), region = 84  ;;  %s3125_s11 = sshll.u32 (!%p3519_p3), %s3122_s27, 3 }
  0xb5   : > { %s589_s19 = scalar_lea.sflag (!%p3519_p3), [#allocation4], %s3122_s27  ;;  %s592_s23 = scalar_lea.vmem (!%p3519_p3), [#allocation3], %s3125_s11 }
  0xbb   : > { %2744 = dma.done.wait (%p3520_p0), %s589_s19, 128  }
  0xbc   : > { %2746 = vsyncadd (%p3520_p0), %s589_s19, 4294967168  ;;  %s597_s18 = sand.u32 1, %s2910_s28   ;;  %s601_s1 = scalar_lea.vmem [#allocation6], %s3125_s11 }
  0xbd   : > { %s598_s30 = scalar_lea.sflag [#allocation7], %s597_s18 }
  0xbe   : > { %2748 = dma.done.wait (%p3520_p0), %s598_s30, 256  }
  0xbf   : > { %2750 = vsyncadd (%p3520_p0), %s598_s30, 4294967040  ;;  %s610_s14 = scalar_lea.vmem [#allocation8], %s3125_s11  ;;  %p3521_p7 = scmp.eq.s32.totalorder %s2910_s28, 0 }
  0xc1   : > { %2752 = dma.done.wait (%p3521_p7), [#allocation10], 1024   ;;  %p3522_p1 = pmov %p3521_p7 }
  0xc2   : > { %v2786_v0 = vmov 0.0|0.0   ;;  %vm2787_vm0 = vmmov 0   ;;  %v2788_v1 = vmov 0.0   ;;  %v697_v2 = vld [vmem:[%s3442_s4] sm:$0xff]  ;;  %v698_v3 = vld [vmem:[%s3442_s4 + $0x8] sm:$0xff]  ;;  %v699_v4 = vld [vmem:[%s3442_s4 + $0x10] sm:$0xff] }
  0xc3   : > { %2754 = vsyncadd (%p3522_p1), [#allocation10], 4294966272  ;;  %2368 = vmatprep.subr.bf16.mxu1 %v2786_v0  ;;  %2262 = vmatprep.mubr.msk.f32.mxu1 %vm2787_vm0, %v2788_v1  ;;  %v2369_v5 = vpack.c.bf16 %v698_v3, %v697_v2  ;;  %v700_v6 = vld [vmem:[%s3442_s4 + $0x18] sm:$0xff]  ;;  %v775_v8 = vld [vmem:[%s3443_s5] sm:$0xff]  ;;  %vm701_vm1 = vcmask 261120   ;;  %vm931_vm2 = vcmask 64512  }
  0xc4   : > { %2380 = vmatprep.subr.bf16.mxu0 %v2786_v0  ;;  %2284 = vmatprep.mubr.msk.f32.mxu0 %vm2787_vm0, %v2788_v1  ;;  %v2372_v7 = vpack.c.bf16 %v700_v6, %v699_v4  ;;  %v776_v9 = vld [vmem:[%s3443_s5 + $0x8] sm:$0xff]  ;;  %v777_v12 = vld [vmem:[%s3443_s5 + $0x10] sm:$0xff]  ;;  %v778_v13 = vld [vmem:[%s3443_s5 + $0x18] sm:$0xff]  ;;  %s2789_s21 = smov 112   ;;  %s2790_s24 = smov 120   ;;  %v2792_v36 = vmov 0  }
  0xc5   : > { %2370 = vmatpush3.bf16.msra.mxu1 %v2369_v5  ;;  %v3169_v10 = vld [vmem:[%s592_s23] sm:$0xff]  ;;  %v2375_v11 = vpack.c.bf16 %v776_v9, %v775_v8  ;;  %v2378_v14 = vpack.c.bf16 %v778_v13, %v777_v12  ;;  %v695_v15 = vld [vmem:[%s601_s1] sm:$0xff]  ;;  %p688_p6 = scmp.lt.s32.totalorder %s2910_s28, 1  ;;  %s2167_s7 = sshll.u32 %s3122_s27, 5  ;;  %vm1273_vm5 = vcmask 130112   ;;  %vm1448_vm6 = vcmask 195712  }
  0xc6   : > { %2371 = vmatprep.subr.bf16.mxu1 %v2786_v0  ;;  %v852_v16 = vld [vmem:[%s3444_s6] sm:$0xff]  ;;  %v853_v17 = vld [vmem:[%s3444_s6 + $0x8] sm:$0xff]  ;;  %v854_v18 = vld [vmem:[%s3444_s6 + $0x10] sm:$0xff]  ;;  %s3270_s23 = scalar_lea.vmem [#allocation13], %s2167_s7  ;;  %s2793_s20 = smov 8   ;;  %vm1623_vm7 = vcmask 261312  }
  0xc7   : > { %v2381_v19 = vpack.c.bf16 %v853_v17, %v852_v16  ;;  %v855_v20 = vld [vmem:[%s3444_s6 + $0x18] sm:$0xff]  ;;  %v696_v22 = vld [vmem:[%s610_s14] sm:$0xff]  ;;  %s2791_s14 = smov 104   ;;  %s2794_s15 = smov 16   ;;  %vm1833_vm8 = vcmask 523264  }
  0xc8   : > { %v2384_v21 = vpack.c.bf16 %v855_v20, %v854_v18  ;;  %s689_s29 = scalar_select %p688_p6, %s2910_s28, 1 }
  0xc9   : > { %2373 = vmatpush3.bf16.msra.mxu1 %v2372_v7  ;;  %2382 = vmatpush3.bf16.msra.mxu0 %v2381_v19  ;;  %s2795_s9 = smov 24   ;;  %s3525_s13 = sld [smem:[#allocation29_spill]] }
  0xca   : > { %2374 = vmatprep.subr.bf16.mxu1 %v2786_v0  ;;  %2383 = vmatprep.subr.bf16.mxu0 %v2786_v0  ;;  %s2168_s19 = sshll.u32 %s689_s29, 1  ;;  %s3528_s7 = sld [smem:[#allocation25_spill]] }
  0xcb   : > { %s691_s0 = scalar_lea.vmem %s3441_s3, %s2168_s19  ;;  %s3526_s19 = sld [smem:[#allocation30_spill]] }
  0xcc   : > { %2263 = vmatmul.mubr.msk.f32.vlgmr.msra.gmra.mrb[0].mxu1 %vm701_vm1, %v3169_v10  ;;  %v929_v35 = vld [vmem:[%s691_s0] sm:$0x3]  ;;  %s3527_s0 = sld [smem:[#allocation31_spill]]  ;;  %s3529_s1 = sld [smem:[#allocation35_spill]] }
  0xcd   : > { %2376 = vmatpush3.bf16.msra.mxu1 %v2375_v11  ;;  %2273 = vmatprep.mubr.msk.f32.mxu1 %vm2787_vm0, %v2788_v1  ;;  %vm930_vm3 = vnez %v929_v35  ;;  %v1628_v35 = vld [vmem:[#allocation9 + $0x10] sm:$0xff] }
  0xce   : > { %2377 = vmatprep.subr.bf16.mxu1 %v2786_v0  ;;  %2385 = vmatpush3.bf16.msra.mxu0 %v2384_v21  ;;  %v1008_v37 = vsel %vm930_vm3, 16843009, %v2792_v36  ;;  %v1629_v36 = vld [vmem:[#allocation9 + $0x18] sm:$0xff] }
  0xcf   : > { %2297 = vmatprep.subr.mxu0 %v2788_v1  ;;  %v1009_v38 = vunpack.c.0.s8 %v1008_v37  ;;  %v2390_v37 = vpack.c.bf16 %v1629_v36, %v1628_v35 }
  0xd0   : > { %p3530_p8 = scmp.ne.s32.totalorder %s3528_s7, 0 }
  0xd1   : > { %2379 = vmatpush3.bf16.msra.mxu1 %v2378_v14  ;;  %2285 = vmatmul.mubr.msk.f32.vlgmr.msra.gmra.mrb[0].mxu0 %vm701_vm1, %v696_v22  ;;  %vm3243_vm4 = vcmp.ne.s32.totalorder %v1009_v38, 0 }
  0xd2   : > { %2287 = vmatprep.subr.mxu1 %v2788_v1  ;;  %2299 = vmatprep.mubr.msk.f32.mxu0 %vm2787_vm0, %v2788_v1 }
  0xd4   : > { %2274 = vmatmul.mubr.msk.f32.vlgmr.msra.gmra.mrb[2].mxu1 %vm701_vm1, %v695_v15 }
  0xd5   : > { %2289 = vmatprep.mubr.msk.f32.mxu1 %vm2787_vm0, %v2788_v1 }
 0x19f   : > { %v771_v23 = vpop.f32.mrb[0].mxu1 }
 0x1a0   : > { %v2264_v24 = vpop.f32.mrb[1].mxu1 }
 0x1a4   : > { %v3219_v27 = vpop.f32.mrb[0].mxu0 }
 0x1a5   : > { %v2286_v28 = vpop.f32.mrb[1].mxu0 }
 0x1a7   : > { %v848_v25 = vpop.f32.mrb[2].mxu1 }
 0x1a8   : > { %1277 = vrot.lane.b32.xlu1 %v848_v25, %s2789_s21  ;;  %1101 = vrot.lane.b32.xlu0 %v848_v25, %s2790_s24  ;;  %v2275_v26 = vpop.f32.mrb[3].mxu1 }
 0x1a9   : > { %2288 = vmatpush3.xpose.msk.msra.mxu1 %vm931_vm2, %v848_v25 }
 0x1aa   : > { %2292 = vmatprep.subr.mxu1 %v2788_v1 }
 0x1ac   : > { %2290 = vmatmul.mubr.msk.f32.vlgmr.msra.gmra.mrb[4].mxu1 %vm931_vm2, %v771_v23  ;;  %1275 = vrot.lane.b32.xlu1 %v771_v23, %s2789_s21 }
 0x1ad   : > { %1099 = vrot.lane.b32.xlu0 %v771_v23, %s2790_s24  ;;  %2294 = vmatprep.mubr.msk.f32.mxu1 %vm2787_vm0, %v2788_v1 }
 0x1ae   : > { %2293 = vmatpush3.msra.mxu1 %v3219_v27 }
 0x1af   : > { %2302 = vmatprep.subr.mxu1 %v2788_v1 }
 0x1b0   : > { %1450 = vrot.lane.b32.xlu1 %v771_v23, %s2791_s14 }
 0x1b1   : > { %1452 = vrot.lane.b32.xlu0 %v848_v25, %s2791_s14 }
 0x21a   : > { %v1102_v29 = vpop.permute.xlu0 %1101  ;;  %v1278_v30 = vpop.permute.xlu1 %1277 }
 0x21b   : > { %2298 = vmatpush3.xpose.msk.msra.mxu0 %vm931_vm2, %v1102_v29 }
 0x21c   : > { %2307 = vmatprep.subr.mxu0 %v2788_v1 }
 0x21e   : > { %v1276_v32 = vpop.permute.xlu1 %1275 }
 0x21f   : > { %v1100_v31 = vpop.permute.xlu0 %1099 }
 0x220   : > { %2300 = vmatmul.mubr.msk.f32.vlgmr.msra.gmra.mrb[2].mxu0 %vm931_vm2, %v1100_v31 }
 0x221   : > { %2308 = vmatpush3.xpose.msk.msra.mxu0 %vm931_vm2, %v1278_v30  ;;  %2309 = vmatprep.mubr.msk.f32.mxu0 %vm2787_vm0, %v2788_v1 }
 0x222   : > { %2317 = vmatprep.subr.mxu0 %v2788_v1  ;;  %v1451_v34 = vpop.permute.xlu1 %1450 }
 0x223   : > { %v1453_v33 = vpop.permute.xlu0 %1452 }
 0x224   : > { %2310 = vmatmul.mubr.msk.f32.vlgmr.msra.gmra.mrb[4].mxu0 %vm931_vm2, %v1276_v32  ;;  %v1626_v32 = vld [vmem:[#allocation9] sm:$0xff] }
 0x225   : > { %2318 = vmatpush3.xpose.msk.msra.mxu0 %vm931_vm2, %v1453_v33  ;;  %2319 = vmatprep.mubr.msk.f32.mxu0 %vm2787_vm0, %v2788_v1  ;;  %v1627_v33 = vld [vmem:[#allocation9 + $0x8] sm:$0xff] }
 0x226   : > { %2386 = vmatprep.subr.bf16.mxu0 %v2786_v0 }
 0x228   : > { %2320 = vmatmul.mubr.msk.f32.vlgmr.msra.gmra.mrb[6].mxu0 %vm931_vm2, %v1451_v34  ;;  %v2387_v34 = vpack.c.bf16 %v1627_v33, %v1626_v32 }
 0x229   : > { %2335 = vmatprep.mubr.msk.f32.mxu0 %vm2787_vm0, %v2788_v1 }
 0x22a   : > { %2388 = vmatpush3.bf16.msra.mxu0 %v2387_v34 }
 0x22b   : > { %2389 = vmatprep.subr.bf16.mxu0 %v2786_v0 }
 0x22e   : > { %2391 = vmatpush3.bf16.msra.mxu0 %v2390_v37 }
 0x22f   : > { %2398 = vmatprep.subr.bf16.mxu0 %v2786_v0 }
 0x27f   : > { %v1004_v40 = vpop.f32.mrb[4].mxu1 }
 0x280   : > { %v1011_v41 = vsel %vm3243_vm4, %v1004_v40, -1e+09  ;;  %v2291_v42 = vpop.f32.mrb[5].mxu1 }
 0x281   : > { %v1012_v43 = vsel %vm931_vm2, %v1011_v41, -inf }
 0x282   : > { %1013 = vmax.xlane.f32.xlu0 %v1012_v43 }
 0x2f3   : > { %v1173_v44 = vpop.f32.mrb[2].mxu0 }
 0x2f4   : > { %v1177_v45 = vsel %vm3243_vm4, %v1173_v44, -1e+09  ;;  %v2301_v46 = vpop.f32.mrb[3].mxu0 }
 0x2f5   : > { %v1178_v47 = vsel %vm931_vm2, %v1177_v45, -inf }
 0x2f6   : > { %1179 = vmax.xlane.f32.xlu1 %v1178_v47 }
 0x2f7   : > { %v1349_v48 = vpop.f32.mrb[4].mxu0 }
 0x2f8   : > { %v1353_v49 = vsel %vm3243_vm4, %v1349_v48, -1e+09  ;;  %v2311_v50 = vpop.f32.mrb[5].mxu0 }
 0x2f9   : > { %v1354_v51 = vsel %vm931_vm2, %v1353_v49, -inf }
 0x2fa   : > { %1355 = vmax.xlane.f32.xlu0 %v1354_v51 }
 0x2fb   : > { %v1524_v52 = vpop.f32.mrb[6].mxu0 }
 0x2fc   : > { %v1528_v53 = vsel %vm3243_vm4, %v1524_v52, -1e+09  ;;  %v2321_v54 = vpop.f32.mrb[7].mxu0 }
 0x2fd   : > { %v1529_v55 = vsel %vm931_vm2, %v1528_v53, -inf }
 0x2fe   : > { %1530 = vmax.xlane.f32.xlu0 %v1529_v55 }
 0x307   : > { %1193 = vrot.lane.b32.xlu1 %v3219_v27, %s2790_s24 }
 0x30f   : > { %v1014_v56 = vpop.xlane.xlu0 %1013 }
 0x310   : > { %v1015_v57 = vsub.f32 %v1011_v41, %v1014_v56 }
 0x312   : > { %v1016_v58 = vmul.f32 1.442695, %v1015_v57  ;;  %v1733_v57 = vld [vmem:[#allocation11] sm:$0xff] }
 0x314   : > { %2505 = vpow2.f32 %v1016_v58  ;;  %v1734_v58 = vld [vmem:[#allocation11 + $0x8] sm:$0xff] }
 0x31e   : > { %v2506_v59 = vpop.eup %2505 }
 0x31f   : > { %v1018_v60 = vsel %vm931_vm2, %v2506_v59, 0.0 }
 0x32b   : > { %1019 = vadd.xlane.f32.xlu1 %v1018_v60  ;;  %v1736_v60 = vld [vmem:[#allocation11 + $0x18] sm:$0xff] }
 0x383   : > { %v1180_v61 = vpop.xlane.xlu1 %1179 }
 0x384   : > { %v1181_v62 = vsub.f32 %v1177_v45, %v1180_v61  ;;  %v1818_v61 = vld [vmem:[%s3450_s12] sm:$0xff] }
 0x386   : > { %v1182_v63 = vmul.f32 1.442695, %v1181_v62  ;;  %v1819_v62 = vld [vmem:[%s3450_s12 + $0x8] sm:$0xff] }
 0x387   : > { %v1356_v2 = vpop.xlane.xlu0 %1355  ;;  %v1194_v15 = vpop.permute.xlu1 %1193 }
 0x388   : > { %2507 = vpow2.f32 %v1182_v63  ;;  %v1357_v3 = vsub.f32 %v1353_v49, %v1356_v2  ;;  %v1820_v63 = vld [vmem:[%s3450_s12 + $0x10] sm:$0xff]  ;;  %v2399_v2 = vpack.c.bf16 %v1819_v62, %v1818_v61 }
 0x38a   : > { %v1358_v4 = vmul.f32 1.442695, %v1357_v3  ;;  %v1821_v3 = vld [vmem:[%s3450_s12 + $0x18] sm:$0xff] }
 0x38b   : > { %v1531_v5 = vpop.xlane.xlu0 %1530 }
 0x38c   : > { %2509 = vpow2.f32 %v1358_v4  ;;  %v1532_v6 = vsub.f32 %v1528_v53, %v1531_v5  ;;  %v2402_v4 = vpack.c.bf16 %v1821_v3, %v1820_v63  ;;  %v1822_v5 = vld [vmem:[%s3450_s12 + $0x20] sm:$0xff] }
 0x38e   : > { %v1533_v7 = vmul.f32 1.442695, %v1532_v6  ;;  %v1823_v6 = vld [vmem:[%s3450_s12 + $0x28] sm:$0xff] }
 0x390   : > { %2511 = vpow2.f32 %v1533_v7  ;;  %v2405_v7 = vpack.c.bf16 %v1823_v6, %v1822_v5 }
 0x392   : > { %v2508_v8 = vpop.eup %2507 }
 0x393   : > { %v1184_v9 = vsel %vm931_vm2, %v2508_v8, 0.0 }
 0x394   : > { %1185 = vadd.xlane.f32.xlu0 %v1184_v9 }
 0x396   : > { %v2510_v11 = vpop.eup %2509 }
 0x397   : > { %v1360_v12 = vsel %vm931_vm2, %v2510_v11, 0.0 }
 0x398   : > { %1361 = vadd.xlane.f32.xlu1 %v1360_v12 }
 0x39a   : > { %v2512_v13 = vpop.eup %2511 }
 0x39b   : > { %v1535_v14 = vsel %vm931_vm2, %v2512_v13, 0.0 }
 0x39c   : > { %1536 = vadd.xlane.f32.xlu0 %v1535_v14 }
 0x3a9   : > { %1543 = vrot.lane.b32.xlu1 %v3219_v27, %s2791_s14  ;;  %s2796_s14 = smov [#allocation13]  }
 0x3aa   : > { %s2675_s29 = sshll.u32 %s2796_s14, 4  ;;  %s2676_s29 = int_to_ptr.vmem [resolvable:$false] %s2675_s29 }
 0x3b2   : > { %1368 = vrot.lane.b32.xlu0 %v3219_v27, %s2789_s21  ;;  %s1944_s21 = scalar_lea.sflag [#allocation14], %s3122_s27 }
 0x3b8   : > { %v1020_v16 = vpop.xlane.xlu1 %1019 }
 0x3b9   : > { %2513 = vrcp.f32 %v1020_v16 }
 0x3c3   : > { %v2514_v17 = vpop.eup %2513 }
 0x3c4   : > { %v1023_v18 = vmul.f32 %v2514_v17, %v2506_v59  ;;  %v2393_v59 = vpack.c.bf16 %v1734_v58, %v1733_v57 }
 0x3c6   : > { %1024 = vst.msk [vmem:[%s3270_s23] sm:$0xff] %vm931_vm2, %v1023_v18  ;;  %2295 = vmatmul.mubr.msk.f32.vlgmr.msra.gmra.mrb[6].mxu1 %vm931_vm2, %v1023_v18  ;;  %v1825_v18 = vld [vmem:[%s3450_s12 + $0x38] sm:$0xff] }
 0x3c7   : > { %2303 = vmatpush3.msra.mxu1 %v1194_v15  ;;  %2304 = vmatprep.mubr.msk.f32.mxu1 %vm2787_vm0, %v2788_v1  ;;  %v2189_v15 = vld [vmem:[%s3525_s13] ss:$0 sm:$0xff] }
 0x3c8   : > { %2312 = vmatprep.subr.mxu1 %v2788_v1 }
 0x421   : > { %v1186_v19 = vpop.xlane.xlu0 %1185 }
 0x422   : > { %2515 = vrcp.f32 %v1186_v19 }
 0x425   : > { %v1362_v20 = vpop.xlane.xlu1 %1361 }
 0x426   : > { %2517 = vrcp.f32 %v1362_v20  ;;  %v2190_v20 = vld [vmem:[%s3526_s19] ss:$0 sm:$0xff] }
 0x429   : > { %v1537_v21 = vpop.xlane.xlu0 %1536  ;;  %v1544_v27 = vpop.permute.xlu1 %1543 }
 0x42a   : > { %2519 = vrcp.f32 %v1537_v21 }
 0x42c   : > { %v2516_v22 = vpop.eup %2515 }
 0x42d   : > { %v1189_v23 = vmul.f32 %v2516_v22, %v2508_v8  ;;  %v1369_v24 = vpop.permute.xlu0 %1368 }
 0x42f   : > { %2177 = vst.msk [vmem:[%s3270_s23 + $0x8] sm:$0xff] %vm931_vm2, %v1189_v23  ;;  %2305 = vmatmul.mubr.msk.f32.vlgmr.msra.gmra.mrb[8].mxu1 %vm931_vm2, %v1189_v23 }
 0x430   : > { %v2518_v25 = vpop.eup %2517  ;;  %2313 = vmatpush3.msra.mxu1 %v1369_v24  ;;  %2314 = vmatprep.mubr.msk.f32.mxu1 %vm2787_vm0, %v2788_v1 }
 0x431   : > { %v1365_v26 = vmul.f32 %v2518_v25, %v2510_v11  ;;  %2322 = vmatprep.subr.mxu1 %v2788_v1  ;;  %v2192_v25 = vld [vmem:[%s3527_s0] ss:$0 sm:$0xff] }
 0x433   : > { %2181 = vst.msk [vmem:[%s3270_s23 + $0x10] sm:$0xff] %vm931_vm2, %v1365_v26  ;;  %2315 = vmatmul.mubr.msk.f32.vlgmr.msra.gmra.mrb[10].mxu1 %vm931_vm2, %v1365_v26 }
 0x434   : > { %v2520_v28 = vpop.eup %2519  ;;  %2323 = vmatpush3.msra.mxu1 %v1544_v27  ;;  %2324 = vmatprep.mubr.msk.f32.mxu1 %vm2787_vm0, %v2788_v1 }
 0x435   : > { %v1540_v29 = vmul.f32 %v2520_v28, %v2512_v13  ;;  %2392 = vmatprep.subr.bf16.mxu1 %v2786_v0  ;;  %v2188_v13 = vld [vmem:[%s3446_s8] ss:$0 sm:$0xff] }
 0x437   : > { %2185 = vst.msk [vmem:[%s3270_s23 + $0x18] sm:$0xff] %vm931_vm2, %v1540_v29  ;;  %2325 = vmatmul.mubr.msk.f32.vlgmr.msra.gmra.mrb[12].mxu1 %vm931_vm2, %v1540_v29 }
 0x438   : > { %2346 = vmatprep.mubr.msk.f32.mxu1 %vm2787_vm0, %v2788_v1  ;;  %2394 = vmatpush3.bf16.msra.mxu1 %v2393_v59 }
 0x439   : > { %2395 = vmatprep.subr.bf16.mxu1 %v2786_v0 }
 0x499   : > { %v1094_v30 = vpop.f32.mrb[6].mxu1 }
 0x49a   : > { %1098 = vst.msk [vmem:[#allocation2] sm:$0xff] %vm931_vm2, %v1094_v30  ;;  %v2296_v31 = vpop.f32.mrb[7].mxu1 }
 0x502   : > { %v1265_v38 = vpop.f32.mrb[8].mxu1 }
 0x503   : > { %1270 = vrot.lane.b32.xlu1 %v1265_v38, %s2793_s20  ;;  %v2306_v39 = vpop.f32.mrb[9].mxu1 }
 0x506   : > { %v1440_v40 = vpop.f32.mrb[10].mxu1 }
 0x507   : > { %1445 = vrot.lane.b32.xlu0 %v1440_v40, %s2794_s15  ;;  %v2316_v41 = vpop.f32.mrb[11].mxu1  ;;  %s2203_s15 = sshll.u32 %s2910_s28, 9 }
 0x508   : > { %s3353_s17 = scalar_lea.hbm %s3529_s1, %s2203_s15 }
 0x50a   : > { %v1615_v42 = vpop.f32.mrb[12].mxu1 }
 0x50b   : > { %1620 = vrot.lane.b32.xlu1 %v1615_v42, %s2795_s9  ;;  %v2326_v43 = vpop.f32.mrb[13].mxu1  ;;  %s1970_s9 = sshll.u32 %s3270_s23, 4  ;;  %s2677_s23 = scalar_lea.vmem %s2676_s29, 1024  ;;  %s3355_s9 = int_to_ptr.vmem [resolvable:$true] %s1970_s9 }
 0x50c   : > { %s2671_s24 = scalar_lea.vmem %s3355_s9, 512  ;;  %p2678_p4 = scmp.lt.s32.totalorder %s3355_s9, %s2676_s29 }
 0x50d   : > { %p2672_p10 = scmp.ne.s32.totalorder %s3355_s9, %s2671_s24  ;;  %p2679_p13 = scmp.lt.s32.totalorder %s2677_s23, %s2671_s24 }
 0x50f   : > { %p2673_p9 = pnand %p2672_p10, %p3530_p8  ;;  %p2680_p2 = por %p2679_p13, %p2678_p4 }
 0x511   : > { %p2674_p11 = pneg %p2673_p9 }
 0x513   : > { %p2681_p5 = pnand %p2680_p2, %p2674_p11 }
 0x575   : > { %v1271_v44 = vpop.permute.xlu1 %1270 }
 0x576   : > { %1274 = vst.msk [vmem:[#allocation2] sm:$0xff] %vm1273_vm5, %v1271_v44 }
 0x579   : > { %v1446_v45 = vpop.permute.xlu0 %1445 }
 0x57a   : > { %1449 = vst.msk [vmem:[#allocation2] sm:$0xff] %vm1448_vm6, %v1446_v45 }
 0x57d   : > { %v1621_v46 = vpop.permute.xlu1 %1620 }
 0x57e   : > { %1624 = vst.msk [vmem:[#allocation2] sm:$0xff] %vm1623_vm7, %v1621_v46 }
 0x585   : > { %v1625_v47 = vld [vmem:[#allocation2] sm:$0xff] }
 0x586   : > { %2336 = vmatmul.mubr.msk.f32.vlgmr.msra.gmra.mrb[8].mxu0 %vm701_vm1, %v1625_v47 }
 0x587   : > { %2365 = vmatprep.mubr.msk.f32.mxu0 %vm2787_vm0, %v2788_v1  ;;  %v1735_v1 = vld [vmem:[#allocation11 + $0x10] sm:$0xff]  ;;  %2400 = vmatpush3.bf16.msra.mxu0 %v2399_v2 }
 0x588   : > { %2401 = vmatprep.subr.bf16.mxu0 %v2786_v0 }
 0x58b   : > { %2403 = vmatpush3.bf16.msra.mxu0 %v2402_v4 }
 0x58c   : > { %2404 = vmatprep.subr.bf16.mxu0 %v2786_v0 }
 0x58f   : > { %2406 = vmatpush3.bf16.msra.mxu0 %v2405_v7 }
 0x590   : > { %2407 = vmatprep.subr.bf16.mxu0 %v2786_v0  ;;  %v1824_v0 = vld [vmem:[%s3450_s12 + $0x30] sm:$0xff] }
 0x591   : > { %v2408_v19 = vpack.c.bf16 %v1825_v18, %v1824_v0 }
 0x593   : > { %2409 = vmatpush3.bf16.msra.mxu0 %v2408_v19 }
 0x659   : > { %v1699_v48 = vpop.f32.mrb[8].mxu0 }
 0x65a   : > { %v1700_v49 = vadd.f32 %v1699_v48, %v3169_v10  ;;  %v2337_v50 = vpop.f32.mrb[9].mxu0  ;;  %v2396_v10 = vpack.c.bf16 %v1736_v60, %v1735_v1 }
 0x65c   : > { %v1705_v51 = vsel %vm701_vm1, %v1700_v49, 0.0  ;;  %2397 = vmatpush3.bf16.msra.mxu1 %v2396_v10 }
 0x65d   : > { %1706 = vadd.xlane.f32.xlu0 %v1705_v51 }
 0x6ea   : > { %v1707_v52 = vpop.xlane.xlu0 %1706 }
 0x6eb   : > { %v1709_v53 = vmul.f32 0.03125, %v1707_v52 }
 0x6ed   : > { %v1710_v54 = vsub.f32 %v1700_v49, %v1709_v53 }
 0x6ef   : > { %v1711_v55 = vmul.f32 %v1710_v54, %v1710_v54 }
 0x6f1   : > { %v1712_v56 = vsel %vm701_vm1, %v1711_v55, 0.0 }
 0x6f2   : > { %1713 = vadd.xlane.f32.xlu1 %v1712_v56 }
 0x77f   : > { %v1714_v8 = vpop.xlane.xlu1 %1713 }
 0x780   : > { %v1715_v9 = vmul.f32 0.03125, %v1714_v8 }
 0x782   : > { %v1716_v11 = vadd.f32 1e-06, %v1715_v9 }
 0x784   : > { %2521 = vrsqrt.f32 %v1716_v11 }
 0x78e   : > { %v2522_v12 = vpop.eup %2521 }
 0x78f   : > { %v1718_v14 = vmul.f32 %v2522_v12, %v1710_v54 }
 0x791   : > { %v1725_v16 = vmul.f32 %v2188_v13, %v1718_v14 }
 0x793   : > { %v1732_v17 = vadd.f32 %v2189_v15, %v1725_v16 }
 0x795   : > { %2347 = vmatmul.mubr.msk.f32.vlgmr.msra.gmra.mrb[14].mxu1 %vm701_vm1, %v1732_v17 }
 0x868   : > { %v1813_v21 = vpop.f32.mrb[14].mxu1 }
 0x869   : > { %v1814_v22 = vadd.f32 %v2190_v20, %v1813_v21  ;;  %v2348_v23 = vpop.f32.mrb[15].mxu1 }
 0x86b   : > { %v1817_v24 = vmax.f32 %v1814_v22, 0.0 }
 0x86d   : > { %2366 = vmatmul.mubr.msk.f32.vlgmr.msra.gmra.mrb[10].mxu0 %vm1833_vm8, %v1817_v24 }
 0x940   : > { %v1903_v26 = vpop.f32.mrb[10].mxu0 }
 0x941   : > { %v1904_v27 = vadd.f32 %v2192_v25, %v1903_v26  ;;  %v2367_v28 = vpop.f32.mrb[11].mxu0 }
 0x943   : > { %v1907_v29 = vadd.f32 %v1904_v27, %v1732_v17 }
 0x945   : > { %v1910_v30 = vsel %vm701_vm1, %v1907_v29, 0.0 }
 0x946   : > { %1911 = vadd.xlane.f32.xlu0 %v1910_v30 }
 0x9d3   : > { %v1912_v31 = vpop.xlane.xlu0 %1911 }
 0x9d4   : > { %v1913_v32 = vmul.f32 0.03125, %v1912_v31 }
 0x9d6   : > { %v1914_v33 = vsub.f32 %v1907_v29, %v1913_v32 }
 0x9d8   : > { %v1915_v34 = vmul.f32 %v1914_v33, %v1914_v33 }
 0x9da   : > { %v1916_v35 = vsel %vm701_vm1, %v1915_v34, 0.0 }
 0x9db   : > { %1917 = vadd.xlane.f32.xlu0 %v1916_v35 }
 0x9dc   : > { %2684 = shalt.err (!%p2681_p5)
}
 0x9dd   : > { %s2685_s19 = scalar_lea.hbm %s3353_s17, 512  ;;  %s2689_s0 = scalar_lea.hbm %s3529_s1, 1024 }
 0x9de   : > { %p2686_p12 = scmp.ne.s32.totalorder %s3353_s17, %s2685_s19  ;;  %p2690_p7 = scmp.lt.u32.totalorder %s3353_s17, %s3529_s1 }
 0x9df   : > { %p2691_p1 = scmp.lt.u32.totalorder %s2689_s0, %s2685_s19  ;;  %p2693_p10 = scmp.lt.u32.totalorder %s2685_s19, %s3353_s17 }
 0x9e0   : > { %p2687_p3 = pnand %p2686_p12, %p3530_p8 }
 0x9e1   : > { %p2692_p6 = por %p2691_p1, %p2690_p7 }
 0x9e2   : > { %p2688_p0 = pneg %p2687_p3 }
 0x9e3   : > { %p2694_p9 = por %p2693_p10, %p2692_p6 }
 0x9e5   : > { %p2695_p11 = pnand %p2694_p9, %p2688_p0 }
 0x9e7   : > { %2698 = shalt.err (!%p2695_p11)
}
 0x9e8   : > { %s2797_s13 = smov 128   ;;  %s3531_s29 = sld [smem:[#allocation32_spill]] }
 0x9e9   : > { %2425 = dma.vmem_to_hbm [thread:$0]  (%p3530_p8), %s3355_s9, 512, %s3353_s17, %s1944_s21, %s2797_s13, %s2797_s13, %s2793_s20  }
 0x9ea   : > { %s3532_s18 = sld [smem:[#allocation33_spill]]  ;;  %s2198_s30 = sshll.u32 %s2910_s28, 7 }
 0x9eb   : > { %s680_s0 = scalar_lea.vmem [#allocation12], %s3125_s11  ;;  %s3533_s17 = sld [smem:[#allocation34_spill]] }
 0x9ec   : > { %s1957_s15 = sshll.u32 %s680_s0, 4  ;;  %s1939_s22 = scalar_lea.sflag [#allocation5], %s3122_s27  ;;  %s3395_s15 = int_to_ptr.vmem [resolvable:$true] %s1957_s15 }
 0x9ed   : > { %s2699_s13 = scalar_lea.vmem %s3395_s15, 128  ;;  %s2798_s28 = smov [#allocation12]  }
 0x9ee   : > { %v2194_v40 = vld [vmem:[%s3531_s29] ss:$0 sm:$0xff]  ;;  %p2700_p4 = scmp.ne.s32.totalorder %s3395_s15, %s2699_s13  ;;  %s2703_s11 = sshll.u32 %s2798_s28, 4  ;;  %s2704_s11 = int_to_ptr.vmem [resolvable:$false] %s2703_s11 }
 0x9ef   : > { %s2705_s24 = scalar_lea.vmem %s2704_s11, 256  ;;  %p2706_p5 = scmp.lt.s32.totalorder %s3395_s15, %s2704_s11 }
 0x9f0   : > { %v2195_v42 = vld [vmem:[%s3532_s18] ss:$0 sm:$0xff]  ;;  %p2701_p13 = pnand %p2700_p4, %p3530_p8  ;;  %p2707_p12 = scmp.lt.s32.totalorder %s2705_s24, %s2699_s13 }
 0x9f1   : > { %s3393_s21 = scalar_lea.hbm %s3533_s17, %s2198_s30 }
 0x9f2   : > { %p2702_p2 = pneg %p2701_p13  ;;  %p2708_p3 = por %p2707_p12, %p2706_p5 }
 0x9f4   : > { %p2709_p0 = pnand %p2708_p3, %p2702_p2 }
 0xa68   : > { %v1918_v36 = vpop.xlane.xlu0 %1917 }
 0xa69   : > { %v1919_v37 = vmul.f32 0.03125, %v1918_v36 }
 0xa6b   : > { %v1920_v38 = vadd.f32 1e-06, %v1919_v37 }
 0xa6d   : > { %2523 = vrsqrt.f32 %v1920_v38 }
 0xa77   : > { %v2524_v39 = vpop.eup %2523 }
 0xa78   : > { %v1922_v41 = vmul.f32 %v2524_v39, %v1914_v33 }
 0xa7a   : > { %v1929_v43 = vmul.f32 %v2194_v40, %v1922_v41 }
 0xa7c   : > { %v1936_v44 = vadd.f32 %v2195_v42, %v1929_v43 }
 0xa7e   : > { %1937 = vst.msk [vmem:[%s680_s0] sm:$0xff] %vm701_vm1, %v1936_v44 }
 0xa7f   : > { %2712 = shalt.err (!%p2709_p0)
}
 0xa80   : > { %s2713_s27 = scalar_lea.hbm %s3393_s21, 128  ;;  %s2717_s23 = scalar_lea.hbm %s3533_s17, 256 }
 0xa81   : > { %p2714_p7 = scmp.ne.s32.totalorder %s3393_s21, %s2713_s27  ;;  %p2718_p10 = scmp.lt.u32.totalorder %s3393_s21, %s3533_s17 }
 0xa82   : > { %p2719_p9 = scmp.lt.u32.totalorder %s2717_s23, %s2713_s27  ;;  %p2721_p4 = scmp.lt.u32.totalorder %s2713_s27, %s3393_s21 }
 0xa83   : > { %p2715_p1 = pnand %p2714_p7, %p3530_p8 }
 0xa84   : > { %p2720_p11 = por %p2719_p9, %p2718_p10 }
 0xa85   : > { %p2716_p6 = pneg %p2715_p1 }
 0xa86   : > { %p2722_p13 = por %p2721_p4, %p2720_p11 }
 0xa88   : > { %p2723_p2 = pnand %p2722_p13, %p2716_p6 }
 0xa8a   : > { %2726 = shalt.err (!%p2723_p2)
}
 0xa8b   : > { %2424 = dma.vmem_to_hbm [thread:$0]  (%p3530_p8), %s3395_s15, 128, %s3393_s21, %s1939_s22  }
 0xa8c PF: > { %s3534_s30 = sld [smem:[#allocation20_spill]]  ;;  %s3535_s0 = sld [smem:[#allocation22_spill]] }
 0xa8d   : > { %s3536_s20 = sld [smem:[#allocation21_spill]] }
 0xa92   : > { %s1985_s9 = sand.u32 1, %s3534_s30   ;;  %p3537_p5 = scmp.ne.s32.totalorder %s3535_s0, 0 }
 0xa93   : > { %p3538_p12 = scmp.ge.s32.totalorder %s3536_s20, 2  ;;  %s1986_s13 = scalar_lea.sflag [#allocation5], %s1985_s9 }
 0xa95   : > { %p2446_p3 = pnand %p3538_p12, %p3537_p5 }
 0xa97   : > { %2756 = dma.done.wait (!%p2446_p3), %s1986_s13, 128  }
 0xa98   : > { %2758 = vsyncadd (!%p2446_p3), %s1986_s13, 4294967168  ;;  %s1995_s28 = scalar_lea.sflag [#allocation14], %s1985_s9 }
 0xa99   : > { %2760 = dma.done.wait (!%p2446_p3), %s1995_s28, 512  }
 0xa9a   : > { %2762 = vsyncadd (!%p2446_p3), %s1995_s28, 4294966784  ;;  %s3539_s27 = sld [smem:[#allocation23_spill]]  ;;  %s3540_s7 = sld [smem:[#allocation24_spill]] }
 0xa9b   : > { %s3541_s24 = smov %s2769_s25  ;;  %s3542_s25 = smov %s2773_s26 }
 0xaa0   : > { %p38_p8 = scmp.ge.s32.totalorder %s3539_s27, 4   ;;  %s3543_s26 = smov %s3540_s7 }
 0xaa2   :  { %40 = sbr.rel (!%p38_p8) target bundleno = 21 (0x15), region = 184 }
 0xaa9   :  { %2000 = vsyncpa [#allocation4], 1 }
 0xaaa   :  { %2002 = vsyncpa [#allocation4 + $0x1], 1 }
 0xaab   :  { %2003 = vsyncpa [#allocation7], 1 }
 0xaac   :  { %2005 = vsyncpa [#allocation7 + $0x1], 1 }
 0xaad   :  { %2006 = vsyncpa [#allocation10], 1 }
 0xaae   :  { %2007 = vsyncpa [#allocation5], 1 }
 0xaaf   :  { %2009 = vsyncpa [#allocation5 + $0x1], 1 }
 0xab0   :  { %2010 = vsyncpa [#allocation14], 1 }
 0xab1   :  { %2012 = vsyncpa [#allocation14 + $0x1], 1 }

// kernel: tpu_custom_call.1
= control target key start
LH: loop header
LB: loop body
LE: loop exit
PB: predicated region body
PF: predicated region fallthrough
CT: control target
= control target key end

     0   :  { %s3438_s0 = inlined_call_operand.hbm [shape: f32[2,8,32], index: 0, kind: input, shape index: {}]   ;;  %s3439_s1 = inlined_call_operand.hbm [shape: f32[2,8,32], index: 1, kind: input, shape index: {}]   ;;  %s3440_s2 = inlined_call_operand.hbm [shape: f32[2,8,32], index: 2, kind: input, shape index: {}]   ;;  %s3441_s3 = inlined_call_operand.vmem [shape: s8[2,8,8], index: 3, kind: input, shape index: {}]   ;;  %s3442_s4 = inlined_call_operand.vmem [shape: f32[32,32], index: 4, kind: input, shape index: {}]   ;;  %s3443_s5 = inlined_call_operand.vmem [shape: f32[32,32], index: 5, kind: input, shape index: {}]   ;;  %s3444_s6 = inlined_call_operand.vmem [shape: f32[32,32], index: 6, kind: input, shape index: {}]   ;;  %s3445_s7 = inlined_call_operand.hbm [shape: f32[32,32], index: 7, kind: input, shape index: {}]   ;;  %s3446_s8 = inlined_call_operand.vmem [shape: f32[1,32], index: 8, kind: input, shape index: {}]   ;;  %s3447_s9 = inlined_call_operand.vmem [shape: f32[1,32], index: 9, kind: input, shape index: {}]   ;;  %s3448_s10 = inlined_call_operand.hbm [shape: f32[32,64], index: 10, kind: input, shape index: {}]   ;;  %s3449_s11 = inlined_call_operand.vmem [shape: f32[1,64], index: 11, kind: input, shape index: {}]   ;;  %s3450_s12 = inlined_call_operand.vmem [shape: f32[64,32], index: 12, kind: input, shape index: {}]   ;;  %s3451_s13 = inlined_call_operand.vmem [shape: f32[1,32], index: 13, kind: input, shape index: {}]   ;;  %s3452_s14 = inlined_call_operand.vmem [shape: f32[1,32], index: 14, kind: input, shape index: {}]   ;;  %s3453_s15 = inlined_call_operand.vmem [shape: f32[1,32], index: 15, kind: input, shape index: {}]   ;;  %s3454_s16 = inlined_call_operand.hbm [shape: f32[2,8,32], index: 16, kind: output, shape index: {0}]   ;;  %s3455_s17 = inlined_call_operand.hbm [shape: f32[2,4,8,8], index: 17, kind: output, shape index: {1}]  }
   0x1   :  { %3482 = sst [smem:[#allocation26_spill]] %s3438_s0 }
   0x2   :  { %3483 = sst [smem:[#allocation27_spill]] %s3439_s1 }
   0x3   :  { %3484 = sst [smem:[#allocation28_spill]] %s3445_s7 }
   0x4   :  { %3485 = sst [smem:[#allocation29_spill]] %s3447_s9 }
   0x5   :  { %3486 = sst [smem:[#allocation30_spill]] %s3449_s11 }
   0x6   :  { %3487 = sst [smem:[#allocation31_spill]] %s3451_s13 }
   0x7   :  { %3488 = sst [smem:[#allocation32_spill]] %s3452_s14 }
   0x8   :  { %3489 = sst [smem:[#allocation33_spill]] %s3453_s15 }
   0x9   :  { %3490 = sst [smem:[#allocation34_spill]] %s3454_s16 }
   0xa   :  { %3491 = sst [smem:[#allocation35_spill]] %s3455_s17 }
   0xb   :  { %23 = vsyncpa [#allocation4], 0 }
   0xc   :  { %25 = vsyncpa [#allocation4 + $0x1], 0 }
   0xd   :  { %26 = vsyncpa [#allocation7], 0 }
   0xe   :  { %28 = vsyncpa [#allocation7 + $0x1], 0 }
   0xf   :  { %29 = vsyncpa [#allocation10], 0 }
  0x10   :  { %30 = vsyncpa [#allocation5], 0 }
  0x11   :  { %32 = vsyncpa [#allocation5 + $0x1], 0 }
  0x12   :  { %33 = vsyncpa [#allocation14], 0 }
  0x13   :  { %35 = vsyncpa [#allocation14 + $0x1], 0  ;;  %s2889_s24 = smov 0   ;;  %s2891_s25 = smov 0  }
  0x14   :  { %s2893_s26 = smov 0   ;;  %s2895_s27 = smov 0  }
  0x15 LB: > { %3492 = sst [smem:[#allocation20_spill]] %s2765_s24  ;;  %s2910_s28 = sadd.s32 4294967295, %s2777_s27   ;;  %s2777_s27 = sphi %s2895_s27, %s3539_s27   ;;  %s2773_s26 = sphi %s2893_s26, %s3543_s26   ;;  %s2769_s25 = sphi %s2891_s25, %s3542_s25   ;;  %s2765_s24 = sphi %s2889_s24, %s3541_s24  }
  0x16   : > { %3493 = sst [smem:[#allocation21_spill]] %s2777_s27  ;;  %s2149_s29 = sadd.s32 4294967294, %s2777_s27  }
  0x17   : > { %p61_p0 = scmp.ne.s32.totalorder %s2769_s25, %s2765_s24  ;;  %p3461_p1 = scmp.eq.s32.totalorder %s2910_s28, 0 }
  0x18   : > { %p421_p3 = scmp.eq.s32.totalorder %s2149_s29, 1  ;;  %p2150_p5 = scmp.ge.s32.totalorder %s2777_s27, 1 }
  0x19   : > { %p2919_p4 = por %p3461_p1, %p61_p0  ;;  %p454_p7 = scmp.lt.s32.totalorder %s2777_s27, 3 }
  0x1a   : > { %p2924_p6 = por %p421_p3, %p61_p0  ;;  %s2779_s19 = smov [#allocation9]  }
  0x1b   : > { %s3494_s0 = scalar_select %p2919_p4, 1, 0 }
  0x1c   : > { %s3495_s30 = scalar_select %p2924_p6, 1, 0 }
  0x1d   : > { %p2929_p8 = pnand %p2150_p5, %p454_p7  ;;  %s475_s1 = sshll.u32 %s2779_s19, 4  ;;  %s2933_s1 = int_to_ptr.vmem [resolvable:$true] %s475_s1 }
  0x1e   : > { %3496 = sst [smem:[#allocation22_spill]] %s3495_s30  ;;  %s2945_s21 = sadd.s32 1, %s2777_s27  }
  0x1f   : > { %s3497_s18 = scalar_select %p2929_p8, 1, 0 }
  0x20   : > { %p2428_p9 = pneg %p2929_p8  ;;  %3499 = sst [smem:[#allocation23_spill]] %s2945_s21 }
  0x21   : > { %s48_s22 = sadd.s32 1, %s2773_s26  ;;  %s45_s23 = ssub.s32 %s2777_s27, %s2945_s21 }
  0x22   : > { %p2940_p11 = pnand %p2428_p9, %p3461_p1  ;;  %s3500_s7 = sld [smem:[#allocation28_spill]] }
  0x24   : > { %s3498_s20 = scalar_select %p2940_p11, 1, 0 }
  0x25   : > { %p3471_p13 = pneg %p2940_p11 }
  0x28   : > { %s2525_s19 = scalar_lea.hbm %s3500_s7, 512 }
  0x29   : > { %p2526_p12 = scmp.ne.s32.totalorder %s3500_s7, %s2525_s19  ;;  %p2532_p5 = scmp.lt.u32.totalorder %s2525_s19, %s3500_s7 }
  0x2b   : > { %p2528_p0 = pnand %p3471_p13, %p2526_p12 }
  0x2d   : > { %p2529_p3 = pneg %p2528_p0 }
  0x2f   : > { %p2534_p7 = pnand %p2532_p5, %p2529_p3 }
  0x31   : > { %2537 = shalt.err (!%p2534_p7)
}
  0x32   : > { %s2538_s30 = scalar_lea.vmem %s2933_s1, 512  ;;  %p2546_p2 = scmp.lt.s32.totalorder %s2933_s1, %s2933_s1 }
  0x33   : > { %p2539_p9 = scmp.ne.s32.totalorder %s2933_s1, %s2538_s30  ;;  %p2547_p12 = scmp.lt.s32.totalorder %s2538_s30, %s2538_s30 }
  0x35   : > { %p2541_p10 = pnand %p2539_p9, %p3471_p13  ;;  %p2548_p0 = por %p2547_p12, %p2546_p2 }
  0x37   : > { %p2542_p1 = pneg %p2541_p10 }
  0x39   : > { %p2549_p6 = pnand %p2548_p0, %p2542_p1 }
  0x3b   : > { %2552 = shalt.err (!%p2549_p6)
}
  0x3c   : > { %s3465_s14 = smov 128   ;;  %s3466_s15 = smov 8  }
  0x3d   : > { %2431 = dma.hbm_to_vmem [thread:$0]  (!%p2940_p11), %s3500_s7, 512, %s2933_s1, [#allocation10], %s3465_s14, %s3465_s14, %s3466_s15  }
  0x3e   : > { %p46_p1 = scmp.eq.s32.totalorder %s45_s23, 0  ;;  %p55_p2 = scmp.ne.s32.totalorder %s2773_s26, %s2769_s25 }
  0x3f   : > { %p56_p6 = scmp.eq.s32.totalorder %s2777_s27, 0  ;;  %p2454_p10 = scmp.lt.s32.totalorder %s2777_s27, 2 }
  0x40   : > { %s2985_s29 = scalar_select %p46_p1, %s2773_s26, %s48_s22  }
  0x41   : > { %p57_p3 = por %p56_p6, %p55_p2  ;;  %p3502_p5 = scmp.eq.s32.totalorder %s2910_s28, 1 }
  0x42   : > { %3501 = sst [smem:[#allocation24_spill]] %s2985_s29  ;;  %s3467_s30 = sand.u32 1, %s2773_s26  }
  0x43   : > { %p2989_p7 = por %p3502_p5, %p55_p2  ;;  %s2995_s21 = sshll.u32 %s2777_s27, 7 }
  0x44   : > { %s2999_s17 = sshll.u32 %s3467_s30, 3  ;;  %p3001_p9 = pnand %p2454_p10, %p57_p3 }
  0x45   : > { %s3503_s19 = scalar_select %p2989_p7, 1, 0 }
  0x46   : > { %s3505_s1 = scalar_select %p3001_p9, 1, 0 }
  0x47   : > { %3504 = sst [smem:[#allocation25_spill]] %s3503_s19  ;;  %s541_s22 = sand.u32 1, %s2777_s27  }
  0x48   : > { %s3506_s24 = sld [smem:[#allocation27_spill]]  ;;  %s545_s7 = scalar_lea.vmem [#allocation6], %s2999_s17 }
  0x49   : > { %s552_s29 = sshll.u32 %s545_s7, 4  ;;  %s3015_s30 = scalar_lea.sflag [#allocation7], %s541_s22  ;;  %s3013_s29 = int_to_ptr.vmem [resolvable:$true] %s552_s29 }
  0x4a   : > { %p3021_p0 = pneg %p3001_p9 }
  0x4c   : > { %s3508_s27 = scalar_select %p3021_p0, 1, 0 }
  0x4e   : > { %s3507_s14 = smov %s3506_s24  ;;  %s3010_s15 = scalar_lea.hbm %s3506_s24, %s2995_s21 }
  0x4f   : > { %s2553_s19 = scalar_lea.hbm %s3010_s15, 128  ;;  %s2558_s24 = scalar_lea.hbm %s3507_s14, 256 }
  0x50   : > { %p2554_p12 = scmp.ne.s32.totalorder %s3010_s15, %s2553_s19  ;;  %p2559_p6 = scmp.lt.u32.totalorder %s3010_s15, %s3507_s14 }
  0x51   : > { %p2560_p10 = scmp.lt.u32.totalorder %s2558_s24, %s2553_s19  ;;  %p2562_p5 = scmp.lt.u32.totalorder %s2553_s19, %s3010_s15 }
  0x52   : > { %p2556_p1 = pnand %p3021_p0, %p2554_p12 }
  0x53   : > { %p2561_p3 = por %p2560_p10, %p2559_p6 }
  0x54   : > { %p2557_p2 = pneg %p2556_p1 }
  0x55   : > { %p2563_p13 = por %p2562_p5, %p2561_p3 }
  0x57   : > { %p2564_p7 = pnand %p2563_p13, %p2557_p2 }
  0x59   : > { %2567 = shalt.err (!%p2564_p7)
}
  0x5a   : > { %s2568_s22 = scalar_lea.vmem %s3013_s29, 128  ;;  %s2782_s23 = smov [#allocation6]  }
  0x5b   : > { %p2569_p12 = scmp.ne.s32.totalorder %s3013_s29, %s2568_s22  ;;  %s2573_s16 = sshll.u32 %s2782_s23, 4  ;;  %s2574_s16 = int_to_ptr.vmem [resolvable:$false] %s2573_s16 }
  0x5c   : > { %s2575_s13 = scalar_lea.vmem %s2574_s16, 256  ;;  %p2576_p8 = scmp.lt.s32.totalorder %s3013_s29, %s2574_s16 }
  0x5d   : > { %p2571_p1 = pnand %p2569_p12, %p3021_p0  ;;  %p2577_p11 = scmp.lt.s32.totalorder %s2575_s13, %s2568_s22 }
  0x5f   : > { %p2572_p4 = pneg %p2571_p1  ;;  %p2578_p6 = por %p2577_p11, %p2576_p8 }
  0x61   : > { %p2579_p10 = pnand %p2578_p6, %p2572_p4 }
  0x63   : > { %2582 = shalt.err (!%p2579_p10)
}
  0x64   : > { %2441 = dma.hbm_to_vmem [thread:$0]  (!%p3001_p9), %s3010_s15, 128, %s3013_s29, %s3015_s30  }
  0x65   : > { %s2783_s19 = smov [#allocation11]   ;;  %s2583_s23 = scalar_lea.hbm %s3448_s10, 512 }
  0x66   : > { %s494_s24 = sshll.u32 %s2783_s19, 4  ;;  %p2584_p8 = scmp.ne.s32.totalorder %s3448_s10, %s2583_s23  ;;  %s495_s24 = int_to_ptr.vmem [resolvable:$true] %s494_s24 }
  0x67   : > { %p3509_p4 = scmp.ne.s32.totalorder %s3498_s20, 0  ;;  %p2590_p2 = scmp.lt.u32.totalorder %s2583_s23, %s3448_s10 }
  0x69   : > { %p3510_p11 = pneg %p3509_p4 }
  0x6b   : > { %p2586_p13 = pnand %p2584_p8, %p3510_p11 }
  0x6d   : > { %p2587_p7 = pneg %p2586_p13 }
  0x6f   : > { %p2592_p3 = pnand %p2590_p2, %p2587_p7 }
  0x71   : > { %2595 = shalt.err (!%p2592_p3)
}
  0x72   : > { %s2596_s15 = scalar_lea.vmem %s495_s24, 512  ;;  %p3511_p12 = pmov %p3510_p11 }
  0x73   : > { %p2597_p5 = scmp.ne.s32.totalorder %s495_s24, %s2596_s15  ;;  %p2604_p10 = scmp.lt.s32.totalorder %s495_s24, %s495_s24 }
  0x74   : > { %p2605_p9 = scmp.lt.s32.totalorder %s2596_s15, %s2596_s15 }
  0x75   : > { %p2599_p1 = pnand %p2597_p5, %p3511_p12 }
  0x76   : > { %p2606_p0 = por %p2605_p9, %p2604_p10 }
  0x77   : > { %p2600_p6 = pneg %p2599_p1 }
  0x79   : > { %p2607_p8 = pnand %p2606_p0, %p2600_p6 }
  0x7b   : > { %2610 = shalt.err (!%p2607_p8)
}
  0x7c   : > { %s3512_s11 = smov 8   ;;  %s3513_s14 = smov 128  }
  0x7d   : > { %2434 = dma.hbm_to_vmem [thread:$0]  (!%p3509_p4), %s3448_s10, 512, %s495_s24, [#allocation10], %s3513_s14, %s3513_s14, %s3512_s11  }
  0x7e   : > { %s3514_s16 = sld [smem:[#allocation26_spill]]  ;;  %s527_s20 = scalar_lea.vmem [#allocation3], %s2999_s17 }
  0x7f   : > { %s534_s13 = sshll.u32 %s527_s20, 4  ;;  %s3515_s15 = sand.u32 1, %s2773_s26   ;;  %s535_s13 = int_to_ptr.vmem [resolvable:$true] %s534_s13 }
  0x80   : > { %s524_s9 = scalar_lea.sflag [#allocation4], %s3515_s15  ;;  %p3516_p0 = scmp.ne.s32.totalorder %s3508_s27, 0 }
  0x84   : > { %s3072_s22 = scalar_lea.hbm %s3514_s16, %s2995_s21  ;;  %s2616_s14 = scalar_lea.hbm %s3514_s16, 256 }
  0x85   : > { %s2611_s29 = scalar_lea.hbm %s3072_s22, 128  ;;  %p2617_p4 = scmp.lt.u32.totalorder %s3072_s22, %s3514_s16 }
  0x86   : > { %p2612_p9 = scmp.ne.s32.totalorder %s3072_s22, %s2611_s29  ;;  %p2618_p7 = scmp.lt.u32.totalorder %s2616_s14, %s2611_s29 }
  0x87   : > { %p2620_p3 = scmp.lt.u32.totalorder %s2611_s29, %s3072_s22 }
  0x88   : > { %p2614_p11 = pnand %p2612_p9, %p3516_p0  ;;  %p2619_p2 = por %p2618_p7, %p2617_p4 }
  0x8a   : > { %p2615_p13 = pneg %p2614_p11  ;;  %p2621_p5 = por %p2620_p3, %p2619_p2 }
  0x8c   : > { %p2622_p12 = pnand %p2621_p5, %p2615_p13 }
  0x8e   : > { %2625 = shalt.err (!%p2622_p12)
}
  0x8f   : > { %s2626_s23 = scalar_lea.vmem %s535_s13, 128  ;;  %s2784_s20 = smov [#allocation3]  }
  0x90   : > { %p2627_p1 = scmp.ne.s32.totalorder %s535_s13, %s2626_s23  ;;  %s2631_s15 = sshll.u32 %s2784_s20, 4  ;;  %s2632_s15 = int_to_ptr.vmem [resolvable:$false] %s2631_s15 }
  0x91   : > { %s2633_s24 = scalar_lea.vmem %s2632_s15, 256  ;;  %p2634_p8 = scmp.lt.s32.totalorder %s535_s13, %s2632_s15 }
  0x92   : > { %p2629_p6 = pnand %p2627_p1, %p3516_p0  ;;  %p2635_p9 = scmp.lt.s32.totalorder %s2633_s24, %s2626_s23 }
  0x94   : > { %p2630_p10 = pneg %p2629_p6  ;;  %p2636_p11 = por %p2635_p9, %p2634_p8 }
  0x96   : > { %p2637_p4 = pnand %p2636_p11, %p2630_p10 }
  0x98   : > { %2640 = shalt.err (!%p2637_p4)
}
  0x99   : > { %p3517_p7 = scmp.ne.s32.totalorder %s3505_s1, 0  ;;  %s3098_s14 = scalar_lea.hbm %s3440_s2, %s2995_s21 }
  0x9a   : > { %s563_s19 = scalar_lea.vmem [#allocation8], %s2999_s17  ;;  %s2641_s23 = scalar_lea.hbm %s3098_s14, 128 }
  0x9b   : > { %2438 = dma.hbm_to_vmem [thread:$0]  (!%p3517_p7), %s3072_s22, 128, %s535_s13, %s524_s9  }
  0x9c   : > { %s570_s7 = sshll.u32 %s563_s19, 4  ;;  %p2642_p13 = scmp.ne.s32.totalorder %s3098_s14, %s2641_s23  ;;  %s571_s7 = int_to_ptr.vmem [resolvable:$true] %s570_s7 }
  0x9d   : > { %s2646_s9 = scalar_lea.hbm %s3440_s2, 256  ;;  %p2647_p5 = scmp.lt.u32.totalorder %s3098_s14, %s3440_s2 }
  0x9e   : > { %p2644_p2 = pnand %p2642_p13, %p3516_p0  ;;  %p2648_p12 = scmp.lt.u32.totalorder %s2646_s9, %s2641_s23 }
  0x9f   : > { %p2650_p6 = scmp.lt.u32.totalorder %s2641_s23, %s3098_s14 }
  0xa0   : > { %p2645_p3 = pneg %p2644_p2  ;;  %p2649_p1 = por %p2648_p12, %p2647_p5 }
  0xa2   : > { %p2651_p10 = por %p2650_p6, %p2649_p1 }
  0xa4   : > { %p2652_p8 = pnand %p2651_p10, %p2645_p3 }
  0xa6   : > { %2655 = shalt.err (!%p2652_p8)
}
  0xa7   : > { %s2656_s17 = scalar_lea.vmem %s571_s7, 128  ;;  %s2785_s21 = smov [#allocation8]  }
  0xa8   : > { %p2657_p9 = scmp.ne.s32.totalorder %s571_s7, %s2656_s17  ;;  %s2661_s24 = sshll.u32 %s2785_s21, 4  ;;  %s2662_s24 = int_to_ptr.vmem [resolvable:$false] %s2661_s24 }
  0xa9   : > { %s2663_s29 = scalar_lea.vmem %s2662_s24, 256  ;;  %p2664_p13 = scmp.lt.s32.totalorder %s571_s7, %s2662_s24 }
  0xaa   : > { %p2659_p11 = pnand %p2657_p9, %p3516_p0  ;;  %p2665_p2 = scmp.lt.s32.totalorder %s2663_s29, %s2656_s17 }
  0xac   : > { %p2660_p4 = pneg %p2659_p11  ;;  %p2666_p7 = por %p2665_p2, %p2664_p13 }
  0xae   : > { %p2667_p5 = pnand %p2666_p7, %p2660_p4 }
  0xb0   : > { %2670 = shalt.err (!%p2667_p5)
}
  0xb1   : > { %p3518_p12 = scmp.ne.s32.totalorder %s3505_s1, 0  ;;  %p3519_p3 = scmp.ne.s32.totalorder %s3497_s18, 0 }
  0xb2   : > { %s3122_s27 = sand.u32 (!%p3519_p3), 1, %s2769_s25   ;;  %p3520_p0 = scmp.ne.s32.totalorder (!%p3519_p3), %s3494_s0, 0 }
  0xb3   : > { %2444 = dma.hbm_to_vmem [thread:$0]  (!%p3518_p12), %s3098_s14, 128, %s571_s7, %s3015_s30  }
  0xb4   : > { %586 = sbr.rel (%p3519_p3) target bundleno = 2700 (0xa8c), region = 84  ;;  %s3125_s11 = sshll.u32 (!%p3519_p3), %s3122_s27, 3 }
  0xb5   : > { %s589_s19 = scalar_lea.sflag (!%p3519_p3), [#allocation4], %s3122_s27  ;;  %s592_s23 = scalar_lea.vmem (!%p3519_p3), [#allocation3], %s3125_s11 }
  0xbb   : > { %2744 = dma.done.wait (%p3520_p0), %s589_s19, 128  }
  0xbc   : > { %2746 = vsyncadd (%p3520_p0), %s589_s19, 4294967168  ;;  %s597_s18 = sand.u32 1, %s2910_s28   ;;  %s601_s1 = scalar_lea.vmem [#allocation6], %s3125_s11 }
  0xbd   : > { %s598_s30 = scalar_lea.sflag [#allocation7], %s597_s18 }
  0xbe   : > { %2748 = dma.done.wait (%p3520_p0), %s598_s30, 256  }
  0xbf   : > { %2750 = vsyncadd (%p3520_p0), %s598_s30, 4294967040  ;;  %s610_s14 = scalar_lea.vmem [#allocation8], %s3125_s11  ;;  %p3521_p7 = scmp.eq.s32.totalorder %s2910_s28, 0 }
  0xc1   : > { %2752 = dma.done.wait (%p3521_p7), [#allocation10], 1024   ;;  %p3522_p1 = pmov %p3521_p7 }
  0xc2   : > { %v2786_v0 = vmov 0.0|0.0   ;;  %vm2787_vm0 = vmmov 0   ;;  %v2788_v1 = vmov 0.0   ;;  %v697_v2 = vld [vmem:[%s3442_s4] sm:$0xff]  ;;  %v698_v3 = vld [vmem:[%s3442_s4 + $0x8] sm:$0xff]  ;;  %v699_v4 = vld [vmem:[%s3442_s4 + $0x10] sm:$0xff] }
  0xc3   : > { %2754 = vsyncadd (%p3522_p1), [#allocation10], 4294966272  ;;  %2368 = vmatprep.subr.bf16.mxu1 %v2786_v0  ;;  %2262 = vmatprep.mubr.msk.f32.mxu1 %vm2787_vm0, %v2788_v1  ;;  %v2369_v5 = vpack.c.bf16 %v698_v3, %v697_v2  ;;  %v700_v6 = vld [vmem:[%s3442_s4 + $0x18] sm:$0xff]  ;;  %v775_v8 = vld [vmem:[%s3443_s5] sm:$0xff]  ;;  %vm701_vm1 = vcmask 261120   ;;  %vm931_vm2 = vcmask 64512  }
  0xc4   : > { %2380 = vmatprep.subr.bf16.mxu0 %v2786_v0  ;;  %2284 = vmatprep.mubr.msk.f32.mxu0 %vm2787_vm0, %v2788_v1  ;;  %v2372_v7 = vpack.c.bf16 %v700_v6, %v699_v4  ;;  %v776_v9 = vld [vmem:[%s3443_s5 + $0x8] sm:$0xff]  ;;  %v777_v12 = vld [vmem:[%s3443_s5 + $0x10] sm:$0xff]  ;;  %v778_v13 = vld [vmem:[%s3443_s5 + $0x18] sm:$0xff]  ;;  %s2789_s21 = smov 112   ;;  %s2790_s24 = smov 120   ;;  %v2792_v36 = vmov 0  }
  0xc5   : > { %2370 = vmatpush3.bf16.msra.mxu1 %v2369_v5  ;;  %v3169_v10 = vld [vmem:[%s592_s23] sm:$0xff]  ;;  %v2375_v11 = vpack.c.bf16 %v776_v9, %v775_v8  ;;  %v2378_v14 = vpack.c.bf16 %v778_v13, %v777_v12  ;;  %v695_v15 = vld [vmem:[%s601_s1] sm:$0xff]  ;;  %p688_p6 = scmp.lt.s32.totalorder %s2910_s28, 1  ;;  %s2167_s7 = sshll.u32 %s3122_s27, 5  ;;  %vm1273_vm5 = vcmask 130112   ;;  %vm1448_vm6 = vcmask 195712  }
  0xc6   : > { %2371 = vmatprep.subr.bf16.mxu1 %v2786_v0  ;;  %v852_v16 = vld [vmem:[%s3444_s6] sm:$0xff]  ;;  %v853_v17 = vld [vmem:[%s3444_s6 + $0x8] sm:$0xff]  ;;  %v854_v18 = vld [vmem:[%s3444_s6 + $0x10] sm:$0xff]  ;;  %s3270_s23 = scalar_lea.vmem [#allocation13], %s2167_s7  ;;  %s2793_s20 = smov 8   ;;  %vm1623_vm7 = vcmask 261312  }
  0xc7   : > { %v2381_v19 = vpack.c.bf16 %v853_v17, %v852_v16  ;;  %v855_v20 = vld [vmem:[%s3444_s6 + $0x18] sm:$0xff]  ;;  %v696_v22 = vld [vmem:[%s610_s14] sm:$0xff]  ;;  %s2791_s14 = smov 104   ;;  %s2794_s15 = smov 16   ;;  %vm1833_vm8 = vcmask 523264  }
  0xc8   : > { %v2384_v21 = vpack.c.bf16 %v855_v20, %v854_v18  ;;  %s689_s29 = scalar_select %p688_p6, %s2910_s28, 1 }
  0xc9   : > { %2373 = vmatpush3.bf16.msra.mxu1 %v2372_v7  ;;  %2382 = vmatpush3.bf16.msra.mxu0 %v2381_v19  ;;  %s2795_s9 = smov 24   ;;  %s3525_s13 = sld [smem:[#allocation29_spill]] }
  0xca   : > { %2374 = vmatprep.subr.bf16.mxu1 %v2786_v0  ;;  %2383 = vmatprep.subr.bf16.mxu0 %v2786_v0  ;;  %s2168_s19 = sshll.u32 %s689_s29, 1  ;;  %s3528_s7 = sld [smem:[#allocation25_spill]] }
  0xcb   : > { %s691_s0 = scalar_lea.vmem %s3441_s3, %s2168_s19  ;;  %s3526_s19 = sld [smem:[#allocation30_spill]] }
  0xcc   : > { %2263 = vmatmul.mubr.msk.f32.vlgmr.msra.gmra.mrb[0].mxu1 %vm701_vm1, %v3169_v10  ;;  %v929_v35 = vld [vmem:[%s691_s0] sm:$0x3]  ;;  %s3527_s0 = sld [smem:[#allocation31_spill]]  ;;  %s3529_s1 = sld [smem:[#allocation35_spill]] }
  0xcd   : > { %2376 = vmatpush3.bf16.msra.mxu1 %v2375_v11  ;;  %2273 = vmatprep.mubr.msk.f32.mxu1 %vm2787_vm0, %v2788_v1  ;;  %vm930_vm3 = vnez %v929_v35  ;;  %v1628_v35 = vld [vmem:[#allocation9 + $0x10] sm:$0xff] }
  0xce   : > { %2377 = vmatprep.subr.bf16.mxu1 %v2786_v0  ;;  %2385 = vmatpush3.bf16.msra.mxu0 %v2384_v21  ;;  %v1008_v37 = vsel %vm930_vm3, 16843009, %v2792_v36  ;;  %v1629_v36 = vld [vmem:[#allocation9 + $0x18] sm:$0xff] }
  0xcf   : > { %2297 = vmatprep.subr.mxu0 %v2788_v1  ;;  %v1009_v38 = vunpack.c.0.s8 %v1008_v37  ;;  %v2390_v37 = vpack.c.bf16 %v1629_v36, %v1628_v35 }
  0xd0   : > { %p3530_p8 = scmp.ne.s32.totalorder %s3528_s7, 0 }
  0xd1   : > { %2379 = vmatpush3.bf16.msra.mxu1 %v2378_v14  ;;  %2285 = vmatmul.mubr.msk.f32.vlgmr.msra.gmra.mrb[0].mxu0 %vm701_vm1, %v696_v22  ;;  %vm3243_vm4 = vcmp.ne.s32.totalorder %v1009_v38, 0 }
  0xd2   : > { %2287 = vmatprep.subr.mxu1 %v2788_v1  ;;  %2299 = vmatprep.mubr.msk.f32.mxu0 %vm2787_vm0, %v2788_v1 }
  0xd4   : > { %2274 = vmatmul.mubr.msk.f32.vlgmr.msra.gmra.mrb[2].mxu1 %vm701_vm1, %v695_v15 }
  0xd5   : > { %2289 = vmatprep.mubr.msk.f32.mxu1 %vm2787_vm0, %v2788_v1 }
 0x19f   : > { %v771_v23 = vpop.f32.mrb[0].mxu1 }
 0x1a0   : > { %v2264_v24 = vpop.f32.mrb[1].mxu1 }
 0x1a4   : > { %v3219_v27 = vpop.f32.mrb[0].mxu0 }
 0x1a5   : > { %v2286_v28 = vpop.f32.mrb[1].mxu0 }
 0x1a7   : > { %v848_v25 = vpop.f32.mrb[2].mxu1 }
 0x1a8   : > { %1277 = vrot.lane.b32.xlu1 %v848_v25, %s2789_s21  ;;  %1101 = vrot.lane.b32.xlu0 %v848_v25, %s2790_s24  ;;  %v2275_v26 = vpop.f32.mrb[3].mxu1 }
 0x1a9   : > { %2288 = vmatpush3.xpose.msk.msra.mxu1 %vm931_vm2, %v848_v25 }
 0x1aa   : > { %2292 = vmatprep.subr.mxu1 %v2788_v1 }
 0x1ac   : > { %2290 = vmatmul.mubr.msk.f32.vlgmr.msra.gmra.mrb[4].mxu1 %vm931_vm2, %v771_v23  ;;  %1275 = vrot.lane.b32.xlu1 %v771_v23, %s2789_s21 }
 0x1ad   : > { %1099 = vrot.lane.b32.xlu0 %v771_v23, %s2790_s24  ;;  %2294 = vmatprep.mubr.msk.f32.mxu1 %vm2787_vm0, %v2788_v1 }
 0x1ae   : > { %2293 = vmatpush3.msra.mxu1 %v3219_v27 }
 0x1af   : > { %2302 = vmatprep.subr.mxu1 %v2788_v1 }
 0x1b0   : > { %1450 = vrot.lane.b32.xlu1 %v771_v23, %s2791_s14 }
 0x1b1   : > { %1452 = vrot.lane.b32.xlu0 %v848_v25, %s2791_s14 }
 0x21a   : > { %v1102_v29 = vpop.permute.xlu0 %1101  ;;  %v1278_v30 = vpop.permute.xlu1 %1277 }
 0x21b   : > { %2298 = vmatpush3.xpose.msk.msra.mxu0 %vm931_vm2, %v1102_v29 }
 0x21c   : > { %2307 = vmatprep.subr.mxu0 %v2788_v1 }
 0x21e   : > { %v1276_v32 = vpop.permute.xlu1 %1275 }
 0x21f   : > { %v1100_v31 = vpop.permute.xlu0 %1099 }
 0x220   : > { %2300 = vmatmul.mubr.msk.f32.vlgmr.msra.gmra.mrb[2].mxu0 %vm931_vm2, %v1100_v31 }
 0x221   : > { %2308 = vmatpush3.xpose.msk.msra.mxu0 %vm931_vm2, %v1278_v30  ;;  %2309 = vmatprep.mubr.msk.f32.mxu0 %vm2787_vm0, %v2788_v1 }
 0x222   : > { %2317 = vmatprep.subr.mxu0 %v2788_v1  ;;  %v1451_v34 = vpop.permute.xlu1 %1450 }
 0x223   : > { %v1453_v33 = vpop.permute.xlu0 %1452 }
 0x224   : > { %2310 = vmatmul.mubr.msk.f32.vlgmr.msra.gmra.mrb[4].mxu0 %vm931_vm2, %v1276_v32  ;;  %v1626_v32 = vld [vmem:[#allocation9] sm:$0xff] }
 0x225   : > { %2318 = vmatpush3.xpose.msk.msra.mxu0 %vm931_vm2, %v1453_v33  ;;  %2319 = vmatprep.mubr.msk.f32.mxu0 %vm2787_vm0, %v2788_v1  ;;  %v1627_v33 = vld [vmem:[#allocation9 + $0x8] sm:$0xff] }
 0x226   : > { %2386 = vmatprep.subr.bf16.mxu0 %v2786_v0 }
 0x228   : > { %2320 = vmatmul.mubr.msk.f32.vlgmr.msra.gmra.mrb[6].mxu0 %vm931_vm2, %v1451_v34  ;;  %v2387_v34 = vpack.c.bf16 %v1627_v33, %v1626_v32 }
 0x229   : > { %2335 = vmatprep.mubr.msk.f32.mxu0 %vm2787_vm0, %v2788_v1 }
 0x22a   : > { %2388 = vmatpush3.bf16.msra.mxu0 %v2387_v34 }
 0x22b   : > { %2389 = vmatprep.subr.bf16.mxu0 %v2786_v0 }
 0x22e   : > { %2391 = vmatpush3.bf16.msra.mxu0 %v2390_v37 }
 0x22f   : > { %2398 = vmatprep.subr.bf16.mxu0 %v2786_v0 }
 0x27f   : > { %v1004_v40 = vpop.f32.mrb[4].mxu1 }
 0x280   : > { %v1011_v41 = vsel %vm3243_vm4, %v1004_v40, -1e+09  ;;  %v2291_v42 = vpop.f32.mrb[5].mxu1 }
 0x281   : > { %v1012_v43 = vsel %vm931_vm2, %v1011_v41, -inf }
 0x282   : > { %1013 = vmax.xlane.f32.xlu0 %v1012_v43 }
 0x2f3   : > { %v1173_v44 = vpop.f32.mrb[2].mxu0 }
 0x2f4   : > { %v1177_v45 = vsel %vm3243_vm4, %v1173_v44, -1e+09  ;;  %v2301_v46 = vpop.f32.mrb[3].mxu0 }
 0x2f5   : > { %v1178_v47 = vsel %vm931_vm2, %v1177_v45, -inf }
 0x2f6   : > { %1179 = vmax.xlane.f32.xlu1 %v1178_v47 }
 0x2f7   : > { %v1349_v48 = vpop.f32.mrb[4].mxu0 }
 0x2f8   : > { %v1353_v49 = vsel %vm3243_vm4, %v1349_v48, -1e+09  ;;  %v2311_v50 = vpop.f32.mrb[5].mxu0 }
 0x2f9   : > { %v1354_v51 = vsel %vm931_vm2, %v1353_v49, -inf }
 0x2fa   : > { %1355 = vmax.xlane.f32.xlu0 %v1354_v51 }
 0x2fb   : > { %v1524_v52 = vpop.f32.mrb[6].mxu0 }
 0x2fc   : > { %v1528_v53 = vsel %vm3243_vm4, %v1524_v52, -1e+09  ;;  %v2321_v54 = vpop.f32.mrb[7].mxu0 }
 0x2fd   : > { %v1529_v55 = vsel %vm931_vm2, %v1528_v53, -inf }
 0x2fe   : > { %1530 = vmax.xlane.f32.xlu0 %v1529_v55 }
 0x307   : > { %1193 = vrot.lane.b32.xlu1 %v3219_v27, %s2790_s24 }
 0x30f   : > { %v1014_v56 = vpop.xlane.xlu0 %1013 }
 0x310   : > { %v1015_v57 = vsub.f32 %v1011_v41, %v1014_v56 }
 0x312   : > { %v1016_v58 = vmul.f32 1.442695, %v1015_v57  ;;  %v1733_v57 = vld [vmem:[#allocation11] sm:$0xff] }
 0x314   : > { %2505 = vpow2.f32 %v1016_v58  ;;  %v1734_v58 = vld [vmem:[#allocation11 + $0x8] sm:$0xff] }
 0x31e   : > { %v2506_v59 = vpop.eup %2505 }
 0x31f   : > { %v1018_v60 = vsel %vm931_vm2, %v2506_v59, 0.0 }
 0x32b   : > { %1019 = vadd.xlane.f32.xlu1 %v1018_v60  ;;  %v1736_v60 = vld [vmem:[#allocation11 + $0x18] sm:$0xff] }
 0x383   : > { %v1180_v61 = vpop.xlane.xlu1 %1179 }
 0x384   : > { %v1181_v62 = vsub.f32 %v1177_v45, %v1180_v61  ;;  %v1818_v61 = vld [vmem:[%s3450_s12] sm:$0xff] }
 0x386   : > { %v1182_v63 = vmul.f32 1.442695, %v1181_v62  ;;  %v1819_v62 = vld [vmem:[%s3450_s12 + $0x8] sm:$0xff] }
 0x387   : > { %v1356_v2 = vpop.xlane.xlu0 %1355  ;;  %v1194_v15 = vpop.permute.xlu1 %1193 }
 0x388   : > { %2507 = vpow2.f32 %v1182_v63  ;;  %v1357_v3 = vsub.f32 %v1353_v49, %v1356_v2  ;;  %v1820_v63 = vld [vmem:[%s3450_s12 + $0x10] sm:$0xff]  ;;  %v2399_v2 = vpack.c.bf16 %v1819_v62, %v1818_v61 }
 0x38a   : > { %v1358_v4 = vmul.f32 1.442695, %v1357_v3  ;;  %v1821_v3 = vld [vmem:[%s3450_s12 + $0x18] sm:$0xff] }
 0x38b   : > { %v1531_v5 = vpop.xlane.xlu0 %1530 }
 0x38c   : > { %2509 = vpow2.f32 %v1358_v4  ;;  %v1532_v6 = vsub.f32 %v1528_v53, %v1531_v5  ;;  %v2402_v4 = vpack.c.bf16 %v1821_v3, %v1820_v63  ;;  %v1822_v5 = vld [vmem:[%s3450_s12 + $0x20] sm:$0xff] }
 0x38e   : > { %v1533_v7 = vmul.f32 1.442695, %v1532_v6  ;;  %v1823_v6 = vld [vmem:[%s3450_s12 + $0x28] sm:$0xff] }
 0x390   : > { %2511 = vpow2.f32 %v1533_v7  ;;  %v2405_v7 = vpack.c.bf16 %v1823_v6, %v1822_v5 }
 0x392   : > { %v2508_v8 = vpop.eup %2507 }
 0x393   : > { %v1184_v9 = vsel %vm931_vm2, %v2508_v8, 0.0 }
 0x394   : > { %1185 = vadd.xlane.f32.xlu0 %v1184_v9 }
 0x396   : > { %v2510_v11 = vpop.eup %2509 }
 0x397   : > { %v1360_v12 = vsel %vm931_vm2, %v2510_v11, 0.0 }
 0x398   : > { %1361 = vadd.xlane.f32.xlu1 %v1360_v12 }
 0x39a   : > { %v2512_v13 = vpop.eup %2511 }
 0x39b   : > { %v1535_v14 = vsel %vm931_vm2, %v2512_v13, 0.0 }
 0x39c   : > { %1536 = vadd.xlane.f32.xlu0 %v1535_v14 }
 0x3a9   : > { %1543 = vrot.lane.b32.xlu1 %v3219_v27, %s2791_s14  ;;  %s2796_s14 = smov [#allocation13]  }
 0x3aa   : > { %s2675_s29 = sshll.u32 %s2796_s14, 4  ;;  %s2676_s29 = int_to_ptr.vmem [resolvable:$false] %s2675_s29 }
 0x3b2   : > { %1368 = vrot.lane.b32.xlu0 %v3219_v27, %s2789_s21  ;;  %s1944_s21 = scalar_lea.sflag [#allocation14], %s3122_s27 }
 0x3b8   : > { %v1020_v16 = vpop.xlane.xlu1 %1019 }
 0x3b9   : > { %2513 = vrcp.f32 %v1020_v16 }
 0x3c3   : > { %v2514_v17 = vpop.eup %2513 }
 0x3c4   : > { %v1023_v18 = vmul.f32 %v2514_v17, %v2506_v59  ;;  %v2393_v59 = vpack.c.bf16 %v1734_v58, %v1733_v57 }
 0x3c6   : > { %1024 = vst.msk [vmem:[%s3270_s23] sm:$0xff] %vm931_vm2, %v1023_v18  ;;  %2295 = vmatmul.mubr.msk.f32.vlgmr.msra.gmra.mrb[6].mxu1 %vm931_vm2, %v1023_v18  ;;  %v1825_v18 = vld [vmem:[%s3450_s12 + $0x38] sm:$0xff] }
 0x3c7   : > { %2303 = vmatpush3.msra.mxu1 %v1194_v15  ;;  %2304 = vmatprep.mubr.msk.f32.mxu1 %vm2787_vm0, %v2788_v1  ;;  %v2189_v15 = vld [vmem:[%s3525_s13] ss:$0 sm:$0xff] }
 0x3c8   : > { %2312 = vmatprep.subr.mxu1 %v2788_v1 }
 0x421   : > { %v1186_v19 = vpop.xlane.xlu0 %1185 }
 0x422   : > { %2515 = vrcp.f32 %v1186_v19 }
 0x425   : > { %v1362_v20 = vpop.xlane.xlu1 %1361 }
 0x426   : > { %2517 = vrcp.f32 %v1362_v20  ;;  %v2190_v20 = vld [vmem:[%s3526_s19] ss:$0 sm:$0xff] }
 0x429   : > { %v1537_v21 = vpop.xlane.xlu0 %1536  ;;  %v1544_v27 = vpop.permute.xlu1 %1543 }
 0x42a   : > { %2519 = vrcp.f32 %v1537_v21 }
 0x42c   : > { %v2516_v22 = vpop.eup %2515 }
 0x42d   : > { %v1189_v23 = vmul.f32 %v2516_v22, %v2508_v8  ;;  %v1369_v24 = vpop.permute.xlu0 %1368 }
 0x42f   : > { %2177 = vst.msk [vmem:[%s3270_s23 + $0x8] sm:$0xff] %vm931_vm2, %v1189_v23  ;;  %2305 = vmatmul.mubr.msk.f32.vlgmr.msra.gmra.mrb[8].mxu1 %vm931_vm2, %v1189_v23 }
 0x430   : > { %v2518_v25 = vpop.eup %2517  ;;  %2313 = vmatpush3.msra.mxu1 %v1369_v24  ;;  %2314 = vmatprep.mubr.msk.f32.mxu1 %vm2787_vm0, %v2788_v1 }
 0x431   : > { %v1365_v26 = vmul.f32 %v2518_v25, %v2510_v11  ;;  %2322 = vmatprep.subr.mxu1 %v2788_v1  ;;  %v2192_v25 = vld [vmem:[%s3527_s0] ss:$0 sm:$0xff] }
 0x433   : > { %2181 = vst.msk [vmem:[%s3270_s23 + $0x10] sm:$0xff] %vm931_vm2, %v1365_v26  ;;  %2315 = vmatmul.mubr.msk.f32.vlgmr.msra.gmra.mrb[10].mxu1 %vm931_vm2, %v1365_v26 }
 0x434   : > { %v2520_v28 = vpop.eup %2519  ;;  %2323 = vmatpush3.msra.mxu1 %v1544_v27  ;;  %2324 = vmatprep.mubr.msk.f32.mxu1 %vm2787_vm0, %v2788_v1 }
 0x435   : > { %v1540_v29 = vmul.f32 %v2520_v28, %v2512_v13  ;;  %2392 = vmatprep.subr.bf16.mxu1 %v2786_v0  ;;  %v2188_v13 = vld [vmem:[%s3446_s8] ss:$0 sm:$0xff] }
 0x437   : > { %2185 = vst.msk [vmem:[%s3270_s23 + $0x18] sm:$0xff] %vm931_vm2, %v1540_v29  ;;  %2325 = vmatmul.mubr.msk.f32.vlgmr.msra.gmra.mrb[12].mxu1 %vm931_vm2, %v1540_v29 }
 0x438   : > { %2346 = vmatprep.mubr.msk.f32.mxu1 %vm2787_vm0, %v2788_v1  ;;  %2394 = vmatpush3.bf16.msra.mxu1 %v2393_v59 }
 0x439   : > { %2395 = vmatprep.subr.bf16.mxu1 %v2786_v0 }
 0x499   : > { %v1094_v30 = vpop.f32.mrb[6].mxu1 }
 0x49a   : > { %1098 = vst.msk [vmem:[#allocation2] sm:$0xff] %vm931_vm2, %v1094_v30  ;;  %v2296_v31 = vpop.f32.mrb[7].mxu1 }
 0x502   : > { %v1265_v38 = vpop.f32.mrb[8].mxu1 }
 0x503   : > { %1270 = vrot.lane.b32.xlu1 %v1265_v38, %s2793_s20  ;;  %v2306_v39 = vpop.f32.mrb[9].mxu1 }
 0x506   : > { %v1440_v40 = vpop.f32.mrb[10].mxu1 }
 0x507   : > { %1445 = vrot.lane.b32.xlu0 %v1440_v40, %s2794_s15  ;;  %v2316_v41 = vpop.f32.mrb[11].mxu1  ;;  %s2203_s15 = sshll.u32 %s2910_s28, 9 }
 0x508   : > { %s3353_s17 = scalar_lea.hbm %s3529_s1, %s2203_s15 }
 0x50a   : > { %v1615_v42 = vpop.f32.mrb[12].mxu1 }
 0x50b   : > { %1620 = vrot.lane.b32.xlu1 %v1615_v42, %s2795_s9  ;;  %v2326_v43 = vpop.f32.mrb[13].mxu1  ;;  %s1970_s9 = sshll.u32 %s3270_s23, 4  ;;  %s2677_s23 = scalar_lea.vmem %s2676_s29, 1024  ;;  %s3355_s9 = int_to_ptr.vmem [resolvable:$true] %s1970_s9 }
 0x50c   : > { %s2671_s24 = scalar_lea.vmem %s3355_s9, 512  ;;  %p2678_p4 = scmp.lt.s32.totalorder %s3355_s9, %s2676_s29 }
 0x50d   : > { %p2672_p10 = scmp.ne.s32.totalorder %s3355_s9, %s2671_s24  ;;  %p2679_p13 = scmp.lt.s32.totalorder %s2677_s23, %s2671_s24 }
 0x50f   : > { %p2673_p9 = pnand %p2672_p10, %p3530_p8  ;;  %p2680_p2 = por %p2679_p13, %p2678_p4 }
 0x511   : > { %p2674_p11 = pneg %p2673_p9 }
 0x513   : > { %p2681_p5 = pnand %p2680_p2, %p2674_p11 }
 0x575   : > { %v1271_v44 = vpop.permute.xlu1 %1270 }
 0x576   : > { %1274 = vst.msk [vmem:[#allocation2] sm:$0xff] %vm1273_vm5, %v1271_v44 }
 0x579   : > { %v1446_v45 = vpop.permute.xlu0 %1445 }
 0x57a   : > { %1449 = vst.msk [vmem:[#allocation2] sm:$0xff] %vm1448_vm6, %v1446_v45 }
 0x57d   : > { %v1621_v46 = vpop.permute.xlu1 %1620 }
 0x57e   : > { %1624 = vst.msk [vmem:[#allocation2] sm:$0xff] %vm1623_vm7, %v1621_v46 }
 0x585   : > { %v1625_v47 = vld [vmem:[#allocation2] sm:$0xff] }
 0x586   : > { %2336 = vmatmul.mubr.msk.f32.vlgmr.msra.gmra.mrb[8].mxu0 %vm701_vm1, %v1625_v47 }
 0x587   : > { %2365 = vmatprep.mubr.msk.f32.mxu0 %vm2787_vm0, %v2788_v1  ;;  %v1735_v1 = vld [vmem:[#allocation11 + $0x10] sm:$0xff]  ;;  %2400 = vmatpush3.bf16.msra.mxu0 %v2399_v2 }
 0x588   : > { %2401 = vmatprep.subr.bf16.mxu0 %v2786_v0 }
 0x58b   : > { %2403 = vmatpush3.bf16.msra.mxu0 %v2402_v4 }
 0x58c   : > { %2404 = vmatprep.subr.bf16.mxu0 %v2786_v0 }
 0x58f   : > { %2406 = vmatpush3.bf16.msra.mxu0 %v2405_v7 }
 0x590   : > { %2407 = vmatprep.subr.bf16.mxu0 %v2786_v0  ;;  %v1824_v0 = vld [vmem:[%s3450_s12 + $0x30] sm:$0xff] }
 0x591   : > { %v2408_v19 = vpack.c.bf16 %v1825_v18, %v1824_v0 }
 0x593   : > { %2409 = vmatpush3.bf16.msra.mxu0 %v2408_v19 }
 0x659   : > { %v1699_v48 = vpop.f32.mrb[8].mxu0 }
 0x65a   : > { %v1700_v49 = vadd.f32 %v1699_v48, %v3169_v10  ;;  %v2337_v50 = vpop.f32.mrb[9].mxu0  ;;  %v2396_v10 = vpack.c.bf16 %v1736_v60, %v1735_v1 }
 0x65c   : > { %v1705_v51 = vsel %vm701_vm1, %v1700_v49, 0.0  ;;  %2397 = vmatpush3.bf16.msra.mxu1 %v2396_v10 }
 0x65d   : > { %1706 = vadd.xlane.f32.xlu0 %v1705_v51 }
 0x6ea   : > { %v1707_v52 = vpop.xlane.xlu0 %1706 }
 0x6eb   : > { %v1709_v53 = vmul.f32 0.03125, %v1707_v52 }
 0x6ed   : > { %v1710_v54 = vsub.f32 %v1700_v49, %v1709_v53 }
 0x6ef   : > { %v1711_v55 = vmul.f32 %v1710_v54, %v1710_v54 }
 0x6f1   : > { %v1712_v56 = vsel %vm701_vm1, %v1711_v55, 0.0 }
 0x6f2   : > { %1713 = vadd.xlane.f32.xlu1 %v1712_v56 }
 0x77f   : > { %v1714_v8 = vpop.xlane.xlu1 %1713 }
 0x780   : > { %v1715_v9 = vmul.f32 0.03125, %v1714_v8 }
 0x782   : > { %v1716_v11 = vadd.f32 1e-06, %v1715_v9 }
 0x784   : > { %2521 = vrsqrt.f32 %v1716_v11 }
 0x78e   : > { %v2522_v12 = vpop.eup %2521 }
 0x78f   : > { %v1718_v14 = vmul.f32 %v2522_v12, %v1710_v54 }
 0x791   : > { %v1725_v16 = vmul.f32 %v2188_v13, %v1718_v14 }
 0x793   : > { %v1732_v17 = vadd.f32 %v2189_v15, %v1725_v16 }
 0x795   : > { %2347 = vmatmul.mubr.msk.f32.vlgmr.msra.gmra.mrb[14].mxu1 %vm701_vm1, %v1732_v17 }
 0x868   : > { %v1813_v21 = vpop.f32.mrb[14].mxu1 }
 0x869   : > { %v1814_v22 = vadd.f32 %v2190_v20, %v1813_v21  ;;  %v2348_v23 = vpop.f32.mrb[15].mxu1 }
 0x86b   : > { %v1817_v24 = vmax.f32 %v1814_v22, 0.0 }
 0x86d   : > { %2366 = vmatmul.mubr.msk.f32.vlgmr.msra.gmra.mrb[10].mxu0 %vm1833_vm8, %v1817_v24 }
 0x940   : > { %v1903_v26 = vpop.f32.mrb[10].mxu0 }
 0x941   : > { %v1904_v27 = vadd.f32 %v2192_v25, %v1903_v26  ;;  %v2367_v28 = vpop.f32.mrb[11].mxu0 }
 0x943   : > { %v1907_v29 = vadd.f32 %v1904_v27, %v1732_v17 }
 0x945   : > { %v1910_v30 = vsel %vm701_vm1, %v1907_v29, 0.0 }
 0x946   : > { %1911 = vadd.xlane.f32.xlu0 %v1910_v30 }
 0x9d3   : > { %v1912_v31 = vpop.xlane.xlu0 %1911 }
 0x9d4   : > { %v1913_v32 = vmul.f32 0.03125, %v1912_v31 }
 0x9d6   : > { %v1914_v33 = vsub.f32 %v1907_v29, %v1913_v32 }
 0x9d8   : > { %v1915_v34 = vmul.f32 %v1914_v33, %v1914_v33 }
 0x9da   : > { %v1916_v35 = vsel %vm701_vm1, %v1915_v34, 0.0 }
 0x9db   : > { %1917 = vadd.xlane.f32.xlu0 %v1916_v35 }
 0x9dc   : > { %2684 = shalt.err (!%p2681_p5)
}
 0x9dd   : > { %s2685_s19 = scalar_lea.hbm %s3353_s17, 512  ;;  %s2689_s0 = scalar_lea.hbm %s3529_s1, 1024 }
 0x9de   : > { %p2686_p12 = scmp.ne.s32.totalorder %s3353_s17, %s2685_s19  ;;  %p2690_p7 = scmp.lt.u32.totalorder %s3353_s17, %s3529_s1 }
 0x9df   : > { %p2691_p1 = scmp.lt.u32.totalorder %s2689_s0, %s2685_s19  ;;  %p2693_p10 = scmp.lt.u32.totalorder %s2685_s19, %s3353_s17 }
 0x9e0   : > { %p2687_p3 = pnand %p2686_p12, %p3530_p8 }
 0x9e1   : > { %p2692_p6 = por %p2691_p1, %p2690_p7 }
 0x9e2   : > { %p2688_p0 = pneg %p2687_p3 }
 0x9e3   : > { %p2694_p9 = por %p2693_p10, %p2692_p6 }
 0x9e5   : > { %p2695_p11 = pnand %p2694_p9, %p2688_p0 }
 0x9e7   : > { %2698 = shalt.err (!%p2695_p11)
}
 0x9e8   : > { %s2797_s13 = smov 128   ;;  %s3531_s29 = sld [smem:[#allocation32_spill]] }
 0x9e9   : > { %2425 = dma.vmem_to_hbm [thread:$0]  (%p3530_p8), %s3355_s9, 512, %s3353_s17, %s1944_s21, %s2797_s13, %s2797_s13, %s2793_s20  }
 0x9ea   : > { %s3532_s18 = sld [smem:[#allocation33_spill]]  ;;  %s2198_s30 = sshll.u32 %s2910_s28, 7 }
 0x9eb   : > { %s680_s0 = scalar_lea.vmem [#allocation12], %s3125_s11  ;;  %s3533_s17 = sld [smem:[#allocation34_spill]] }
 0x9ec   : > { %s1957_s15 = sshll.u32 %s680_s0, 4  ;;  %s1939_s22 = scalar_lea.sflag [#allocation5], %s3122_s27  ;;  %s3395_s15 = int_to_ptr.vmem [resolvable:$true] %s1957_s15 }
 0x9ed   : > { %s2699_s13 = scalar_lea.vmem %s3395_s15, 128  ;;  %s2798_s28 = smov [#allocation12]  }
 0x9ee   : > { %v2194_v40 = vld [vmem:[%s3531_s29] ss:$0 sm:$0xff]  ;;  %p2700_p4 = scmp.ne.s32.totalorder %s3395_s15, %s2699_s13  ;;  %s2703_s11 = sshll.u32 %s2798_s28, 4  ;;  %s2704_s11 = int_to_ptr.vmem [resolvable:$false] %s2703_s11 }
 0x9ef   : > { %s2705_s24 = scalar_lea.vmem %s2704_s11, 256  ;;  %p2706_p5 = scmp.lt.s32.totalorder %s3395_s15, %s2704_s11 }
 0x9f0   : > { %v2195_v42 = vld [vmem:[%s3532_s18] ss:$0 sm:$0xff]  ;;  %p2701_p13 = pnand %p2700_p4, %p3530_p8  ;;  %p2707_p12 = scmp.lt.s32.totalorder %s2705_s24, %s2699_s13 }
 0x9f1   : > { %s3393_s21 = scalar_lea.hbm %s3533_s17, %s2198_s30 }
 0x9f2   : > { %p2702_p2 = pneg %p2701_p13  ;;  %p2708_p3 = por %p2707_p12, %p2706_p5 }
 0x9f4   : > { %p2709_p0 = pnand %p2708_p3, %p2702_p2 }
 0xa68   : > { %v1918_v36 = vpop.xlane.xlu0 %1917 }
 0xa69   : > { %v1919_v37 = vmul.f32 0.03125, %v1918_v36 }
 0xa6b   : > { %v1920_v38 = vadd.f32 1e-06, %v1919_v37 }
 0xa6d   : > { %2523 = vrsqrt.f32 %v1920_v38 }
 0xa77   : > { %v2524_v39 = vpop.eup %2523 }
 0xa78   : > { %v1922_v41 = vmul.f32 %v2524_v39, %v1914_v33 }
 0xa7a   : > { %v1929_v43 = vmul.f32 %v2194_v40, %v1922_v41 }
 0xa7c   : > { %v1936_v44 = vadd.f32 %v2195_v42, %v1929_v43 }
 0xa7e   : > { %1937 = vst.msk [vmem:[%s680_s0] sm:$0xff] %vm701_vm1, %v1936_v44 }
 0xa7f   : > { %2712 = shalt.err (!%p2709_p0)
}
 0xa80   : > { %s2713_s27 = scalar_lea.hbm %s3393_s21, 128  ;;  %s2717_s23 = scalar_lea.hbm %s3533_s17, 256 }
 0xa81   : > { %p2714_p7 = scmp.ne.s32.totalorder %s3393_s21, %s2713_s27  ;;  %p2718_p10 = scmp.lt.u32.totalorder %s3393_s21, %s3533_s17 }
 0xa82   : > { %p2719_p9 = scmp.lt.u32.totalorder %s2717_s23, %s2713_s27  ;;  %p2721_p4 = scmp.lt.u32.totalorder %s2713_s27, %s3393_s21 }
 0xa83   : > { %p2715_p1 = pnand %p2714_p7, %p3530_p8 }
 0xa84   : > { %p2720_p11 = por %p2719_p9, %p2718_p10 }
 0xa85   : > { %p2716_p6 = pneg %p2715_p1 }
 0xa86   : > { %p2722_p13 = por %p2721_p4, %p2720_p11 }
 0xa88   : > { %p2723_p2 = pnand %p2722_p13, %p2716_p6 }
 0xa8a   : > { %2726 = shalt.err (!%p2723_p2)
}
 0xa8b   : > { %2424 = dma.vmem_to_hbm [thread:$0]  (%p3530_p8), %s3395_s15, 128, %s3393_s21, %s1939_s22  }
 0xa8c PF: > { %s3534_s30 = sld [smem:[#allocation20_spill]]  ;;  %s3535_s0 = sld [smem:[#allocation22_spill]] }
 0xa8d   : > { %s3536_s20 = sld [smem:[#allocation21_spill]] }
 0xa92   : > { %s1985_s9 = sand.u32 1, %s3534_s30   ;;  %p3537_p5 = scmp.ne.s32.totalorder %s3535_s0, 0 }
 0xa93   : > { %p3538_p12 = scmp.ge.s32.totalorder %s3536_s20, 2  ;;  %s1986_s13 = scalar_lea.sflag [#allocation5], %s1985_s9 }
 0xa95   : > { %p2446_p3 = pnand %p3538_p12, %p3537_p5 }
 0xa97   : > { %2756 = dma.done.wait (!%p2446_p3), %s1986_s13, 128  }
 0xa98   : > { %2758 = vsyncadd (!%p2446_p3), %s1986_s13, 4294967168  ;;  %s1995_s28 = scalar_lea.sflag [#allocation14], %s1985_s9 }
 0xa99   : > { %2760 = dma.done.wait (!%p2446_p3), %s1995_s28, 512  }
 0xa9a   : > { %2762 = vsyncadd (!%p2446_p3), %s1995_s28, 4294966784  ;;  %s3539_s27 = sld [smem:[#allocation23_spill]]  ;;  %s3540_s7 = sld [smem:[#allocation24_spill]] }
 0xa9b   : > { %s3541_s24 = smov %s2769_s25  ;;  %s3542_s25 = smov %s2773_s26 }
 0xaa0   : > { %p38_p8 = scmp.ge.s32.totalorder %s3539_s27, 4   ;;  %s3543_s26 = smov %s3540_s7 }
 0xaa2   :  { %40 = sbr.rel (!%p38_p8) target bundleno = 21 (0x15), region = 184 }
 0xaa9   :  { %2000 = vsyncpa [#allocation4], 1 }
 0xaaa   :  { %2002 = vsyncpa [#allocation4 + $0x1], 1 }
 0xaab   :  { %2003 = vsyncpa [#allocation7], 1 }
 0xaac   :  { %2005 = vsyncpa [#allocation7 + $0x1], 1 }
 0xaad   :  { %2006 = vsyncpa [#allocation10], 1 }
 0xaae   :  { %2007 = vsyncpa [#allocation5], 1 }
 0xaaf   :  { %2009 = vsyncpa [#allocation5 + $0x1], 1 }
 0xab0   :  { %2010 = vsyncpa [#allocation14], 1 }
 0xab1   :  { %2012 = vsyncpa [#allocation14 + $0x1], 1 }

</bundles_post_ra>
